<compile_context>
chip_gen: v5e
topology: v5e:2x2
jax: 0.10.0
libtpu: 0.0.40
codegen_flags: <defaults>
</compile_context>

<pallas_src>
import functools

import numpy as np

import jax
import jax.numpy as jnp
from jax import lax
from jax.experimental import pallas as pl
from jax.experimental.pallas import tpu as pltpu


# ------------------------------ fused kernel --------------------------------

def _block_kernel(xg_ref, mi_ref, wc_ref, bc_ref, wd1_ref, bd1_ref, wp1_ref,
                  bp1_ref, wd2_ref, bd2_ref, wp2_ref, bp2_ref, sel_ref,
                  w1_ref, w2t_ref, wsp_ref, o_ref, sa_ref,
                  *, P, Wp, G, L2, Wh, SA_OFF):
    """One image.  Everything is channels-first on a flat padded canvas.

    Canvas: (H+2)x(W+2) zero-halo image flattened to P=(H+2)*Wp lanes.  The
    input additionally carries G=Wp+1 zero guard lanes on each side so every
    3x3 tap is a static, in-bounds lane-offset slice (no wrap handling).
    """
    f32 = jnp.float32
    hp = lax.Precision.HIGHEST
    nd = sel_ref.shape[1]            # Hh*Wh dense (half-res) positions
    cin = xg_ref.shape[0]
    cout = wc_ref.shape[0]

    xgv = xg_ref[...]                # (cin, P + 2*G): guarded flat canvas

    def dw3x3(src, w_ref, b_ref, n_ch, length):
        # 3x3 depthwise conv (+folded BN) + ReLU as 9 shifted FMAs on the flat
        # canvas.  For both convs the tap offset is dy*Wp+dx because the input
        # guard width G equals the output-span shift.
        acc = jnp.zeros((n_ch, length), f32)
        for k in range(9):
            dy, dx = divmod(k, 3)
            off = dy * Wp + dx
            acc = acc + src[:, off:off + length] * w_ref[k]   # w_ref[k]: (C,1)
        return jnp.maximum(acc + b_ref[...], 0.0)

    # ---------------- sep_conv1: depthwise 3x3 + pointwise 1x1 ---------------
    d1 = dw3x3(xgv, wd1_ref, bd1_ref, cin, P)                 # (cin, P)
    h = jnp.dot(wp1_ref[...], d1, preferred_element_type=f32, precision=hp)
    # zero the halo / inter-row junk so the next depthwise sees true zero pad.
    h = jnp.maximum(h + bp1_ref[...], 0.0) * mi_ref[...]      # (cout, P)

    # ---------------- sep_conv2: depthwise 3x3 + stride-2 pointwise ----------
    # Depthwise over the span that the strided pointwise consumes; the (2,2)
    # stride is folded into a 0/1 selection matmul (idle MXU) instead of a
    # VMEM store + strided reload.
    d2 = dw3x3(h, wd2_ref, bd2_ref, cout, L2)                 # (cout, L2)
    hs = jnp.dot(d2, sel_ref[...], preferred_element_type=f32, precision=hp)
    h2 = jnp.dot(wp2_ref[...], hs, preferred_element_type=f32, precision=hp)
    h2 = jnp.maximum(h2 + bp2_ref[...], 0.0)                  # (cout, nd)

    # ---------------- CBAM: channel attention --------------------------------
    def mlp(v):                                               # v: (cout, 1)
        t = jnp.maximum(jnp.dot(w1_ref[...], v,
                                preferred_element_type=f32, precision=hp), 0.0)
        return jnp.dot(w2t_ref[...], t, preferred_element_type=f32, precision=hp)

    avg = jnp.mean(h2, axis=1, keepdims=True)                 # (cout, 1)
    mx = jnp.max(h2, axis=1, keepdims=True)
    h2 = h2 * jax.nn.sigmoid(mlp(avg) + mlp(mx))

    # ---------------- CBAM: spatial attention (7x7 over [avg_c, max_c]) ------
    # Fused 2-plane guard buffer (2 vregs); per-tap weights arrive from VMEM
    # pre-multiplied by the zero-padding border mask, so each tap is exactly
    # one slice + one FMA over both planes.
    sa_ref[...] = jnp.zeros(sa_ref.shape, f32)                # 2-vreg guard clear
    sa_ref[0:1, SA_OFF:SA_OFF + nd] = jnp.mean(h2, axis=0, keepdims=True)
    sa_ref[1:2, SA_OFF:SA_OFF + nd] = jnp.max(h2, axis=0, keepdims=True)
    sav = sa_ref[...]                                         # (2, SA width)
    sacc = jnp.zeros((2, nd), f32)
    for k in range(49):
        a, b = divmod(k, 7)
        s = (a - 3) * Wh + (b - 3)
        sacc = sacc + sav[:, SA_OFF + s:SA_OFF + s + nd] * wsp_ref[k]
    att_s = jax.nn.sigmoid(sacc[0:1] + sacc[1:2])             # (1, nd)
    h2 = h2 * att_s

    # ---------------- residual branch (computed last: short live range) ------
    xc = xgv[:, G:G + P]                                      # un-shifted canvas
    r = jnp.dot(wc_ref[...], xc, preferred_element_type=f32, precision=hp)
    r = jnp.maximum(r + bc_ref[...], 0.0)                     # (cout, P)
    # 2x2 stride-2 maxpool: max of 4 shifted value slices, downsample via the
    # same selection matmul (no scratch round-trip).
    rm = jnp.maximum(
        jnp.maximum(r[:, G:G + L2], r[:, G + 1:G + 1 + L2]),
        jnp.maximum(r[:, G + Wp:G + Wp + L2], r[:, G + Wp + 1:G + Wp + 1 + L2]))
    rp = jnp.dot(rm, sel_ref[...], preferred_element_type=f32, precision=hp)

    o_ref[...] = (h2 + rp).astype(o_ref.dtype)                # one 64-lane store


# ----------------------------- pallas_call glue ------------------------------

def _const_spec(a):
    nd_ = a.ndim
    return pl.BlockSpec(tuple(a.shape), lambda n, _nd=nd_: (0,) * _nd)


@functools.partial(jax.jit, static_argnames=("keep_dim",))
def block_forward(x_nchw, p, keep_dim=False):
    """Block.forward: NCHW in, NCHW out (one fused Pallas kernel)."""
    if keep_dim:
        raise NotImplementedError(
            "TODO(synk): keep_dim=True path not implemented in the fused kernel")
    x = x_nchw.astype(jnp.float32)
    N, Cin, H, W = x.shape
    assert H % 2 == 0 and W % 2 == 0, "keep_dim=False assumes even H and W"
    Cout = p["wc"].shape[1]
    Hh, Wh = H // 2, W // 2
    nd = Hh * Wh
    Wp = W + 2                       # padded canvas width
    P = (H + 2) * Wp                 # flat canvas length
    G = Wp + 1                       # guard lanes each side of the input canvas
    L2 = (H - 1) * Wp + W            # span consumed by the stride-2 stages
    SA_OFF = 128                     # lane-aligned plane offset in the SA buffer
    sa_w = SA_OFF + nd + 3 * Wh + 3

    # -------- static index tables (numpy at trace time; shapes are static) ---
    rr = np.arange(P) // Wp
    cc = np.arange(P) % Wp
    mask_i = (((rr >= 1) & (rr <= H) & (cc >= 1) & (cc <= W))
              .astype(np.float32)[None, :])                       # (1, P)
    ii, jj = np.meshgrid(np.arange(Hh), np.arange(Wh), indexing="ij")
    sel = np.zeros((L2, nd), np.float32)                          # stride-2 picks
    sel[((2 * ii + 1) * Wp + (2 * jj + 1) - G).ravel(),
        (ii * Wh + jj).ravel()] = 1.0
    valid = np.zeros((49, nd), np.float32)                        # 7x7 border mask
    for k in range(49):
        a, b = divmod(k, 7)
        ok = ((ii + a - 3 >= 0) & (ii + a - 3 < Hh) &
              (jj + b - 3 >= 0) & (jj + b - 3 < Wh))
        valid[k] = ok.astype(np.float32).ravel()

    # -------- kernel-layout operands (channels-first; tiny host transposes) --
    ops = dict(
        mi=jnp.asarray(mask_i),
        wc=p["wc"].T, bc=p["bc"].T,
        wd1=p["wd1"][:, :, None], bd1=p["bd1"].T,
        wp1=p["wp1"].T, bp1=p["bp1"].T,
        wd2=p["wd2"][:, :, None], bd2=p["bd2"].T,
        wp2=p["wp2"].T, bp2=p["bp2"].T,
        sel=jnp.asarray(sel),
        w1=p["w1"], w2t=p["w2"].T,
        wsp=p["w7"][:, :, None] * jnp.asarray(valid)[:, None, :],
    )

    # -------- lane-dense flat input: 1-px zero halo + flatten + guard strips --
    xp = jnp.pad(x, ((0, 0), (0, 0), (1, 1), (1, 1)))
    xg = jnp.pad(xp.reshape(N, Cin, P), ((0, 0), (0, 0), (G, G)))

    names = ("mi", "wc", "bc", "wd1", "bd1", "wp1", "bp1", "wd2", "bd2",
             "wp2", "bp2", "sel", "w1", "w2t", "wsp")
    in_specs = ([pl.BlockSpec((None, Cin, P + 2 * G), lambda n: (n, 0, 0))]
                + [_const_spec(ops[k]) for k in names])

    out = pl.pallas_call(
        functools.partial(_block_kernel, P=P, Wp=Wp, G=G, L2=L2, Wh=Wh,
                          SA_OFF=SA_OFF),
        out_shape=jax.ShapeDtypeStruct((N, Cout, nd), jnp.float32),
        grid=(N,),
        in_specs=in_specs,
        out_specs=pl.BlockSpec((None, Cout, nd), lambda n: (n, 0, 0)),
        scratch_shapes=[pltpu.VMEM((2, sa_w), jnp.float32)],    # SA guard planes
        compiler_params=pltpu.CompilerParams(
            dimension_semantics=("parallel",)),                 # 2 TCs on v7x
    )(xg, *[ops[k] for k in names])
    # (N, Cout, Hh*Wh) -> NCHW is a free row-major reshape, no transpose.
    return out.reshape(N, Cout, Hh, Wh)


# ----------------------------- parameters ------------------------------------

def make_params(key, c_in, c_out, ratio=4):
    keys = jax.random.split(key, 12)

    def w(k, shape, s=0.3):
        return (s * jax.random.normal(k, shape)).astype(jnp.float32)

    def bn_fold(k, c, eps):
        k1, k2, k3, k4 = jax.random.split(k, 4)
        gamma = 1.0 + 0.1 * jax.random.normal(k1, (c,))
        beta = 0.1 * jax.random.normal(k2, (c,))
        mean = 0.1 * jax.random.normal(k3, (c,))
        var = 0.5 + jax.random.uniform(k4, (c,))
        scale = gamma * lax.rsqrt(var + eps)
        return scale.astype(jnp.float32), (beta - scale * mean).astype(jnp.float32)

    cr = max(c_out // ratio, 1)
    p = {}
    # conv3x3(..., kernel_size=1): Conv2d(1x1, bias=True) + BN(eps=1e-3) + ReLU
    wc = w(keys[0], (c_in, c_out))
    conv_bias = w(keys[1], (c_out,), 0.1)
    s, b = bn_fold(keys[2], c_out, 1e-3)
    p["wc"] = wc * s
    p["bc"] = (b + s * conv_bias).reshape(1, c_out)
    # sep_conv1: depthwise 3x3 (bias=False) + BN, pointwise 1x1 (bias=False) + BN
    wd1 = w(keys[3], (9, c_in));     s, b = bn_fold(keys[4], c_in, 1e-5)
    p["wd1"] = wd1 * s;              p["bd1"] = b.reshape(1, c_in)
    wp1 = w(keys[5], (c_in, c_out)); s, b = bn_fold(keys[6], c_out, 1e-5)
    p["wp1"] = wp1 * s;              p["bp1"] = b.reshape(1, c_out)
    # sep_conv2
    wd2 = w(keys[7], (9, c_out));    s, b = bn_fold(keys[8], c_out, 1e-5)
    p["wd2"] = wd2 * s;              p["bd2"] = b.reshape(1, c_out)
    wp2 = w(keys[9], (c_out, c_out)); s, b = bn_fold(keys[10], c_out, 1e-5)
    p["wp2"] = wp2 * s;              p["bp2"] = b.reshape(1, c_out)
    # CBAM
    k1, k2, k3 = jax.random.split(keys[11], 3)
    p["w1"] = w(k1, (cr, c_out))      # fc1 weight (Cr, C)
    p["w2"] = w(k2, (cr, c_out))      # fc2 weight stored as (Cr, C)
    p["w7"] = w(k3, (49, 2))          # 7x7 spatial-attention conv, ch=[avg,max]
    return p


# ----------------------------- pure-JAX reference ----------------------------

def _ref_forward(x_nhwc, p, keep_dim=False):
    dn = ("NHWC", "HWIO", "NHWC")
    hp = lax.Precision.HIGHEST

    r = lax.conv_general_dilated(x_nhwc, p["wc"][None, None], (1, 1), "VALID",
                                 dimension_numbers=dn, precision=hp)
    r = jnp.maximum(r + p["bc"], 0.0)
    if not keep_dim:
        r = lax.reduce_window(r, -jnp.inf, lax.max, (1, 2, 2, 1), (1, 2, 2, 1), "VALID")

    def sep(h, wd, bd, wp, bp, stride):
        c = h.shape[-1]
        h = lax.conv_general_dilated(h, wd.reshape(3, 3, 1, c), (1, 1),
                                     [(1, 1), (1, 1)], dimension_numbers=dn,
                                     feature_group_count=c, precision=hp)
        h = jnp.maximum(h + bd, 0.0)
        h = lax.conv_general_dilated(h, wp[None, None], (stride, stride), "VALID",
                                     dimension_numbers=dn, precision=hp)
        return jnp.maximum(h + bp, 0.0)

    h = sep(x_nhwc, p["wd1"], p["bd1"], p["wp1"], p["bp1"], 1)
    h = sep(h, p["wd2"], p["bd2"], p["wp2"], p["bp2"], 1 if keep_dim else 2)

    avg = jnp.mean(h, axis=(1, 2))
    mx = jnp.max(h, axis=(1, 2))

    def mlp(v):
        t = jnp.maximum(jnp.einsum("nc,rc->nr", v, p["w1"], precision=hp), 0.0)
        return jnp.einsum("nr,rc->nc", t, p["w2"], precision=hp)

    att_c = jax.nn.sigmoid(mlp(avg) + mlp(mx))
    h = h * att_c[:, None, None, :]

    sm = jnp.stack([jnp.mean(h, axis=-1), jnp.max(h, axis=-1)], axis=-1)
    att_s = jax.nn.sigmoid(
        lax.conv_general_dilated(sm, p["w7"].reshape(7, 7, 2, 1), (1, 1),
                                 [(3, 3), (3, 3)], dimension_numbers=dn,
                                 precision=hp))
    return h * att_s + r


# ----------------------------------- main ------------------------------------

if __name__ == "__main__":
    N, Cin, Cout, H, W = 2, 4, 8, 16, 16
    key = jax.random.PRNGKey(0)
    kx, kp = jax.random.split(key)
    params = make_params(kp, Cin, Cout)
    x = jax.random.normal(kx, (N, Cin, H, W), dtype=jnp.float32)   # NCHW input

    out = jax.block_until_ready(block_forward(x, params))
    assert out.shape == (N, Cout, H // 2, W // 2), out.shape
    assert bool(jnp.isfinite(out).all())

    ref = _ref_forward(jnp.transpose(x, (0, 2, 3, 1)), params)
    ref = jnp.transpose(ref, (0, 3, 1, 2))
    err = float(jnp.max(jnp.abs(out - ref)))
    assert err < 1e-2, f"max abs err vs reference = {err}"

    print("KERNEL_OK")
</pallas_src>

<mosaic_0001>
module attributes {stable_mosaic.version = 11 : i64} {
  func.func @_block_kernel(%arg0: i32, %arg1: memref<1x4x362xf32, #tpu.memory_space<vmem>>, %arg2: memref<1x324xf32, #tpu.memory_space<vmem>>, %arg3: memref<8x4xf32, #tpu.memory_space<vmem>>, %arg4: memref<8x1xf32, #tpu.memory_space<vmem>>, %arg5: memref<9x4x1xf32, #tpu.memory_space<vmem>>, %arg6: memref<4x1xf32, #tpu.memory_space<vmem>>, %arg7: memref<8x4xf32, #tpu.memory_space<vmem>>, %arg8: memref<8x1xf32, #tpu.memory_space<vmem>>, %arg9: memref<9x8x1xf32, #tpu.memory_space<vmem>>, %arg10: memref<8x1xf32, #tpu.memory_space<vmem>>, %arg11: memref<8x8xf32, #tpu.memory_space<vmem>>, %arg12: memref<8x1xf32, #tpu.memory_space<vmem>>, %arg13: memref<286x64xf32, #tpu.memory_space<vmem>>, %arg14: memref<2x8xf32, #tpu.memory_space<vmem>>, %arg15: memref<8x2xf32, #tpu.memory_space<vmem>>, %arg16: memref<49x2x64xf32, #tpu.memory_space<vmem>>, %arg17: memref<1x8x64xf32, #tpu.memory_space<vmem>>, %arg18: memref<2x219xf32, #tpu.memory_space<vmem>>) attributes {dimension_semantics = [#tpu.dimension_semantics<parallel>], iteration_bounds = array<i64: 2>, scalar_prefetch = 0 : i64, scratch_operands = 1 : i64, tpu.core_type = #tpu.core_type<tc>, window_params = [{transform_indices = @transform_0, window_bounds = array<i64: 1, 4, 362>}, {pipeline_mode = #tpu.pipeline_mode<synchronous>, transform_indices = @transform_1, window_bounds = array<i64: 1, 324>}, {pipeline_mode = #tpu.pipeline_mode<synchronous>, transform_indices = @transform_2, window_bounds = array<i64: 8, 4>}, {pipeline_mode = #tpu.pipeline_mode<synchronous>, transform_indices = @transform_3, window_bounds = array<i64: 8, 1>}, {pipeline_mode = #tpu.pipeline_mode<synchronous>, transform_indices = @transform_4, window_bounds = array<i64: 9, 4, 1>}, {pipeline_mode = #tpu.pipeline_mode<synchronous>, transform_indices = @transform_5, window_bounds = array<i64: 4, 1>}, {pipeline_mode = #tpu.pipeline_mode<synchronous>, transform_indices = @transform_6, window_bounds = array<i64: 8, 4>}, {pipeline_mode = #tpu.pipeline_mode<synchronous>, transform_indices = @transform_7, window_bounds = array<i64: 8, 1>}, {pipeline_mode = #tpu.pipeline_mode<synchronous>, transform_indices = @transform_8, window_bounds = array<i64: 9, 8, 1>}, {pipeline_mode = #tpu.pipeline_mode<synchronous>, transform_indices = @transform_9, window_bounds = array<i64: 8, 1>}, {pipeline_mode = #tpu.pipeline_mode<synchronous>, transform_indices = @transform_10, window_bounds = array<i64: 8, 8>}, {pipeline_mode = #tpu.pipeline_mode<synchronous>, transform_indices = @transform_11, window_bounds = array<i64: 8, 1>}, {pipeline_mode = #tpu.pipeline_mode<synchronous>, transform_indices = @transform_12, window_bounds = array<i64: 286, 64>}, {pipeline_mode = #tpu.pipeline_mode<synchronous>, transform_indices = @transform_13, window_bounds = array<i64: 2, 8>}, {pipeline_mode = #tpu.pipeline_mode<synchronous>, transform_indices = @transform_14, window_bounds = array<i64: 8, 2>}, {pipeline_mode = #tpu.pipeline_mode<synchronous>, transform_indices = @transform_15, window_bounds = array<i64: 49, 2, 64>}, {transform_indices = @transform_16, window_bounds = array<i64: 1, 8, 64>}]} {
    %c0 = arith.constant 0 : index
    %c0_0 = arith.constant 0 : index
    %c0_1 = arith.constant 0 : index
    %0 = vector.load %arg1[%c0, %c0_0, %c0_1] : memref<1x4x362xf32, #tpu.memory_space<vmem>>, vector<1x4x362xf32>
    %1 = vector.shape_cast %0 : vector<1x4x362xf32> to vector<4x362xf32>
    %cst = arith.constant 0.000000e+00 : f32
    %2 = vector.broadcast %cst : f32 to vector<4x324xf32>
    %3 = vector.extract_strided_slice %1 {offsets = [0, 0], sizes = [4, 324], strides = [1, 1]} : vector<4x362xf32> to vector<4x324xf32>
    %c0_2 = arith.constant 0 : index
    %c0_3 = arith.constant 0 : index
    %c0_4 = arith.constant 0 : index
    %4 = vector.load %arg5[%c0_2, %c0_3, %c0_4] : memref<9x4x1xf32, #tpu.memory_space<vmem>>, vector<1x4x1xf32>
    %5 = vector.shape_cast %4 : vector<1x4x1xf32> to vector<4x1xf32>
    %6 = vector.broadcast %5 : vector<4x1xf32> to vector<4x324xf32>
    %7 = arith.mulf %3, %6 : vector<4x324xf32>
    %8 = arith.addf %2, %7 : vector<4x324xf32>
    %9 = vector.extract_strided_slice %1 {offsets = [0, 1], sizes = [4, 324], strides = [1, 1]} : vector<4x362xf32> to vector<4x324xf32>
    %c1 = arith.constant 1 : index
    %c0_5 = arith.constant 0 : index
    %c0_6 = arith.constant 0 : index
    %10 = vector.load %arg5[%c1, %c0_5, %c0_6] : memref<9x4x1xf32, #tpu.memory_space<vmem>>, vector<1x4x1xf32>
    %11 = vector.shape_cast %10 : vector<1x4x1xf32> to vector<4x1xf32>
    %12 = vector.broadcast %11 : vector<4x1xf32> to vector<4x324xf32>
    %13 = arith.mulf %9, %12 : vector<4x324xf32>
    %14 = arith.addf %8, %13 : vector<4x324xf32>
    %15 = vector.extract_strided_slice %1 {offsets = [0, 2], sizes = [4, 324], strides = [1, 1]} : vector<4x362xf32> to vector<4x324xf32>
    %c2 = arith.constant 2 : index
    %c0_7 = arith.constant 0 : index
    %c0_8 = arith.constant 0 : index
    %16 = vector.load %arg5[%c2, %c0_7, %c0_8] : memref<9x4x1xf32, #tpu.memory_space<vmem>>, vector<1x4x1xf32>
    %17 = vector.shape_cast %16 : vector<1x4x1xf32> to vector<4x1xf32>
    %18 = vector.broadcast %17 : vector<4x1xf32> to vector<4x324xf32>
    %19 = arith.mulf %15, %18 : vector<4x324xf32>
    %20 = arith.addf %14, %19 : vector<4x324xf32>
    %21 = vector.extract_strided_slice %1 {offsets = [0, 18], sizes = [4, 324], strides = [1, 1]} : vector<4x362xf32> to vector<4x324xf32>
    %c3 = arith.constant 3 : index
    %c0_9 = arith.constant 0 : index
    %c0_10 = arith.constant 0 : index
    %22 = vector.load %arg5[%c3, %c0_9, %c0_10] : memref<9x4x1xf32, #tpu.memory_space<vmem>>, vector<1x4x1xf32>
    %23 = vector.shape_cast %22 : vector<1x4x1xf32> to vector<4x1xf32>
    %24 = vector.broadcast %23 : vector<4x1xf32> to vector<4x324xf32>
    %25 = arith.mulf %21, %24 : vector<4x324xf32>
    %26 = arith.addf %20, %25 : vector<4x324xf32>
    %27 = vector.extract_strided_slice %1 {offsets = [0, 19], sizes = [4, 324], strides = [1, 1]} : vector<4x362xf32> to vector<4x324xf32>
    %c4 = arith.constant 4 : index
    %c0_11 = arith.constant 0 : index
    %c0_12 = arith.constant 0 : index
    %28 = vector.load %arg5[%c4, %c0_11, %c0_12] : memref<9x4x1xf32, #tpu.memory_space<vmem>>, vector<1x4x1xf32>
    %29 = vector.shape_cast %28 : vector<1x4x1xf32> to vector<4x1xf32>
    %30 = vector.broadcast %29 : vector<4x1xf32> to vector<4x324xf32>
    %31 = arith.mulf %27, %30 : vector<4x324xf32>
    %32 = arith.addf %26, %31 : vector<4x324xf32>
    %33 = vector.extract_strided_slice %1 {offsets = [0, 20], sizes = [4, 324], strides = [1, 1]} : vector<4x362xf32> to vector<4x324xf32>
    %c5 = arith.constant 5 : index
    %c0_13 = arith.constant 0 : index
    %c0_14 = arith.constant 0 : index
    %34 = vector.load %arg5[%c5, %c0_13, %c0_14] : memref<9x4x1xf32, #tpu.memory_space<vmem>>, vector<1x4x1xf32>
    %35 = vector.shape_cast %34 : vector<1x4x1xf32> to vector<4x1xf32>
    %36 = vector.broadcast %35 : vector<4x1xf32> to vector<4x324xf32>
    %37 = arith.mulf %33, %36 : vector<4x324xf32>
    %38 = arith.addf %32, %37 : vector<4x324xf32>
    %39 = vector.extract_strided_slice %1 {offsets = [0, 36], sizes = [4, 324], strides = [1, 1]} : vector<4x362xf32> to vector<4x324xf32>
    %c6 = arith.constant 6 : index
    %c0_15 = arith.constant 0 : index
    %c0_16 = arith.constant 0 : index
    %40 = vector.load %arg5[%c6, %c0_15, %c0_16] : memref<9x4x1xf32, #tpu.memory_space<vmem>>, vector<1x4x1xf32>
    %41 = vector.shape_cast %40 : vector<1x4x1xf32> to vector<4x1xf32>
    %42 = vector.broadcast %41 : vector<4x1xf32> to vector<4x324xf32>
    %43 = arith.mulf %39, %42 : vector<4x324xf32>
    %44 = arith.addf %38, %43 : vector<4x324xf32>
    %45 = vector.extract_strided_slice %1 {offsets = [0, 37], sizes = [4, 324], strides = [1, 1]} : vector<4x362xf32> to vector<4x324xf32>
    %c7 = arith.constant 7 : index
    %c0_17 = arith.constant 0 : index
    %c0_18 = arith.constant 0 : index
    %46 = vector.load %arg5[%c7, %c0_17, %c0_18] : memref<9x4x1xf32, #tpu.memory_space<vmem>>, vector<1x4x1xf32>
    %47 = vector.shape_cast %46 : vector<1x4x1xf32> to vector<4x1xf32>
    %48 = vector.broadcast %47 : vector<4x1xf32> to vector<4x324xf32>
    %49 = arith.mulf %45, %48 : vector<4x324xf32>
    %50 = arith.addf %44, %49 : vector<4x324xf32>
    %51 = vector.extract_strided_slice %1 {offsets = [0, 38], sizes = [4, 324], strides = [1, 1]} : vector<4x362xf32> to vector<4x324xf32>
    %c8 = arith.constant 8 : index
    %c0_19 = arith.constant 0 : index
    %c0_20 = arith.constant 0 : index
    %52 = vector.load %arg5[%c8, %c0_19, %c0_20] : memref<9x4x1xf32, #tpu.memory_space<vmem>>, vector<1x4x1xf32>
    %53 = vector.shape_cast %52 : vector<1x4x1xf32> to vector<4x1xf32>
    %54 = vector.broadcast %53 : vector<4x1xf32> to vector<4x324xf32>
    %55 = arith.mulf %51, %54 : vector<4x324xf32>
    %56 = arith.addf %50, %55 : vector<4x324xf32>
    %c0_21 = arith.constant 0 : index
    %c0_22 = arith.constant 0 : index
    %57 = vector.load %arg6[%c0_21, %c0_22] : memref<4x1xf32, #tpu.memory_space<vmem>>, vector<4x1xf32>
    %58 = vector.broadcast %57 : vector<4x1xf32> to vector<4x324xf32>
    %59 = arith.addf %56, %58 : vector<4x324xf32>
    %cst_23 = arith.constant 0.000000e+00 : f32
    %60 = vector.broadcast %cst_23 : f32 to vector<4x324xf32>
    %61 = arith.maximumf %59, %60 : vector<4x324xf32>
    %c0_24 = arith.constant 0 : index
    %c0_25 = arith.constant 0 : index
    %62 = vector.load %arg7[%c0_24, %c0_25] : memref<8x4xf32, #tpu.memory_space<vmem>>, vector<8x4xf32>
    %cst_26 = arith.constant dense<0.000000e+00> : vector<8x324xf32>
    %63 = tpu.matmul %62, %61, %cst_26 {dimension_numbers = #tpu.dot_dimension_numbers<[1], [0], [0], [1], [0, 0, 1, 1], [], []>, precision = #tpu.contract_precision<fp32>} : vector<8x4xf32>, vector<4x324xf32>, vector<8x324xf32> -> vector<8x324xf32>
    %c0_27 = arith.constant 0 : index
    %c0_28 = arith.constant 0 : index
    %64 = vector.load %arg8[%c0_27, %c0_28] : memref<8x1xf32, #tpu.memory_space<vmem>>, vector<8x1xf32>
    %65 = vector.broadcast %64 : vector<8x1xf32> to vector<8x324xf32>
    %66 = arith.addf %63, %65 : vector<8x324xf32>
    %cst_29 = arith.constant 0.000000e+00 : f32
    %67 = vector.broadcast %cst_29 : f32 to vector<8x324xf32>
    %68 = arith.maximumf %66, %67 : vector<8x324xf32>
    %c0_30 = arith.constant 0 : index
    %c0_31 = arith.constant 0 : index
    %69 = vector.load %arg2[%c0_30, %c0_31] : memref<1x324xf32, #tpu.memory_space<vmem>>, vector<1x324xf32>
    %70 = vector.broadcast %69 : vector<1x324xf32> to vector<8x324xf32>
    %71 = arith.mulf %68, %70 : vector<8x324xf32>
    %cst_32 = arith.constant 0.000000e+00 : f32
    %72 = vector.broadcast %cst_32 : f32 to vector<8x286xf32>
    %73 = vector.extract_strided_slice %71 {offsets = [0, 0], sizes = [8, 286], strides = [1, 1]} : vector<8x324xf32> to vector<8x286xf32>
    %c0_33 = arith.constant 0 : index
    %c0_34 = arith.constant 0 : index
    %c0_35 = arith.constant 0 : index
    %74 = vector.load %arg9[%c0_33, %c0_34, %c0_35] : memref<9x8x1xf32, #tpu.memory_space<vmem>>, vector<1x8x1xf32>
    %75 = vector.shape_cast %74 : vector<1x8x1xf32> to vector<8x1xf32>
    %76 = vector.broadcast %75 : vector<8x1xf32> to vector<8x286xf32>
    %77 = arith.mulf %73, %76 : vector<8x286xf32>
    %78 = arith.addf %72, %77 : vector<8x286xf32>
    %79 = vector.extract_strided_slice %71 {offsets = [0, 1], sizes = [8, 286], strides = [1, 1]} : vector<8x324xf32> to vector<8x286xf32>
    %c1_36 = arith.constant 1 : index
    %c0_37 = arith.constant 0 : index
    %c0_38 = arith.constant 0 : index
    %80 = vector.load %arg9[%c1_36, %c0_37, %c0_38] : memref<9x8x1xf32, #tpu.memory_space<vmem>>, vector<1x8x1xf32>
    %81 = vector.shape_cast %80 : vector<1x8x1xf32> to vector<8x1xf32>
    %82 = vector.broadcast %81 : vector<8x1xf32> to vector<8x286xf32>
    %83 = arith.mulf %79, %82 : vector<8x286xf32>
    %84 = arith.addf %78, %83 : vector<8x286xf32>
    %85 = vector.extract_strided_slice %71 {offsets = [0, 2], sizes = [8, 286], strides = [1, 1]} : vector<8x324xf32> to vector<8x286xf32>
    %c2_39 = arith.constant 2 : index
    %c0_40 = arith.constant 0 : index
    %c0_41 = arith.constant 0 : index
    %86 = vector.load %arg9[%c2_39, %c0_40, %c0_41] : memref<9x8x1xf32, #tpu.memory_space<vmem>>, vector<1x8x1xf32>
    %87 = vector.shape_cast %86 : vector<1x8x1xf32> to vector<8x1xf32>
    %88 = vector.broadcast %87 : vector<8x1xf32> to vector<8x286xf32>
    %89 = arith.mulf %85, %88 : vector<8x286xf32>
    %90 = arith.addf %84, %89 : vector<8x286xf32>
    %91 = vector.extract_strided_slice %71 {offsets = [0, 18], sizes = [8, 286], strides = [1, 1]} : vector<8x324xf32> to vector<8x286xf32>
    %c3_42 = arith.constant 3 : index
    %c0_43 = arith.constant 0 : index
    %c0_44 = arith.constant 0 : index
    %92 = vector.load %arg9[%c3_42, %c0_43, %c0_44] : memref<9x8x1xf32, #tpu.memory_space<vmem>>, vector<1x8x1xf32>
    %93 = vector.shape_cast %92 : vector<1x8x1xf32> to vector<8x1xf32>
    %94 = vector.broadcast %93 : vector<8x1xf32> to vector<8x286xf32>
    %95 = arith.mulf %91, %94 : vector<8x286xf32>
    %96 = arith.addf %90, %95 : vector<8x286xf32>
    %97 = vector.extract_strided_slice %71 {offsets = [0, 19], sizes = [8, 286], strides = [1, 1]} : vector<8x324xf32> to vector<8x286xf32>
    %c4_45 = arith.constant 4 : index
    %c0_46 = arith.constant 0 : index
    %c0_47 = arith.constant 0 : index
    %98 = vector.load %arg9[%c4_45, %c0_46, %c0_47] : memref<9x8x1xf32, #tpu.memory_space<vmem>>, vector<1x8x1xf32>
    %99 = vector.shape_cast %98 : vector<1x8x1xf32> to vector<8x1xf32>
    %100 = vector.broadcast %99 : vector<8x1xf32> to vector<8x286xf32>
    %101 = arith.mulf %97, %100 : vector<8x286xf32>
    %102 = arith.addf %96, %101 : vector<8x286xf32>
    %103 = vector.extract_strided_slice %71 {offsets = [0, 20], sizes = [8, 286], strides = [1, 1]} : vector<8x324xf32> to vector<8x286xf32>
    %c5_48 = arith.constant 5 : index
    %c0_49 = arith.constant 0 : index
    %c0_50 = arith.constant 0 : index
    %104 = vector.load %arg9[%c5_48, %c0_49, %c0_50] : memref<9x8x1xf32, #tpu.memory_space<vmem>>, vector<1x8x1xf32>
    %105 = vector.shape_cast %104 : vector<1x8x1xf32> to vector<8x1xf32>
    %106 = vector.broadcast %105 : vector<8x1xf32> to vector<8x286xf32>
    %107 = arith.mulf %103, %106 : vector<8x286xf32>
    %108 = arith.addf %102, %107 : vector<8x286xf32>
    %109 = vector.extract_strided_slice %71 {offsets = [0, 36], sizes = [8, 286], strides = [1, 1]} : vector<8x324xf32> to vector<8x286xf32>
    %c6_51 = arith.constant 6 : index
    %c0_52 = arith.constant 0 : index
    %c0_53 = arith.constant 0 : index
    %110 = vector.load %arg9[%c6_51, %c0_52, %c0_53] : memref<9x8x1xf32, #tpu.memory_space<vmem>>, vector<1x8x1xf32>
    %111 = vector.shape_cast %110 : vector<1x8x1xf32> to vector<8x1xf32>
    %112 = vector.broadcast %111 : vector<8x1xf32> to vector<8x286xf32>
    %113 = arith.mulf %109, %112 : vector<8x286xf32>
    %114 = arith.addf %108, %113 : vector<8x286xf32>
    %115 = vector.extract_strided_slice %71 {offsets = [0, 37], sizes = [8, 286], strides = [1, 1]} : vector<8x324xf32> to vector<8x286xf32>
    %c7_54 = arith.constant 7 : index
    %c0_55 = arith.constant 0 : index
    %c0_56 = arith.constant 0 : index
    %116 = vector.load %arg9[%c7_54, %c0_55, %c0_56] : memref<9x8x1xf32, #tpu.memory_space<vmem>>, vector<1x8x1xf32>
    %117 = vector.shape_cast %116 : vector<1x8x1xf32> to vector<8x1xf32>
    %118 = vector.broadcast %117 : vector<8x1xf32> to vector<8x286xf32>
    %119 = arith.mulf %115, %118 : vector<8x286xf32>
    %120 = arith.addf %114, %119 : vector<8x286xf32>
    %121 = vector.extract_strided_slice %71 {offsets = [0, 38], sizes = [8, 286], strides = [1, 1]} : vector<8x324xf32> to vector<8x286xf32>
    %c8_57 = arith.constant 8 : index
    %c0_58 = arith.constant 0 : index
    %c0_59 = arith.constant 0 : index
    %122 = vector.load %arg9[%c8_57, %c0_58, %c0_59] : memref<9x8x1xf32, #tpu.memory_space<vmem>>, vector<1x8x1xf32>
    %123 = vector.shape_cast %122 : vector<1x8x1xf32> to vector<8x1xf32>
    %124 = vector.broadcast %123 : vector<8x1xf32> to vector<8x286xf32>
    %125 = arith.mulf %121, %124 : vector<8x286xf32>
    %126 = arith.addf %120, %125 : vector<8x286xf32>
    %c0_60 = arith.constant 0 : index
    %c0_61 = arith.constant 0 : index
    %127 = vector.load %arg10[%c0_60, %c0_61] : memref<8x1xf32, #tpu.memory_space<vmem>>, vector<8x1xf32>
    %128 = vector.broadcast %127 : vector<8x1xf32> to vector<8x286xf32>
    %129 = arith.addf %126, %128 : vector<8x286xf32>
    %cst_62 = arith.constant 0.000000e+00 : f32
    %130 = vector.broadcast %cst_62 : f32 to vector<8x286xf32>
    %131 = arith.maximumf %129, %130 : vector<8x286xf32>
    %c0_63 = arith.constant 0 : index
    %c0_64 = arith.constant 0 : index
    %132 = vector.load %arg13[%c0_63, %c0_64] : memref<286x64xf32, #tpu.memory_space<vmem>>, vector<286x64xf32>
    %cst_65 = arith.constant dense<0.000000e+00> : vector<8x64xf32>
    %133 = tpu.matmul %131, %132, %cst_65 {dimension_numbers = #tpu.dot_dimension_numbers<[1], [0], [0], [1], [0, 0, 1, 1], [], []>, precision = #tpu.contract_precision<fp32>} : vector<8x286xf32>, vector<286x64xf32>, vector<8x64xf32> -> vector<8x64xf32>
    %c0_66 = arith.constant 0 : index
    %c0_67 = arith.constant 0 : index
    %134 = vector.load %arg11[%c0_66, %c0_67] : memref<8x8xf32, #tpu.memory_space<vmem>>, vector<8x8xf32>
    %cst_68 = arith.constant dense<0.000000e+00> : vector<8x64xf32>
    %135 = tpu.matmul %134, %133, %cst_68 {dimension_numbers = #tpu.dot_dimension_numbers<[1], [0], [0], [1], [0, 0, 1, 1], [], []>, precision = #tpu.contract_precision<fp32>} : vector<8x8xf32>, vector<8x64xf32>, vector<8x64xf32> -> vector<8x64xf32>
    %c0_69 = arith.constant 0 : index
    %c0_70 = arith.constant 0 : index
    %136 = vector.load %arg12[%c0_69, %c0_70] : memref<8x1xf32, #tpu.memory_space<vmem>>, vector<8x1xf32>
    %137 = vector.broadcast %136 : vector<8x1xf32> to vector<8x64xf32>
    %138 = arith.addf %135, %137 : vector<8x64xf32>
    %cst_71 = arith.constant 0.000000e+00 : f32
    %139 = vector.broadcast %cst_71 : f32 to vector<8x64xf32>
    %140 = arith.maximumf %138, %139 : vector<8x64xf32>
    %cst_72 = arith.constant dense<0.000000e+00> : vector<8xf32>
    %141 = vector.multi_reduction <add>, %140, %cst_72 [1] : vector<8x64xf32> to vector<8xf32>
    %142 = vector.shape_cast %141 : vector<8xf32> to vector<8x1xf32>
    %cst_73 = arith.constant 6.400000e+01 : f32
    %143 = vector.broadcast %cst_73 : f32 to vector<8x1xf32>
    %144 = arith.divf %142, %143 : vector<8x1xf32>
    %cst_74 = arith.constant dense<0xFF800000> : vector<8xf32>
    %145 = vector.multi_reduction <maximumf>, %140, %cst_74 [1] : vector<8x64xf32> to vector<8xf32>
    %146 = vector.shape_cast %145 : vector<8xf32> to vector<8x1xf32>
    %c0_75 = arith.constant 0 : index
    %c0_76 = arith.constant 0 : index
    %147 = vector.load %arg14[%c0_75, %c0_76] : memref<2x8xf32, #tpu.memory_space<vmem>>, vector<2x8xf32>
    %cst_77 = arith.constant dense<0.000000e+00> : vector<2x1xf32>
    %148 = tpu.matmul %147, %144, %cst_77 {dimension_numbers = #tpu.dot_dimension_numbers<[1], [0], [0], [1], [0, 0, 1, 1], [], []>, precision = #tpu.contract_precision<fp32>} : vector<2x8xf32>, vector<8x1xf32>, vector<2x1xf32> -> vector<2x1xf32>
    %cst_78 = arith.constant 0.000000e+00 : f32
    %149 = vector.broadcast %cst_78 : f32 to vector<2x1xf32>
    %150 = arith.maximumf %148, %149 : vector<2x1xf32>
    %c0_79 = arith.constant 0 : index
    %c0_80 = arith.constant 0 : index
    %151 = vector.load %arg15[%c0_79, %c0_80] : memref<8x2xf32, #tpu.memory_space<vmem>>, vector<8x2xf32>
    %cst_81 = arith.constant dense<0.000000e+00> : vector<8x1xf32>
    %152 = tpu.matmul %151, %150, %cst_81 {dimension_numbers = #tpu.dot_dimension_numbers<[1], [0], [0], [1], [0, 0, 1, 1], [], []>, precision = #tpu.contract_precision<fp32>} : vector<8x2xf32>, vector<2x1xf32>, vector<8x1xf32> -> vector<8x1xf32>
    %c0_82 = arith.constant 0 : index
    %c0_83 = arith.constant 0 : index
    %153 = vector.load %arg14[%c0_82, %c0_83] : memref<2x8xf32, #tpu.memory_space<vmem>>, vector<2x8xf32>
    %cst_84 = arith.constant dense<0.000000e+00> : vector<2x1xf32>
    %154 = tpu.matmul %153, %146, %cst_84 {dimension_numbers = #tpu.dot_dimension_numbers<[1], [0], [0], [1], [0, 0, 1, 1], [], []>, precision = #tpu.contract_precision<fp32>} : vector<2x8xf32>, vector<8x1xf32>, vector<2x1xf32> -> vector<2x1xf32>
    %cst_85 = arith.constant 0.000000e+00 : f32
    %155 = vector.broadcast %cst_85 : f32 to vector<2x1xf32>
    %156 = arith.maximumf %154, %155 : vector<2x1xf32>
    %c0_86 = arith.constant 0 : index
    %c0_87 = arith.constant 0 : index
    %157 = vector.load %arg15[%c0_86, %c0_87] : memref<8x2xf32, #tpu.memory_space<vmem>>, vector<8x2xf32>
    %cst_88 = arith.constant dense<0.000000e+00> : vector<8x1xf32>
    %158 = tpu.matmul %157, %156, %cst_88 {dimension_numbers = #tpu.dot_dimension_numbers<[1], [0], [0], [1], [0, 0, 1, 1], [], []>, precision = #tpu.contract_precision<fp32>} : vector<8x2xf32>, vector<2x1xf32>, vector<8x1xf32> -> vector<8x1xf32>
    %159 = arith.addf %152, %158 : vector<8x1xf32>
    %160 = arith.negf %159 : vector<8x1xf32>
    %161 = math.exp %160 : vector<8x1xf32>
    %cst_89 = arith.constant 1.000000e+00 : f32
    %162 = vector.broadcast %cst_89 : f32 to vector<8x1xf32>
    %163 = arith.addf %162, %161 : vector<8x1xf32>
    %164 = arith.divf %162, %163 : vector<8x1xf32>
    %165 = vector.broadcast %164 : vector<8x1xf32> to vector<8x64xf32>
    %166 = arith.mulf %140, %165 : vector<8x64xf32>
    %cst_90 = arith.constant 0.000000e+00 : f32
    %167 = vector.broadcast %cst_90 : f32 to vector<2x219xf32>
    %c0_91 = arith.constant 0 : index
    %c0_92 = arith.constant 0 : index
    %168 = vector.load %arg18[%c0_91, %c0_92] : memref<2x219xf32, #tpu.memory_space<vmem>>, vector<2x219xf32>
    tpu.vector_store %arg18[%c0_91, %c0_92], %167 {strides = array<i32>} : memref<2x219xf32, #tpu.memory_space<vmem>>, vector<2x219xf32>,
    %cst_93 = arith.constant dense<0.000000e+00> : vector<64xf32>
    %169 = vector.multi_reduction <add>, %166, %cst_93 [0] : vector<8x64xf32> to vector<64xf32>
    %170 = vector.shape_cast %169 : vector<64xf32> to vector<1x64xf32>
    %cst_94 = arith.constant 8.000000e+00 : f32
    %171 = vector.broadcast %cst_94 : f32 to vector<1x64xf32>
    %172 = arith.divf %170, %171 : vector<1x64xf32>
    %c0_95 = arith.constant 0 : index
    %c128 = arith.constant 128 : index
    %173 = vector.load %arg18[%c0_95, %c128] : memref<2x219xf32, #tpu.memory_space<vmem>>, vector<1x64xf32>
    tpu.vector_store %arg18[%c0_95, %c128], %172 {strides = array<i32>} : memref<2x219xf32, #tpu.memory_space<vmem>>, vector<1x64xf32>,
    %cst_96 = arith.constant dense<0xFF800000> : vector<64xf32>
    %174 = vector.multi_reduction <maximumf>, %166, %cst_96 [0] : vector<8x64xf32> to vector<64xf32>
    %175 = vector.shape_cast %174 : vector<64xf32> to vector<1x64xf32>
    %c1_97 = arith.constant 1 : index
    %c128_98 = arith.constant 128 : index
    %176 = vector.load %arg18[%c1_97, %c128_98] : memref<2x219xf32, #tpu.memory_space<vmem>>, vector<1x64xf32>
    tpu.vector_store %arg18[%c1_97, %c128_98], %175 {strides = array<i32>} : memref<2x219xf32, #tpu.memory_space<vmem>>, vector<1x64xf32>,
    %c0_99 = arith.constant 0 : index
    %c0_100 = arith.constant 0 : index
    %177 = vector.load %arg18[%c0_99, %c0_100] : memref<2x219xf32, #tpu.memory_space<vmem>>, vector<2x219xf32>
    %cst_101 = arith.constant 0.000000e+00 : f32
    %178 = vector.broadcast %cst_101 : f32 to vector<2x64xf32>
    %179 = vector.extract_strided_slice %177 {offsets = [0, 101], sizes = [2, 64], strides = [1, 1]} : vector<2x219xf32> to vector<2x64xf32>
    %c0_102 = arith.constant 0 : index
    %c0_103 = arith.constant 0 : index
    %c0_104 = arith.constant 0 : index
    %180 = vector.load %arg16[%c0_102, %c0_103, %c0_104] : memref<49x2x64xf32, #tpu.memory_space<vmem>>, vector<1x2x64xf32>
    %181 = vector.shape_cast %180 : vector<1x2x64xf32> to vector<2x64xf32>
    %182 = arith.mulf %179, %181 : vector<2x64xf32>
    %183 = arith.addf %178, %182 : vector<2x64xf32>
    %184 = vector.extract_strided_slice %177 {offsets = [0, 102], sizes = [2, 64], strides = [1, 1]} : vector<2x219xf32> to vector<2x64xf32>
    %c1_105 = arith.constant 1 : index
    %c0_106 = arith.constant 0 : index
    %c0_107 = arith.constant 0 : index
    %185 = vector.load %arg16[%c1_105, %c0_106, %c0_107] : memref<49x2x64xf32, #tpu.memory_space<vmem>>, vector<1x2x64xf32>
    %186 = vector.shape_cast %185 : vector<1x2x64xf32> to vector<2x64xf32>
    %187 = arith.mulf %184, %186 : vector<2x64xf32>
    %188 = arith.addf %183, %187 : vector<2x64xf32>
    %189 = vector.extract_strided_slice %177 {offsets = [0, 103], sizes = [2, 64], strides = [1, 1]} : vector<2x219xf32> to vector<2x64xf32>
    %c2_108 = arith.constant 2 : index
    %c0_109 = arith.constant 0 : index
    %c0_110 = arith.constant 0 : index
    %190 = vector.load %arg16[%c2_108, %c0_109, %c0_110] : memref<49x2x64xf32, #tpu.memory_space<vmem>>, vector<1x2x64xf32>
    %191 = vector.shape_cast %190 : vector<1x2x64xf32> to vector<2x64xf32>
    %192 = arith.mulf %189, %191 : vector<2x64xf32>
    %193 = arith.addf %188, %192 : vector<2x64xf32>
    %194 = vector.extract_strided_slice %177 {offsets = [0, 104], sizes = [2, 64], strides = [1, 1]} : vector<2x219xf32> to vector<2x64xf32>
    %c3_111 = arith.constant 3 : index
    %c0_112 = arith.constant 0 : index
    %c0_113 = arith.constant 0 : index
    %195 = vector.load %arg16[%c3_111, %c0_112, %c0_113] : memref<49x2x64xf32, #tpu.memory_space<vmem>>, vector<1x2x64xf32>
    %196 = vector.shape_cast %195 : vector<1x2x64xf32> to vector<2x64xf32>
    %197 = arith.mulf %194, %196 : vector<2x64xf32>
    %198 = arith.addf %193, %197 : vector<2x64xf32>
    %199 = vector.extract_strided_slice %177 {offsets = [0, 105], sizes = [2, 64], strides = [1, 1]} : vector<2x219xf32> to vector<2x64xf32>
    %c4_114 = arith.constant 4 : index
    %c0_115 = arith.constant 0 : index
    %c0_116 = arith.constant 0 : index
    %200 = vector.load %arg16[%c4_114, %c0_115, %c0_116] : memref<49x2x64xf32, #tpu.memory_space<vmem>>, vector<1x2x64xf32>
    %201 = vector.shape_cast %200 : vector<1x2x64xf32> to vector<2x64xf32>
    %202 = arith.mulf %199, %201 : vector<2x64xf32>
    %203 = arith.addf %198, %202 : vector<2x64xf32>
    %204 = vector.extract_strided_slice %177 {offsets = [0, 106], sizes = [2, 64], strides = [1, 1]} : vector<2x219xf32> to vector<2x64xf32>
    %c5_117 = arith.constant 5 : index
    %c0_118 = arith.constant 0 : index
    %c0_119 = arith.constant 0 : index
    %205 = vector.load %arg16[%c5_117, %c0_118, %c0_119] : memref<49x2x64xf32, #tpu.memory_space<vmem>>, vector<1x2x64xf32>
    %206 = vector.shape_cast %205 : vector<1x2x64xf32> to vector<2x64xf32>
    %207 = arith.mulf %204, %206 : vector<2x64xf32>
    %208 = arith.addf %203, %207 : vector<2x64xf32>
    %209 = vector.extract_strided_slice %177 {offsets = [0, 107], sizes = [2, 64], strides = [1, 1]} : vector<2x219xf32> to vector<2x64xf32>
    %c6_120 = arith.constant 6 : index
    %c0_121 = arith.constant 0 : index
    %c0_122 = arith.constant 0 : index
    %210 = vector.load %arg16[%c6_120, %c0_121, %c0_122] : memref<49x2x64xf32, #tpu.memory_space<vmem>>, vector<1x2x64xf32>
    %211 = vector.shape_cast %210 : vector<1x2x64xf32> to vector<2x64xf32>
    %212 = arith.mulf %209, %211 : vector<2x64xf32>
    %213 = arith.addf %208, %212 : vector<2x64xf32>
    %214 = vector.extract_strided_slice %177 {offsets = [0, 109], sizes = [2, 64], strides = [1, 1]} : vector<2x219xf32> to vector<2x64xf32>
    %c7_123 = arith.constant 7 : index
    %c0_124 = arith.constant 0 : index
    %c0_125 = arith.constant 0 : index
    %215 = vector.load %arg16[%c7_123, %c0_124, %c0_125] : memref<49x2x64xf32, #tpu.memory_space<vmem>>, vector<1x2x64xf32>
    %216 = vector.shape_cast %215 : vector<1x2x64xf32> to vector<2x64xf32>
    %217 = arith.mulf %214, %216 : vector<2x64xf32>
    %218 = arith.addf %213, %217 : vector<2x64xf32>
    %219 = vector.extract_strided_slice %177 {offsets = [0, 110], sizes = [2, 64], strides = [1, 1]} : vector<2x219xf32> to vector<2x64xf32>
    %c8_126 = arith.constant 8 : index
    %c0_127 = arith.constant 0 : index
    %c0_128 = arith.constant 0 : index
    %220 = vector.load %arg16[%c8_126, %c0_127, %c0_128] : memref<49x2x64xf32, #tpu.memory_space<vmem>>, vector<1x2x64xf32>
    %221 = vector.shape_cast %220 : vector<1x2x64xf32> to vector<2x64xf32>
    %222 = arith.mulf %219, %221 : vector<2x64xf32>
    %223 = arith.addf %218, %222 : vector<2x64xf32>
    %224 = vector.extract_strided_slice %177 {offsets = [0, 111], sizes = [2, 64], strides = [1, 1]} : vector<2x219xf32> to vector<2x64xf32>
    %c9 = arith.constant 9 : index
    %c0_129 = arith.constant 0 : index
    %c0_130 = arith.constant 0 : index
    %225 = vector.load %arg16[%c9, %c0_129, %c0_130] : memref<49x2x64xf32, #tpu.memory_space<vmem>>, vector<1x2x64xf32>
    %226 = vector.shape_cast %225 : vector<1x2x64xf32> to vector<2x64xf32>
    %227 = arith.mulf %224, %226 : vector<2x64xf32>
    %228 = arith.addf %223, %227 : vector<2x64xf32>
    %229 = vector.extract_strided_slice %177 {offsets = [0, 112], sizes = [2, 64], strides = [1, 1]} : vector<2x219xf32> to vector<2x64xf32>
    %c10 = arith.constant 10 : index
    %c0_131 = arith.constant 0 : index
    %c0_132 = arith.constant 0 : index
    %230 = vector.load %arg16[%c10, %c0_131, %c0_132] : memref<49x2x64xf32, #tpu.memory_space<vmem>>, vector<1x2x64xf32>
    %231 = vector.shape_cast %230 : vector<1x2x64xf32> to vector<2x64xf32>
    %232 = arith.mulf %229, %231 : vector<2x64xf32>
    %233 = arith.addf %228, %232 : vector<2x64xf32>
    %234 = vector.extract_strided_slice %177 {offsets = [0, 113], sizes = [2, 64], strides = [1, 1]} : vector<2x219xf32> to vector<2x64xf32>
    %c11 = arith.constant 11 : index
    %c0_133 = arith.constant 0 : index
    %c0_134 = arith.constant 0 : index
    %235 = vector.load %arg16[%c11, %c0_133, %c0_134] : memref<49x2x64xf32, #tpu.memory_space<vmem>>, vector<1x2x64xf32>
    %236 = vector.shape_cast %235 : vector<1x2x64xf32> to vector<2x64xf32>
    %237 = arith.mulf %234, %236 : vector<2x64xf32>
    %238 = arith.addf %233, %237 : vector<2x64xf32>
    %239 = vector.extract_strided_slice %177 {offsets = [0, 114], sizes = [2, 64], strides = [1, 1]} : vector<2x219xf32> to vector<2x64xf32>
    %c12 = arith.constant 12 : index
    %c0_135 = arith.constant 0 : index
    %c0_136 = arith.constant 0 : index
    %240 = vector.load %arg16[%c12, %c0_135, %c0_136] : memref<49x2x64xf32, #tpu.memory_space<vmem>>, vector<1x2x64xf32>
    %241 = vector.shape_cast %240 : vector<1x2x64xf32> to vector<2x64xf32>
    %242 = arith.mulf %239, %241 : vector<2x64xf32>
    %243 = arith.addf %238, %242 : vector<2x64xf32>
    %244 = vector.extract_strided_slice %177 {offsets = [0, 115], sizes = [2, 64], strides = [1, 1]} : vector<2x219xf32> to vector<2x64xf32>
    %c13 = arith.constant 13 : index
    %c0_137 = arith.constant 0 : index
    %c0_138 = arith.constant 0 : index
    %245 = vector.load %arg16[%c13, %c0_137, %c0_138] : memref<49x2x64xf32, #tpu.memory_space<vmem>>, vector<1x2x64xf32>
    %246 = vector.shape_cast %245 : vector<1x2x64xf32> to vector<2x64xf32>
    %247 = arith.mulf %244, %246 : vector<2x64xf32>
    %248 = arith.addf %243, %247 : vector<2x64xf32>
    %249 = vector.extract_strided_slice %177 {offsets = [0, 117], sizes = [2, 64], strides = [1, 1]} : vector<2x219xf32> to vector<2x64xf32>
    %c14 = arith.constant 14 : index
    %c0_139 = arith.constant 0 : index
    %c0_140 = arith.constant 0 : index
    %250 = vector.load %arg16[%c14, %c0_139, %c0_140] : memref<49x2x64xf32, #tpu.memory_space<vmem>>, vector<1x2x64xf32>
    %251 = vector.shape_cast %250 : vector<1x2x64xf32> to vector<2x64xf32>
    %252 = arith.mulf %249, %251 : vector<2x64xf32>
    %253 = arith.addf %248, %252 : vector<2x64xf32>
    %254 = vector.extract_strided_slice %177 {offsets = [0, 118], sizes = [2, 64], strides = [1, 1]} : vector<2x219xf32> to vector<2x64xf32>
    %c15 = arith.constant 15 : index
    %c0_141 = arith.constant 0 : index
    %c0_142 = arith.constant 0 : index
    %255 = vector.load %arg16[%c15, %c0_141, %c0_142] : memref<49x2x64xf32, #tpu.memory_space<vmem>>, vector<1x2x64xf32>
    %256 = vector.shape_cast %255 : vector<1x2x64xf32> to vector<2x64xf32>
    %257 = arith.mulf %254, %256 : vector<2x64xf32>
    %258 = arith.addf %253, %257 : vector<2x64xf32>
    %259 = vector.extract_strided_slice %177 {offsets = [0, 119], sizes = [2, 64], strides = [1, 1]} : vector<2x219xf32> to vector<2x64xf32>
    %c16 = arith.constant 16 : index
    %c0_143 = arith.constant 0 : index
    %c0_144 = arith.constant 0 : index
    %260 = vector.load %arg16[%c16, %c0_143, %c0_144] : memref<49x2x64xf32, #tpu.memory_space<vmem>>, vector<1x2x64xf32>
    %261 = vector.shape_cast %260 : vector<1x2x64xf32> to vector<2x64xf32>
    %262 = arith.mulf %259, %261 : vector<2x64xf32>
    %263 = arith.addf %258, %262 : vector<2x64xf32>
    %264 = vector.extract_strided_slice %177 {offsets = [0, 120], sizes = [2, 64], strides = [1, 1]} : vector<2x219xf32> to vector<2x64xf32>
    %c17 = arith.constant 17 : index
    %c0_145 = arith.constant 0 : index
    %c0_146 = arith.constant 0 : index
    %265 = vector.load %arg16[%c17, %c0_145, %c0_146] : memref<49x2x64xf32, #tpu.memory_space<vmem>>, vector<1x2x64xf32>
    %266 = vector.shape_cast %265 : vector<1x2x64xf32> to vector<2x64xf32>
    %267 = arith.mulf %264, %266 : vector<2x64xf32>
    %268 = arith.addf %263, %267 : vector<2x64xf32>
    %269 = vector.extract_strided_slice %177 {offsets = [0, 121], sizes = [2, 64], strides = [1, 1]} : vector<2x219xf32> to vector<2x64xf32>
    %c18 = arith.constant 18 : index
    %c0_147 = arith.constant 0 : index
    %c0_148 = arith.constant 0 : index
    %270 = vector.load %arg16[%c18, %c0_147, %c0_148] : memref<49x2x64xf32, #tpu.memory_space<vmem>>, vector<1x2x64xf32>
    %271 = vector.shape_cast %270 : vector<1x2x64xf32> to vector<2x64xf32>
    %272 = arith.mulf %269, %271 : vector<2x64xf32>
    %273 = arith.addf %268, %272 : vector<2x64xf32>
    %274 = vector.extract_strided_slice %177 {offsets = [0, 122], sizes = [2, 64], strides = [1, 1]} : vector<2x219xf32> to vector<2x64xf32>
    %c19 = arith.constant 19 : index
    %c0_149 = arith.constant 0 : index
    %c0_150 = arith.constant 0 : index
    %275 = vector.load %arg16[%c19, %c0_149, %c0_150] : memref<49x2x64xf32, #tpu.memory_space<vmem>>, vector<1x2x64xf32>
    %276 = vector.shape_cast %275 : vector<1x2x64xf32> to vector<2x64xf32>
    %277 = arith.mulf %274, %276 : vector<2x64xf32>
    %278 = arith.addf %273, %277 : vector<2x64xf32>
    %279 = vector.extract_strided_slice %177 {offsets = [0, 123], sizes = [2, 64], strides = [1, 1]} : vector<2x219xf32> to vector<2x64xf32>
    %c20 = arith.constant 20 : index
    %c0_151 = arith.constant 0 : index
    %c0_152 = arith.constant 0 : index
    %280 = vector.load %arg16[%c20, %c0_151, %c0_152] : memref<49x2x64xf32, #tpu.memory_space<vmem>>, vector<1x2x64xf32>
    %281 = vector.shape_cast %280 : vector<1x2x64xf32> to vector<2x64xf32>
    %282 = arith.mulf %279, %281 : vector<2x64xf32>
    %283 = arith.addf %278, %282 : vector<2x64xf32>
    %284 = vector.extract_strided_slice %177 {offsets = [0, 125], sizes = [2, 64], strides = [1, 1]} : vector<2x219xf32> to vector<2x64xf32>
    %c21 = arith.constant 21 : index
    %c0_153 = arith.constant 0 : index
    %c0_154 = arith.constant 0 : index
    %285 = vector.load %arg16[%c21, %c0_153, %c0_154] : memref<49x2x64xf32, #tpu.memory_space<vmem>>, vector<1x2x64xf32>
    %286 = vector.shape_cast %285 : vector<1x2x64xf32> to vector<2x64xf32>
    %287 = arith.mulf %284, %286 : vector<2x64xf32>
    %288 = arith.addf %283, %287 : vector<2x64xf32>
    %289 = vector.extract_strided_slice %177 {offsets = [0, 126], sizes = [2, 64], strides = [1, 1]} : vector<2x219xf32> to vector<2x64xf32>
    %c22 = arith.constant 22 : index
    %c0_155 = arith.constant 0 : index
    %c0_156 = arith.constant 0 : index
    %290 = vector.load %arg16[%c22, %c0_155, %c0_156] : memref<49x2x64xf32, #tpu.memory_space<vmem>>, vector<1x2x64xf32>
    %291 = vector.shape_cast %290 : vector<1x2x64xf32> to vector<2x64xf32>
    %292 = arith.mulf %289, %291 : vector<2x64xf32>
    %293 = arith.addf %288, %292 : vector<2x64xf32>
    %294 = vector.extract_strided_slice %177 {offsets = [0, 127], sizes = [2, 64], strides = [1, 1]} : vector<2x219xf32> to vector<2x64xf32>
    %c23 = arith.constant 23 : index
    %c0_157 = arith.constant 0 : index
    %c0_158 = arith.constant 0 : index
    %295 = vector.load %arg16[%c23, %c0_157, %c0_158] : memref<49x2x64xf32, #tpu.memory_space<vmem>>, vector<1x2x64xf32>
    %296 = vector.shape_cast %295 : vector<1x2x64xf32> to vector<2x64xf32>
    %297 = arith.mulf %294, %296 : vector<2x64xf32>
    %298 = arith.addf %293, %297 : vector<2x64xf32>
    %299 = vector.extract_strided_slice %177 {offsets = [0, 128], sizes = [2, 64], strides = [1, 1]} : vector<2x219xf32> to vector<2x64xf32>
    %c24 = arith.constant 24 : index
    %c0_159 = arith.constant 0 : index
    %c0_160 = arith.constant 0 : index
    %300 = vector.load %arg16[%c24, %c0_159, %c0_160] : memref<49x2x64xf32, #tpu.memory_space<vmem>>, vector<1x2x64xf32>
    %301 = vector.shape_cast %300 : vector<1x2x64xf32> to vector<2x64xf32>
    %302 = arith.mulf %299, %301 : vector<2x64xf32>
    %303 = arith.addf %298, %302 : vector<2x64xf32>
    %304 = vector.extract_strided_slice %177 {offsets = [0, 129], sizes = [2, 64], strides = [1, 1]} : vector<2x219xf32> to vector<2x64xf32>
    %c25 = arith.constant 25 : index
    %c0_161 = arith.constant 0 : index
    %c0_162 = arith.constant 0 : index
    %305 = vector.load %arg16[%c25, %c0_161, %c0_162] : memref<49x2x64xf32, #tpu.memory_space<vmem>>, vector<1x2x64xf32>
    %306 = vector.shape_cast %305 : vector<1x2x64xf32> to vector<2x64xf32>
    %307 = arith.mulf %304, %306 : vector<2x64xf32>
    %308 = arith.addf %303, %307 : vector<2x64xf32>
    %309 = vector.extract_strided_slice %177 {offsets = [0, 130], sizes = [2, 64], strides = [1, 1]} : vector<2x219xf32> to vector<2x64xf32>
    %c26 = arith.constant 26 : index
    %c0_163 = arith.constant 0 : index
    %c0_164 = arith.constant 0 : index
    %310 = vector.load %arg16[%c26, %c0_163, %c0_164] : memref<49x2x64xf32, #tpu.memory_space<vmem>>, vector<1x2x64xf32>
    %311 = vector.shape_cast %310 : vector<1x2x64xf32> to vector<2x64xf32>
    %312 = arith.mulf %309, %311 : vector<2x64xf32>
    %313 = arith.addf %308, %312 : vector<2x64xf32>
    %314 = vector.extract_strided_slice %177 {offsets = [0, 131], sizes = [2, 64], strides = [1, 1]} : vector<2x219xf32> to vector<2x64xf32>
    %c27 = arith.constant 27 : index
    %c0_165 = arith.constant 0 : index
    %c0_166 = arith.constant 0 : index
    %315 = vector.load %arg16[%c27, %c0_165, %c0_166] : memref<49x2x64xf32, #tpu.memory_space<vmem>>, vector<1x2x64xf32>
    %316 = vector.shape_cast %315 : vector<1x2x64xf32> to vector<2x64xf32>
    %317 = arith.mulf %314, %316 : vector<2x64xf32>
    %318 = arith.addf %313, %317 : vector<2x64xf32>
    %319 = vector.extract_strided_slice %177 {offsets = [0, 133], sizes = [2, 64], strides = [1, 1]} : vector<2x219xf32> to vector<2x64xf32>
    %c28 = arith.constant 28 : index
    %c0_167 = arith.constant 0 : index
    %c0_168 = arith.constant 0 : index
    %320 = vector.load %arg16[%c28, %c0_167, %c0_168] : memref<49x2x64xf32, #tpu.memory_space<vmem>>, vector<1x2x64xf32>
    %321 = vector.shape_cast %320 : vector<1x2x64xf32> to vector<2x64xf32>
    %322 = arith.mulf %319, %321 : vector<2x64xf32>
    %323 = arith.addf %318, %322 : vector<2x64xf32>
    %324 = vector.extract_strided_slice %177 {offsets = [0, 134], sizes = [2, 64], strides = [1, 1]} : vector<2x219xf32> to vector<2x64xf32>
    %c29 = arith.constant 29 : index
    %c0_169 = arith.constant 0 : index
    %c0_170 = arith.constant 0 : index
    %325 = vector.load %arg16[%c29, %c0_169, %c0_170] : memref<49x2x64xf32, #tpu.memory_space<vmem>>, vector<1x2x64xf32>
    %326 = vector.shape_cast %325 : vector<1x2x64xf32> to vector<2x64xf32>
    %327 = arith.mulf %324, %326 : vector<2x64xf32>
    %328 = arith.addf %323, %327 : vector<2x64xf32>
    %329 = vector.extract_strided_slice %177 {offsets = [0, 135], sizes = [2, 64], strides = [1, 1]} : vector<2x219xf32> to vector<2x64xf32>
    %c30 = arith.constant 30 : index
    %c0_171 = arith.constant 0 : index
    %c0_172 = arith.constant 0 : index
    %330 = vector.load %arg16[%c30, %c0_171, %c0_172] : memref<49x2x64xf32, #tpu.memory_space<vmem>>, vector<1x2x64xf32>
    %331 = vector.shape_cast %330 : vector<1x2x64xf32> to vector<2x64xf32>
    %332 = arith.mulf %329, %331 : vector<2x64xf32>
    %333 = arith.addf %328, %332 : vector<2x64xf32>
    %334 = vector.extract_strided_slice %177 {offsets = [0, 136], sizes = [2, 64], strides = [1, 1]} : vector<2x219xf32> to vector<2x64xf32>
    %c31 = arith.constant 31 : index
    %c0_173 = arith.constant 0 : index
    %c0_174 = arith.constant 0 : index
    %335 = vector.load %arg16[%c31, %c0_173, %c0_174] : memref<49x2x64xf32, #tpu.memory_space<vmem>>, vector<1x2x64xf32>
    %336 = vector.shape_cast %335 : vector<1x2x64xf32> to vector<2x64xf32>
    %337 = arith.mulf %334, %336 : vector<2x64xf32>
    %338 = arith.addf %333, %337 : vector<2x64xf32>
    %339 = vector.extract_strided_slice %177 {offsets = [0, 137], sizes = [2, 64], strides = [1, 1]} : vector<2x219xf32> to vector<2x64xf32>
    %c32 = arith.constant 32 : index
    %c0_175 = arith.constant 0 : index
    %c0_176 = arith.constant 0 : index
    %340 = vector.load %arg16[%c32, %c0_175, %c0_176] : memref<49x2x64xf32, #tpu.memory_space<vmem>>, vector<1x2x64xf32>
    %341 = vector.shape_cast %340 : vector<1x2x64xf32> to vector<2x64xf32>
    %342 = arith.mulf %339, %341 : vector<2x64xf32>
    %343 = arith.addf %338, %342 : vector<2x64xf32>
    %344 = vector.extract_strided_slice %177 {offsets = [0, 138], sizes = [2, 64], strides = [1, 1]} : vector<2x219xf32> to vector<2x64xf32>
    %c33 = arith.constant 33 : index
    %c0_177 = arith.constant 0 : index
    %c0_178 = arith.constant 0 : index
    %345 = vector.load %arg16[%c33, %c0_177, %c0_178] : memref<49x2x64xf32, #tpu.memory_space<vmem>>, vector<1x2x64xf32>
    %346 = vector.shape_cast %345 : vector<1x2x64xf32> to vector<2x64xf32>
    %347 = arith.mulf %344, %346 : vector<2x64xf32>
    %348 = arith.addf %343, %347 : vector<2x64xf32>
    %349 = vector.extract_strided_slice %177 {offsets = [0, 139], sizes = [2, 64], strides = [1, 1]} : vector<2x219xf32> to vector<2x64xf32>
    %c34 = arith.constant 34 : index
    %c0_179 = arith.constant 0 : index
    %c0_180 = arith.constant 0 : index
    %350 = vector.load %arg16[%c34, %c0_179, %c0_180] : memref<49x2x64xf32, #tpu.memory_space<vmem>>, vector<1x2x64xf32>
    %351 = vector.shape_cast %350 : vector<1x2x64xf32> to vector<2x64xf32>
    %352 = arith.mulf %349, %351 : vector<2x64xf32>
    %353 = arith.addf %348, %352 : vector<2x64xf32>
    %354 = vector.extract_strided_slice %177 {offsets = [0, 141], sizes = [2, 64], strides = [1, 1]} : vector<2x219xf32> to vector<2x64xf32>
    %c35 = arith.constant 35 : index
    %c0_181 = arith.constant 0 : index
    %c0_182 = arith.constant 0 : index
    %355 = vector.load %arg16[%c35, %c0_181, %c0_182] : memref<49x2x64xf32, #tpu.memory_space<vmem>>, vector<1x2x64xf32>
    %356 = vector.shape_cast %355 : vector<1x2x64xf32> to vector<2x64xf32>
    %357 = arith.mulf %354, %356 : vector<2x64xf32>
    %358 = arith.addf %353, %357 : vector<2x64xf32>
    %359 = vector.extract_strided_slice %177 {offsets = [0, 142], sizes = [2, 64], strides = [1, 1]} : vector<2x219xf32> to vector<2x64xf32>
    %c36 = arith.constant 36 : index
    %c0_183 = arith.constant 0 : index
    %c0_184 = arith.constant 0 : index
    %360 = vector.load %arg16[%c36, %c0_183, %c0_184] : memref<49x2x64xf32, #tpu.memory_space<vmem>>, vector<1x2x64xf32>
    %361 = vector.shape_cast %360 : vector<1x2x64xf32> to vector<2x64xf32>
    %362 = arith.mulf %359, %361 : vector<2x64xf32>
    %363 = arith.addf %358, %362 : vector<2x64xf32>
    %364 = vector.extract_strided_slice %177 {offsets = [0, 143], sizes = [2, 64], strides = [1, 1]} : vector<2x219xf32> to vector<2x64xf32>
    %c37 = arith.constant 37 : index
    %c0_185 = arith.constant 0 : index
    %c0_186 = arith.constant 0 : index
    %365 = vector.load %arg16[%c37, %c0_185, %c0_186] : memref<49x2x64xf32, #tpu.memory_space<vmem>>, vector<1x2x64xf32>
    %366 = vector.shape_cast %365 : vector<1x2x64xf32> to vector<2x64xf32>
    %367 = arith.mulf %364, %366 : vector<2x64xf32>
    %368 = arith.addf %363, %367 : vector<2x64xf32>
    %369 = vector.extract_strided_slice %177 {offsets = [0, 144], sizes = [2, 64], strides = [1, 1]} : vector<2x219xf32> to vector<2x64xf32>
    %c38 = arith.constant 38 : index
    %c0_187 = arith.constant 0 : index
    %c0_188 = arith.constant 0 : index
    %370 = vector.load %arg16[%c38, %c0_187, %c0_188] : memref<49x2x64xf32, #tpu.memory_space<vmem>>, vector<1x2x64xf32>
    %371 = vector.shape_cast %370 : vector<1x2x64xf32> to vector<2x64xf32>
    %372 = arith.mulf %369, %371 : vector<2x64xf32>
    %373 = arith.addf %368, %372 : vector<2x64xf32>
    %374 = vector.extract_strided_slice %177 {offsets = [0, 145], sizes = [2, 64], strides = [1, 1]} : vector<2x219xf32> to vector<2x64xf32>
    %c39 = arith.constant 39 : index
    %c0_189 = arith.constant 0 : index
    %c0_190 = arith.constant 0 : index
    %375 = vector.load %arg16[%c39, %c0_189, %c0_190] : memref<49x2x64xf32, #tpu.memory_space<vmem>>, vector<1x2x64xf32>
    %376 = vector.shape_cast %375 : vector<1x2x64xf32> to vector<2x64xf32>
    %377 = arith.mulf %374, %376 : vector<2x64xf32>
    %378 = arith.addf %373, %377 : vector<2x64xf32>
    %379 = vector.extract_strided_slice %177 {offsets = [0, 146], sizes = [2, 64], strides = [1, 1]} : vector<2x219xf32> to vector<2x64xf32>
    %c40 = arith.constant 40 : index
    %c0_191 = arith.constant 0 : index
    %c0_192 = arith.constant 0 : index
    %380 = vector.load %arg16[%c40, %c0_191, %c0_192] : memref<49x2x64xf32, #tpu.memory_space<vmem>>, vector<1x2x64xf32>
    %381 = vector.shape_cast %380 : vector<1x2x64xf32> to vector<2x64xf32>
    %382 = arith.mulf %379, %381 : vector<2x64xf32>
    %383 = arith.addf %378, %382 : vector<2x64xf32>
    %384 = vector.extract_strided_slice %177 {offsets = [0, 147], sizes = [2, 64], strides = [1, 1]} : vector<2x219xf32> to vector<2x64xf32>
    %c41 = arith.constant 41 : index
    %c0_193 = arith.constant 0 : index
    %c0_194 = arith.constant 0 : index
    %385 = vector.load %arg16[%c41, %c0_193, %c0_194] : memref<49x2x64xf32, #tpu.memory_space<vmem>>, vector<1x2x64xf32>
    %386 = vector.shape_cast %385 : vector<1x2x64xf32> to vector<2x64xf32>
    %387 = arith.mulf %384, %386 : vector<2x64xf32>
    %388 = arith.addf %383, %387 : vector<2x64xf32>
    %389 = vector.extract_strided_slice %177 {offsets = [0, 149], sizes = [2, 64], strides = [1, 1]} : vector<2x219xf32> to vector<2x64xf32>
    %c42 = arith.constant 42 : index
    %c0_195 = arith.constant 0 : index
    %c0_196 = arith.constant 0 : index
    %390 = vector.load %arg16[%c42, %c0_195, %c0_196] : memref<49x2x64xf32, #tpu.memory_space<vmem>>, vector<1x2x64xf32>
    %391 = vector.shape_cast %390 : vector<1x2x64xf32> to vector<2x64xf32>
    %392 = arith.mulf %389, %391 : vector<2x64xf32>
    %393 = arith.addf %388, %392 : vector<2x64xf32>
    %394 = vector.extract_strided_slice %177 {offsets = [0, 150], sizes = [2, 64], strides = [1, 1]} : vector<2x219xf32> to vector<2x64xf32>
    %c43 = arith.constant 43 : index
    %c0_197 = arith.constant 0 : index
    %c0_198 = arith.constant 0 : index
    %395 = vector.load %arg16[%c43, %c0_197, %c0_198] : memref<49x2x64xf32, #tpu.memory_space<vmem>>, vector<1x2x64xf32>
    %396 = vector.shape_cast %395 : vector<1x2x64xf32> to vector<2x64xf32>
    %397 = arith.mulf %394, %396 : vector<2x64xf32>
    %398 = arith.addf %393, %397 : vector<2x64xf32>
    %399 = vector.extract_strided_slice %177 {offsets = [0, 151], sizes = [2, 64], strides = [1, 1]} : vector<2x219xf32> to vector<2x64xf32>
    %c44 = arith.constant 44 : index
    %c0_199 = arith.constant 0 : index
    %c0_200 = arith.constant 0 : index
    %400 = vector.load %arg16[%c44, %c0_199, %c0_200] : memref<49x2x64xf32, #tpu.memory_space<vmem>>, vector<1x2x64xf32>
    %401 = vector.shape_cast %400 : vector<1x2x64xf32> to vector<2x64xf32>
    %402 = arith.mulf %399, %401 : vector<2x64xf32>
    %403 = arith.addf %398, %402 : vector<2x64xf32>
    %404 = vector.extract_strided_slice %177 {offsets = [0, 152], sizes = [2, 64], strides = [1, 1]} : vector<2x219xf32> to vector<2x64xf32>
    %c45 = arith.constant 45 : index
    %c0_201 = arith.constant 0 : index
    %c0_202 = arith.constant 0 : index
    %405 = vector.load %arg16[%c45, %c0_201, %c0_202] : memref<49x2x64xf32, #tpu.memory_space<vmem>>, vector<1x2x64xf32>
    %406 = vector.shape_cast %405 : vector<1x2x64xf32> to vector<2x64xf32>
    %407 = arith.mulf %404, %406 : vector<2x64xf32>
    %408 = arith.addf %403, %407 : vector<2x64xf32>
    %409 = vector.extract_strided_slice %177 {offsets = [0, 153], sizes = [2, 64], strides = [1, 1]} : vector<2x219xf32> to vector<2x64xf32>
    %c46 = arith.constant 46 : index
    %c0_203 = arith.constant 0 : index
    %c0_204 = arith.constant 0 : index
    %410 = vector.load %arg16[%c46, %c0_203, %c0_204] : memref<49x2x64xf32, #tpu.memory_space<vmem>>, vector<1x2x64xf32>
    %411 = vector.shape_cast %410 : vector<1x2x64xf32> to vector<2x64xf32>
    %412 = arith.mulf %409, %411 : vector<2x64xf32>
    %413 = arith.addf %408, %412 : vector<2x64xf32>
    %414 = vector.extract_strided_slice %177 {offsets = [0, 154], sizes = [2, 64], strides = [1, 1]} : vector<2x219xf32> to vector<2x64xf32>
    %c47 = arith.constant 47 : index
    %c0_205 = arith.constant 0 : index
    %c0_206 = arith.constant 0 : index
    %415 = vector.load %arg16[%c47, %c0_205, %c0_206] : memref<49x2x64xf32, #tpu.memory_space<vmem>>, vector<1x2x64xf32>
    %416 = vector.shape_cast %415 : vector<1x2x64xf32> to vector<2x64xf32>
    %417 = arith.mulf %414, %416 : vector<2x64xf32>
    %418 = arith.addf %413, %417 : vector<2x64xf32>
    %419 = vector.extract_strided_slice %177 {offsets = [0, 155], sizes = [2, 64], strides = [1, 1]} : vector<2x219xf32> to vector<2x64xf32>
    %c48 = arith.constant 48 : index
    %c0_207 = arith.constant 0 : index
    %c0_208 = arith.constant 0 : index
    %420 = vector.load %arg16[%c48, %c0_207, %c0_208] : memref<49x2x64xf32, #tpu.memory_space<vmem>>, vector<1x2x64xf32>
    %421 = vector.shape_cast %420 : vector<1x2x64xf32> to vector<2x64xf32>
    %422 = arith.mulf %419, %421 : vector<2x64xf32>
    %423 = arith.addf %418, %422 : vector<2x64xf32>
    %424 = vector.extract_strided_slice %423 {offsets = [0, 0], sizes = [1, 64], strides = [1, 1]} : vector<2x64xf32> to vector<1x64xf32>
    %425 = vector.extract_strided_slice %423 {offsets = [1, 0], sizes = [1, 64], strides = [1, 1]} : vector<2x64xf32> to vector<1x64xf32>
    %426 = arith.addf %424, %425 : vector<1x64xf32>
    %427 = arith.negf %426 : vector<1x64xf32>
    %428 = math.exp %427 : vector<1x64xf32>
    %cst_209 = arith.constant 1.000000e+00 : f32
    %429 = vector.broadcast %cst_209 : f32 to vector<1x64xf32>
    %430 = arith.addf %429, %428 : vector<1x64xf32>
    %431 = arith.divf %429, %430 : vector<1x64xf32>
    %432 = vector.broadcast %431 : vector<1x64xf32> to vector<8x64xf32>
    %433 = arith.mulf %166, %432 : vector<8x64xf32>
    %434 = vector.extract_strided_slice %1 {offsets = [0, 19], sizes = [4, 324], strides = [1, 1]} : vector<4x362xf32> to vector<4x324xf32>
    %c0_210 = arith.constant 0 : index
    %c0_211 = arith.constant 0 : index
    %435 = vector.load %arg3[%c0_210, %c0_211] : memref<8x4xf32, #tpu.memory_space<vmem>>, vector<8x4xf32>
    %cst_212 = arith.constant dense<0.000000e+00> : vector<8x324xf32>
    %436 = tpu.matmul %435, %434, %cst_212 {dimension_numbers = #tpu.dot_dimension_numbers<[1], [0], [0], [1], [0, 0, 1, 1], [], []>, precision = #tpu.contract_precision<fp32>} : vector<8x4xf32>, vector<4x324xf32>, vector<8x324xf32> -> vector<8x324xf32>
    %c0_213 = arith.constant 0 : index
    %c0_214 = arith.constant 0 : index
    %437 = vector.load %arg4[%c0_213, %c0_214] : memref<8x1xf32, #tpu.memory_space<vmem>>, vector<8x1xf32>
    %438 = vector.broadcast %437 : vector<8x1xf32> to vector<8x324xf32>
    %439 = arith.addf %436, %438 : vector<8x324xf32>
    %cst_215 = arith.constant 0.000000e+00 : f32
    %440 = vector.broadcast %cst_215 : f32 to vector<8x324xf32>
    %441 = arith.maximumf %439, %440 : vector<8x324xf32>
    %442 = vector.extract_strided_slice %441 {offsets = [0, 19], sizes = [8, 286], strides = [1, 1]} : vector<8x324xf32> to vector<8x286xf32>
    %443 = vector.extract_strided_slice %441 {offsets = [0, 20], sizes = [8, 286], strides = [1, 1]} : vector<8x324xf32> to vector<8x286xf32>
    %444 = arith.maximumf %442, %443 : vector<8x286xf32>
    %445 = vector.extract_strided_slice %441 {offsets = [0, 37], sizes = [8, 286], strides = [1, 1]} : vector<8x324xf32> to vector<8x286xf32>
    %446 = vector.extract_strided_slice %441 {offsets = [0, 38], sizes = [8, 286], strides = [1, 1]} : vector<8x324xf32> to vector<8x286xf32>
    %447 = arith.maximumf %445, %446 : vector<8x286xf32>
    %448 = arith.maximumf %444, %447 : vector<8x286xf32>
    %c0_216 = arith.constant 0 : index
    %c0_217 = arith.constant 0 : index
    %449 = vector.load %arg13[%c0_216, %c0_217] : memref<286x64xf32, #tpu.memory_space<vmem>>, vector<286x64xf32>
    %cst_218 = arith.constant dense<0.000000e+00> : vector<8x64xf32>
    %450 = tpu.matmul %448, %449, %cst_218 {dimension_numbers = #tpu.dot_dimension_numbers<[1], [0], [0], [1], [0, 0, 1, 1], [], []>, precision = #tpu.contract_precision<fp32>} : vector<8x286xf32>, vector<286x64xf32>, vector<8x64xf32> -> vector<8x64xf32>
    %451 = arith.addf %433, %450 : vector<8x64xf32>
    %c0_219 = arith.constant 0 : index
    %c0_220 = arith.constant 0 : index
    %c0_221 = arith.constant 0 : index
    %452 = vector.load %arg17[%c0_219, %c0_220, %c0_221] : memref<1x8x64xf32, #tpu.memory_space<vmem>>, vector<1x8x64xf32>
    %453 = vector.shape_cast %452 : vector<1x8x64xf32> to vector<8x64xf32>
    %454 = vector.shape_cast %451 : vector<8x64xf32> to vector<1x8x64xf32>
    tpu.vector_store %arg17[%c0_219, %c0_220, %c0_221], %454 {strides = array<i32>} : memref<1x8x64xf32, #tpu.memory_space<vmem>>, vector<1x8x64xf32>,
    return
  }
  func.func @transform_0(%arg0: i32) -> (i32, i32, i32) {
    %c0_i32 = arith.constant 0 : i32
    %c0_i32_0 = arith.constant 0 : i32
    %c0_i32_1 = arith.constant 0 : i32
    return %arg0, %c0_i32, %c0_i32_0 : i32, i32, i32
  }
  func.func @transform_1(%arg0: i32) -> (i32, i32) {
    %c0_i32 = arith.constant 0 : i32
    %c0_i32_0 = arith.constant 0 : i32
    %c0_i32_1 = arith.constant 0 : i32
    return %c0_i32, %c0_i32_0 : i32, i32
  }
  func.func @transform_2(%arg0: i32) -> (i32, i32) {
    %c0_i32 = arith.constant 0 : i32
    %c0_i32_0 = arith.constant 0 : i32
    %c0_i32_1 = arith.constant 0 : i32
    return %c0_i32, %c0_i32_0 : i32, i32
  }
  func.func @transform_3(%arg0: i32) -> (i32, i32) {
    %c0_i32 = arith.constant 0 : i32
    %c0_i32_0 = arith.constant 0 : i32
    %c0_i32_1 = arith.constant 0 : i32
    return %c0_i32, %c0_i32_0 : i32, i32
  }
  func.func @transform_4(%arg0: i32) -> (i32, i32, i32) {
    %c0_i32 = arith.constant 0 : i32
    %c0_i32_0 = arith.constant 0 : i32
    %c0_i32_1 = arith.constant 0 : i32
    %c0_i32_2 = arith.constant 0 : i32
    return %c0_i32, %c0_i32_0, %c0_i32_1 : i32, i32, i32
  }
  func.func @transform_5(%arg0: i32) -> (i32, i32) {
    %c0_i32 = arith.constant 0 : i32
    %c0_i32_0 = arith.constant 0 : i32
    %c0_i32_1 = arith.constant 0 : i32
    return %c0_i32, %c0_i32_0 : i32, i32
  }
  func.func @transform_6(%arg0: i32) -> (i32, i32) {
    %c0_i32 = arith.constant 0 : i32
    %c0_i32_0 = arith.constant 0 : i32
    %c0_i32_1 = arith.constant 0 : i32
    return %c0_i32, %c0_i32_0 : i32, i32
  }
  func.func @transform_7(%arg0: i32) -> (i32, i32) {
    %c0_i32 = arith.constant 0 : i32
    %c0_i32_0 = arith.constant 0 : i32
    %c0_i32_1 = arith.constant 0 : i32
    return %c0_i32, %c0_i32_0 : i32, i32
  }
  func.func @transform_8(%arg0: i32) -> (i32, i32, i32) {
    %c0_i32 = arith.constant 0 : i32
    %c0_i32_0 = arith.constant 0 : i32
    %c0_i32_1 = arith.constant 0 : i32
    %c0_i32_2 = arith.constant 0 : i32
    return %c0_i32, %c0_i32_0, %c0_i32_1 : i32, i32, i32
  }
  func.func @transform_9(%arg0: i32) -> (i32, i32) {
    %c0_i32 = arith.constant 0 : i32
    %c0_i32_0 = arith.constant 0 : i32
    %c0_i32_1 = arith.constant 0 : i32
    return %c0_i32, %c0_i32_0 : i32, i32
  }
  func.func @transform_10(%arg0: i32) -> (i32, i32) {
    %c0_i32 = arith.constant 0 : i32
    %c0_i32_0 = arith.constant 0 : i32
    %c0_i32_1 = arith.constant 0 : i32
    return %c0_i32, %c0_i32_0 : i32, i32
  }
  func.func @transform_11(%arg0: i32) -> (i32, i32) {
    %c0_i32 = arith.constant 0 : i32
    %c0_i32_0 = arith.constant 0 : i32
    %c0_i32_1 = arith.constant 0 : i32
    return %c0_i32, %c0_i32_0 : i32, i32
  }
  func.func @transform_12(%arg0: i32) -> (i32, i32) {
    %c0_i32 = arith.constant 0 : i32
    %c0_i32_0 = arith.constant 0 : i32
    %c0_i32_1 = arith.constant 0 : i32
    return %c0_i32, %c0_i32_0 : i32, i32
  }
  func.func @transform_13(%arg0: i32) -> (i32, i32) {
    %c0_i32 = arith.constant 0 : i32
    %c0_i32_0 = arith.constant 0 : i32
    %c0_i32_1 = arith.constant 0 : i32
    return %c0_i32, %c0_i32_0 : i32, i32
  }
  func.func @transform_14(%arg0: i32) -> (i32, i32) {
    %c0_i32 = arith.constant 0 : i32
    %c0_i32_0 = arith.constant 0 : i32
    %c0_i32_1 = arith.constant 0 : i32
    return %c0_i32, %c0_i32_0 : i32, i32
  }
  func.func @transform_15(%arg0: i32) -> (i32, i32, i32) {
    %c0_i32 = arith.constant 0 : i32
    %c0_i32_0 = arith.constant 0 : i32
    %c0_i32_1 = arith.constant 0 : i32
    %c0_i32_2 = arith.constant 0 : i32
    return %c0_i32, %c0_i32_0, %c0_i32_1 : i32, i32, i32
  }
  func.func @transform_16(%arg0: i32) -> (i32, i32, i32) {
    %c0_i32 = arith.constant 0 : i32
    %c0_i32_0 = arith.constant 0 : i32
    %c0_i32_1 = arith.constant 0 : i32
    return %arg0, %c0_i32, %c0_i32_0 : i32, i32, i32
  }
}

</mosaic_0001>

<bundles_post_ra>
// kernel: block_forward.1
= control target key start
LH: loop header
LB: loop body
LE: loop exit
PB: predicated region body
PF: predicated region fallthrough
CT: control target
= control target key end

     0   :  { %s5769_s21 = smov 0   ;;  %s8062_s0 = inlined_call_operand.vmem [shape: f32[2,4,362], index: 0, kind: input, shape index: {}]   ;;  %s8063_s1 = inlined_call_operand.vmem [shape: f32[1,324], index: 1, kind: input, shape index: {}]   ;;  %s8064_s2 = inlined_call_operand.vmem [shape: f32[8,4], index: 2, kind: input, shape index: {}]   ;;  %s8065_s3 = inlined_call_operand.vmem [shape: f32[8,1], index: 3, kind: input, shape index: {}]   ;;  %s8066_s4 = inlined_call_operand.vmem [shape: f32[9,4,1], index: 4, kind: input, shape index: {}]   ;;  %s8067_s5 = inlined_call_operand.vmem [shape: f32[4,1], index: 5, kind: input, shape index: {}]   ;;  %s8068_s6 = inlined_call_operand.vmem [shape: f32[8,4], index: 6, kind: input, shape index: {}]   ;;  %s8069_s7 = inlined_call_operand.vmem [shape: f32[8,1], index: 7, kind: input, shape index: {}]   ;;  %s8070_s8 = inlined_call_operand.vmem [shape: f32[9,8,1], index: 8, kind: input, shape index: {}]   ;;  %s8071_s9 = inlined_call_operand.vmem [shape: f32[8,1], index: 9, kind: input, shape index: {}]   ;;  %s8072_s10 = inlined_call_operand.vmem [shape: f32[8,8], index: 10, kind: input, shape index: {}]   ;;  %s8073_s11 = inlined_call_operand.vmem [shape: f32[8,1], index: 11, kind: input, shape index: {}]   ;;  %s8074_s12 = inlined_call_operand.vmem [shape: f32[286,64], index: 12, kind: input, shape index: {}]   ;;  %s8075_s13 = inlined_call_operand.vmem [shape: f32[2,8], index: 13, kind: input, shape index: {}]   ;;  %s8076_s14 = inlined_call_operand.vmem [shape: f32[8,2], index: 14, kind: input, shape index: {}]   ;;  %s8077_s15 = inlined_call_operand.vmem [shape: f32[49,2,64], index: 15, kind: input, shape index: {}]   ;;  %s8078_s16 = inlined_call_operand.vmem [shape: f32[2,8,64], index: 16, kind: output, shape index: {}]  }
   0x1   :  { %8177 = sst [smem:[#allocation7_spill]] %s8062_s0 }
   0x2   :  { %8178 = sst [smem:[#allocation8_spill]] %s8063_s1 }
   0x3 LB: > { %s5504_s22 = sadd.s32 4294967295, %s5646_s21   ;;  %p5508_p0 = scmp.ge.s32.totalorder %s5646_s21, 1  ;;  %s5646_s21 = sphi %s5769_s21, %s26_s21  }
   0x4   : > { %p462_p1 = scmp.lt.s32.totalorder %s5646_s21, 3 }
   0x6   : > { %p463_p2 = pnand %p5508_p0, %p462_p1 }
   0x8   : > { %466 = sbr.rel (%p463_p2) target bundleno = 2147 (0x863), region = 84 }
   0xd   : > { %v5513_v0 = vld [vmem:[%s8066_s4 + $0xc] sm:$0xf]  ;;  %v5511_v1 = vld [vmem:[%s8066_s4 + $0x4] sm:$0xf]  ;;  %v5648_v2 = vmov 0   ;;  %p511_p3 = scmp.lt.s32.totalorder %s5504_s22, 1 }
   0xe   : > { %5626 = vset.pattern.permute.xlu1 %v5648_v2  ;;  %5625 = vset.pattern.permute.xlu0 %v5648_v2  ;;  %v5515_v3 = vld [vmem:[%s8066_s4 + $0x14] sm:$0xf]  ;;  %v5514_v4 = vld [vmem:[%s8066_s4 + $0x10] sm:$0xf]  ;;  %v5512_v5 = vld [vmem:[%s8066_s4 + $0x8] sm:$0xf] }
   0xf   : > { %597 = vperm.xlu1 %5626, %v5513_v0   ;;  %540 = vperm.xlu0 %5625, %v5511_v1   ;;  %v5516_v6 = vld [vmem:[%s8066_s4 + $0x18] sm:$0xf]  ;;  %v5518_v7 = vld [vmem:[%s8066_s4 + $0x20] sm:$0xf]  ;;  %v5517_v8 = vld [vmem:[%s8066_s4 + $0x1c] sm:$0xf] }
  0x10   : > { %5627 = vset.pattern.permute.xlu2 %v5648_v2  ;;  %v522_v9 = vld [vmem:[%s8066_s4] sm:$0xf]  ;;  %s8270_s22 = smov (!%p511_p3, %s5504_s22), 1  ;;  %v5649_v10 = vmov 839922192   ;;  %s8179_s0 = sld [smem:[#allocation7_spill]] }
  0x11   : > { %653 = vperm.xlu2 %5627, %v5515_v3   ;;  %v528_v11 = vunpack.c.l.s4 %v5649_v10  ;;  %s5580_s28 = smul.u32 12, %s8270_s22  ;;  %s8089_s18 = smov 127   ;;  %v761_v45 = vld [vmem:[%s8067_s5] sm:$0xf]  ;;  %v5520_v48 = vld [vmem:[%s8070_s8 + $0x10] sm:$0xff]  ;;  %v5519_v50 = vld [vmem:[%s8070_s8 + $0x8] sm:$0xff] }
  0x12   : > { %s8135_s19 = smov 110   ;;  %s8110_s20 = smov 126   ;;  %v776_v49 = vld [vmem:[%s8069_s7] sm:$0xff]  ;;  %v5523_v51 = vld [vmem:[%s8070_s8 + $0x28] sm:$0xff]  ;;  %v5521_v52 = vld [vmem:[%s8070_s8 + $0x18] sm:$0xff]  ;;  %vm557_vm0 = vcmask 1043456  }
  0x13   : > { %v5807_v12 = vunpack.c.0.s8 %v528_v11  ;;  %s8081_s23 = smov 109   ;;  %s8087_s24 = smov 92   ;;  %v5522_v53 = vld [vmem:[%s8070_s8 + $0x20] sm:$0xff]  ;;  %v5524_v55 = vld [vmem:[%s8070_s8 + $0x30] sm:$0xff]  ;;  %v5525_v56 = vld [vmem:[%s8070_s8 + $0x38] sm:$0xff]  ;;  %vm559_vm1 = vcmask 1039360  }
  0x14   : > { %s8083_s25 = smov 108   ;;  %s8079_s26 = smov 91   ;;  %v5526_v54 = vld [vmem:[%s8070_s8 + $0x40] sm:$0xff]  ;;  %vm587_vm2 = vcmask 1031168   ;;  %vm615_vm3 = vcmask 900096   ;;  %vm643_vm4 = vcmask 891904  }
  0x15   : > { %s8085_s29 = smov 90   ;;  %v1252_v57 = vld [vmem:[%s8070_s8] sm:$0xff]  ;;  %vm8148_vm5 = vcmask 883712   ;;  %vm699_vm6 = vcmask 752640   ;;  %vm727_vm7 = vcmask 744448   ;;  %vm790_vm8 = vcmask 31744  }
  0x16   : > { %s515_s17 = scalar_lea.vmem %s8179_s0, %s5580_s28  ;;  %vm755_vm9 = vcmask 736256   ;;  %s8180_s1 = sld [smem:[#allocation8_spill]]  ;;  %vm8144_vm10 = vcmask 1045504   ;;  %vm8141_vm11 = vcmask 244736   ;;  %vm2410_vm12 = vcmask 64512  }
  0x17   : > { %625 = vperm.xlu1 %5626, %v5514_v4   ;;  %569 = vperm.xlu0 %5625, %v5512_v5   ;;  %v5812_v13 = vld [vmem:[%s515_s17] sm:$0xff]  ;;  %v5814_v14 = vld [vmem:[%s515_s17 + $0x8] sm:$0xf]  ;;  %s8181_s27 = smov 92   ;;  %s8182_s28 = smov 108   ;;  %vm8140_vm13 = vcmask 523264  }
  0x18   : > { %vm2879_vm15 = vcmask 1041408   ;;  %s8105_s30 = smov 105   ;;  %s8118_s17 = smov 106  }
  0x19   : > { %681 = vperm.xlu2 %5627, %v5516_v6   ;;  %s5673_s0 = smov 121  }
  0x1f   : > { %737 = vperm.xlu1 %5626, %v5518_v7   ;;  %709 = vperm.xlu0 %5625, %v5517_v8  }
  0x21   : > { %525 = vperm.xlu2 %5627, %v522_v9  }
  0x6b   : > { %v654_v26 = vpop.permute.xlu2 %653 }
  0x6c   : > { %v658_v33 = vperm.slane %v654_v26, %v5807_v12 }
  0x6e   : > { %v660_v35 = vmul.f32 %v658_v33, %v5812_v13  ;;  %v661_v37 = vmul.f32 %v658_v33, %v5814_v14 }
  0x73   : > { %v682_v32 = vpop.permute.xlu2 %681 }
  0x74   : > { %v686_v34 = vperm.slane %v682_v32, %v5807_v12 }
  0x76   : > { %v688_v36 = vmul.f32 %v686_v34, %v5812_v13  ;;  %v689_v40 = vmul.f32 %v686_v34, %v5814_v14 }
  0x7b   : > { %v526_v58 = vpop.permute.xlu2 %525 }
  0x7c   : > { %v530_v5 = vperm.slane %v526_v58, %v5807_v12 }
  0x7e   : > { %v533_v10 = vmul.f32 %v530_v5, %v5814_v14 }
  0x81   : > { %v541_v15 = vpop.permute.xlu0 %540  ;;  %v598_v17 = vpop.permute.xlu1 %597 }
  0x82   : > { %v545_v16 = vperm.slane %v541_v15, %v5807_v12  ;;  %v602_v20 = vperm.slane %v598_v17, %v5807_v12 }
  0x84   : > { %v547_v18 = vmul.f32 %v545_v16, %v5812_v13  ;;  %v548_v19 = vmul.f32 %v545_v16, %v5814_v14  ;;  %v604_v22 = vmul.f32 %v602_v20, %v5812_v13  ;;  %v605_v29 = vmul.f32 %v602_v20, %v5814_v14 }
  0x86   : > { %553 = vrot.lane.b32.xlu1 %v548_v19, %s8089_s18  ;;  %551 = vrot.lane.b32.xlu0 %v547_v18, %s8089_s18  ;;  %v532_v18 = vmul.f32 %v530_v5, %v5812_v13 }
  0x89   : > { %v570_v21 = vpop.permute.xlu0 %569  ;;  %v626_v27 = vpop.permute.xlu1 %625 }
  0x8a   : > { %v574_v23 = vperm.slane %v570_v21, %v5807_v12  ;;  %v630_v28 = vperm.slane %v626_v27, %v5807_v12 }
  0x8c   : > { %v576_v24 = vmul.f32 %v574_v23, %v5812_v13  ;;  %v577_v25 = vmul.f32 %v574_v23, %v5814_v14  ;;  %v633_v30 = vmul.f32 %v630_v28, %v5814_v14  ;;  %v632_v31 = vmul.f32 %v630_v28, %v5812_v13 }
  0x8e   : > { %608 = vrot.lane.b32.xlu1 %v604_v22, %s8135_s19  ;;  %580 = vrot.lane.b32.xlu2 %v576_v24, %s8110_s20 }
  0x8f   : > { %582 = vrot.lane.b32.xlu0 %v577_v25, %s8110_s20 }
  0x91   : > { %v710_v38 = vpop.permute.xlu0 %709  ;;  %v738_v42 = vpop.permute.xlu1 %737 }
  0x92   : > { %v714_v39 = vperm.slane %v710_v38, %v5807_v12  ;;  %v742_v44 = vperm.slane %v738_v42, %v5807_v12 }
  0x94   : > { %v717_v41 = vmul.f32 %v714_v39, %v5814_v14  ;;  %v716_v43 = vmul.f32 %v714_v39, %v5812_v13  ;;  %v744_v46 = vmul.f32 %v742_v44, %v5812_v13  ;;  %v745_v47 = vmul.f32 %v742_v44, %v5814_v14 }
  0x96   : > { %638 = vrot.lane.b32.xlu1 %v633_v30, %s8081_s23  ;;  %610 = vrot.lane.b32.xlu2 %v605_v29, %s8135_s19 }
  0x97   : > { %636 = vrot.lane.b32.xlu0 %v632_v31, %s8081_s23  ;;  %s8183_s23 = smov 109  }
  0x9e   : > { %692 = vrot.lane.b32.xlu1 %v688_v36, %s8087_s24  ;;  %664 = vrot.lane.b32.xlu2 %v660_v35, %s8083_s25 }
  0x9f   : > { %666 = vrot.lane.b32.xlu0 %v661_v37, %s8083_s25  ;;  %s8184_s25 = smov 91  }
  0xa6   : > { %722 = vrot.lane.b32.xlu1 %v717_v41, %s8079_s26  ;;  %694 = vrot.lane.b32.xlu2 %v689_v40, %s8087_s24  ;;  %s8185_s24 = smov 90  }
  0xa7   : > { %720 = vrot.lane.b32.xlu0 %v716_v43, %s8079_s26  ;;  %s8108_s26 = smov 103  }
  0xae   : > { %764 = vperm.xlu1 %5626, %v761_v45   ;;  %748 = vrot.lane.b32.xlu2 %v744_v46, %s8085_s29 }
  0xaf   : > { %750 = vrot.lane.b32.xlu0 %v745_v47, %s8085_s29  ;;  %s8112_s29 = smov 104  }
  0xb6   : > { %1295 = vperm.xlu1 %5626, %v5520_v48   ;;  %779 = vperm.xlu2 %5627, %v776_v49  }
  0xb7   : > { %1268 = vperm.xlu0 %5625, %v5519_v50  }
  0xbe   : > { %1376 = vperm.xlu1 %5626, %v5523_v51   ;;  %1322 = vperm.xlu2 %5627, %v5521_v52   ;;  %v775_v52 = vld [vmem:[%s8068_s6] sm:$0xff] }
  0xbf   : > { %1349 = vperm.xlu0 %5625, %v5522_v53  }
  0xc6   : > { %1457 = vperm.xlu1 %5626, %v5526_v54   ;;  %1403 = vperm.xlu2 %5627, %v5524_v55  }
  0xc7   : > { %1430 = vperm.xlu0 %5625, %v5525_v56  }
  0xce   : > { %1255 = vperm.xlu2 %5627, %v1252_v57  }
  0xe8   : > { %v581_v59 = vpop.permute.xlu2 %580 }
  0xe9   : > { %v584_v8 = vrot.slane %v581_v59, 4 }
  0xf0   : > { %v611_v63 = vpop.permute.xlu2 %610 }
  0xf1   : > { %v613_v25 = vrot.slane %v611_v63, 4 }
  0xf8   : > { %v554_v60 = vpop.permute.xlu1 %553  ;;  %v552_v61 = vpop.permute.xlu0 %551 }
  0xf9   : > { %v556_v2 = vrot.slane %v554_v60, 4  ;;  %v555_v3 = vrot.slane %v552_v61, 4  ;;  %v665_v6 = vpop.permute.xlu2 %664  ;;  %v564_v15 = vadd.f32 %v554_v60, %v533_v10  ;;  %v792_v60 = vsel %vm790_vm8, %v775_v52, 0 }
  0xfa   : > { %v668_v31 = vrot.slane %v665_v6, 4 }
  0xfb   : > { %v558_v9 = vsel %vm557_vm0, %v555_v3, %v556_v2 }
  0xfc   : > { %v560_v16 = vsel %vm559_vm1, %v552_v61, %v558_v9 }
  0xfd   : > { %v563_v26 = vadd.f32 %v560_v16, %v532_v18 }
 0x100   : > { %v609_v62 = vpop.permute.xlu1 %608 }
 0x101   : > { %v583_v0 = vpop.permute.xlu0 %582  ;;  %v612_v19 = vrot.slane %v609_v62, 4  ;;  %v695_v29 = vpop.permute.xlu2 %694 }
 0x102   : > { %v585_v7 = vrot.slane %v583_v0, 4  ;;  %v592_v21 = vadd.f32 %v583_v0, %v564_v15  ;;  %v697_v46 = vrot.slane %v695_v29, 4 }
 0x103   : > { %v614_v28 = vsel %vm557_vm0, %v612_v19, %v613_v25 }
 0x104   : > { %v586_v11 = vsel %vm557_vm0, %v584_v8, %v585_v7  ;;  %v620_v32 = vadd.f32 %v611_v63, %v592_v21  ;;  %v616_v34 = vsel %vm615_vm3, %v609_v62, %v614_v28 }
 0x105   : > { %v588_v23 = vsel %vm587_vm2, %v581_v59, %v586_v11 }
 0x106   : > { %v591_v30 = vadd.f32 %v588_v23, %v563_v26 }
 0x108   : > { %v639_v1 = vpop.permute.xlu1 %638  ;;  %v619_v38 = vadd.f32 %v616_v34, %v591_v30 }
 0x109   : > { %v637_v4 = vpop.permute.xlu0 %636  ;;  %v641_v22 = vrot.slane %v639_v1, 4  ;;  %v648_v35 = vadd.f32 %v639_v1, %v620_v32  ;;  %v749_v53 = vpop.permute.xlu2 %748 }
 0x10a   : > { %v640_v24 = vrot.slane %v637_v4, 4  ;;  %v752_v61 = vrot.slane %v749_v53, 4 }
 0x10c   : > { %v642_v33 = vsel %vm557_vm0, %v640_v24, %v641_v22 }
 0x10d   : > { %v644_v39 = vsel %vm643_vm4, %v637_v4, %v642_v33  ;;  %v5912_v4 = vand.u32 4294901760, %v792_v60 }
 0x10e   : > { %v647_v47 = vadd.f32 %v644_v39, %v619_v38 }
 0x110   : > { %v693_v17 = vpop.permute.xlu1 %692 }
 0x111   : > { %v667_v20 = vpop.permute.xlu0 %666  ;;  %v696_v41 = vrot.slane %v693_v17, 4 }
 0x112   : > { %v669_v27 = vrot.slane %v667_v20, 4  ;;  %v676_v42 = vadd.f32 %v667_v20, %v648_v35 }
 0x113   : > { %v698_v48 = vsel %vm557_vm0, %v696_v41, %v697_v46 }
 0x114   : > { %v670_v36 = vsel %vm557_vm0, %v668_v31, %v669_v27  ;;  %v704_v49 = vadd.f32 %v695_v29, %v676_v42  ;;  %v700_v56 = vsel %vm699_vm6, %v693_v17, %v698_v48 }
 0x115   : > { %v672_v45 = vsel %vm8148_vm5, %v665_v6, %v670_v36  ;;  %v780_v36 = vpop.permute.xlu2 %779 }
 0x116   : > { %v675_v50 = vadd.f32 %v672_v45, %v647_v47  ;;  %v1241_v45 = vld [vmem:[%s8180_s1] sm:$0x7]  ;;  %s5681_s1 = smov 124  }
 0x118   : > { %v723_v37 = vpop.permute.xlu1 %722  ;;  %v703_v62 = vadd.f32 %v700_v56, %v675_v50  ;;  %v1243_v50 = vperm.slane %v1241_v45, 0 }
 0x119   : > { %v721_v40 = vpop.permute.xlu0 %720  ;;  %v725_v43 = vrot.slane %v723_v37, 4  ;;  %v732_v54 = vadd.f32 %v723_v37, %v704_v49 }
 0x11a   : > { %v724_v44 = vrot.slane %v721_v40, 4 }
 0x11c   : > { %v726_v51 = vsel %vm557_vm0, %v724_v44, %v725_v43 }
 0x11d   : > { %v728_v57 = vsel %vm727_vm7, %v721_v40, %v726_v51  ;;  %v5935_v56 = vpop.permute.xlu2 %1322 }
 0x11e   : > { %v731_v1 = vadd.f32 %v728_v57, %v703_v62 }
 0x120   : > { %v765_v55 = vpop.permute.xlu1 %764 }
 0x121   : > { %v769_v58 = vperm.slane %v765_v55, %v5807_v12  ;;  %v751_v59 = vpop.permute.xlu0 %750  ;;  %v818_v12 = vsub.f32 %v792_v60, %v5912_v4 }
 0x122   : > { %v753_v63 = vrot.slane %v751_v59, 4  ;;  %v760_v0 = vadd.f32 %v751_v59, %v732_v54 }
 0x123   : > { %v819_v10 = vand.u32 4294901760, %v818_v12 }
 0x124   : > { %v754_v2 = vsel %vm557_vm0, %v752_v61, %v753_v63  ;;  %v772_v3 = vadd.f32 %v769_v58, %v760_v0 }
 0x125   : > { %v756_v5 = vsel %vm755_vm9, %v749_v53, %v754_v2  ;;  %v820_v15 = vsub.f32 %v818_v12, %v819_v10 }
 0x126   : > { %v759_v6 = vadd.f32 %v756_v5, %v731_v1  ;;  %v774_v7 = vmax.f32 %v772_v3, 0.0 }
 0x127   : > { %v821_v19 = vand.u32 4294901760, %v820_v15 }
 0x128   : > { %v771_v8 = vadd.f32 %v769_v58, %v759_v6  ;;  %786 = vst [vmem:[#allocation1 + $0x10] ss:$2 sm:$0xff] %v774_v7  ;;  %v5937_v57 = vpop.permute.xlu1 %1295 }
 0x129   : > { %v5933_v53 = vpop.permute.xlu0 %1268 }
 0x12a   : > { %v773_v9 = vmax.f32 %v771_v8, 0.0  ;;  %v1404_v8 = vpop.permute.xlu2 %1403 }
 0x12c   : > { %784 = vst [vmem:[#allocation1] ss:$2 sm:$0xff] %v773_v9  ;;  %v1244_v9 = vperm.slane %v1241_v45, 1 }
 0x12f   : > { %v789_v11 = vld.sshfl [vmem:[#allocation1 + $0x10] sm:$0xff pattern:$0x75316420] }
 0x130   : > { %4032 = vst [vmem:[#allocation1 + $0x10] ss:$2 sm:$0xff] %v5814_v14  ;;  %v798_v21 = vsel %vm557_vm0, %v789_v11, 0 }
 0x131   : > { %v1107_v26 = vand.u32 4294901760, %v798_v21  ;;  %v1350_v6 = vpop.permute.xlu0 %1349 }
 0x133   : > { %v787_v16 = vld.sshfl [vmem:[#allocation1] sm:$0xff pattern:$0x75316420]  ;;  %v788_v17 = vld.sshfl [vmem:[#allocation1 + $0x8] sm:$0xff pattern:$0x75316420] }
 0x134   : > { %v794_v18 = vsel %vm557_vm0, %v787_v16, 0  ;;  %v796_v20 = vsel %vm557_vm0, %v788_v17, 0  ;;  %4030 = vst [vmem:[#allocation1] ss:$2 sm:$0xff] %v5812_v13  ;;  %v1134_v13 = vsub.f32 %v798_v21, %v1107_v26 }
 0x135   : > { %v815_v22 = vand.u32 4294901760, %v794_v18  ;;  %v961_v23 = vand.u32 4294901760, %v796_v20 }
 0x136   : > { %v1135_v32 = vand.u32 4294901760, %v1134_v13 }
 0x137   : > { %816 = vmatpush.msra.mxu0 %v815_v22  ;;  %892 = vmatpush.msra.mxu3 %v815_v22  ;;  %v842_v24 = vsub.f32 %v794_v18, %v815_v22  ;;  %v988_v25 = vsub.f32 %v796_v20, %v961_v23 }
 0x138   : > { %822 = vmatmul.f32.vlgmr.msra.gmra.mxu0 %v821_v19  ;;  %896 = vmatmul.f32.vlgmr.msra.gmra.mxu3 %v819_v10  ;;  %v1136_v33 = vsub.f32 %v1134_v13, %v1135_v32 }
 0x139   : > { %869 = vmatpush.msra.mxu2 %v842_v24  ;;  %v843_v14 = vand.u32 4294901760, %v842_v24  ;;  %v989_v27 = vand.u32 4294901760, %v988_v25 }
 0x13a   : > { %872 = vmatmul.f32.vlgmr.msra.gmra.mxu2 %v818_v12  ;;  %v1137_v34 = vand.u32 4294901760, %v1136_v33 }
 0x13b   : > { %962 = vmatpush.msrb.mxu2 %v961_v23  ;;  %918 = vmatpush.msrb.mxu0 %v843_v14  ;;  %v844_v28 = vsub.f32 %v842_v24, %v843_v14  ;;  %v990_v29 = vsub.f32 %v988_v25, %v989_v27 }
 0x13d   : > { %1064 = vmatpush.msra.mxu2 %v989_v27  ;;  %1015 = vmatpush.msra.mxu0 %v988_v25  ;;  %v845_v30 = vand.u32 4294901760, %v844_v28  ;;  %v991_v31 = vand.u32 4294901760, %v990_v29 }
 0x13f   : > { %846 = vmatpush.msra.mxu1 %v845_v30  ;;  %992 = vmatpush.msrb.mxu3 %v991_v31  ;;  %v1245_v31 = vperm.slane %v1241_v45, 2 }
 0x140   : > { %848 = vmatmul.f32.vlgmr.msra.gmra.mxu1 %v5912_v4  ;;  %920 = vmatmul.f32.vlgmr.msrb.gmra.mxu0 %v5912_v4 }
 0x141   : > { %940 = vmatpush.msrb.mxu1 %v815_v22  ;;  %1086 = vmatpush.msra.mxu3 %v961_v23 }
 0x142   : > { %1108 = vmatpush.msrb.mxu0 %v1107_v26  ;;  %994 = vmatmul.f32.vlgmr.msrb.gmra.mxu3 %v5912_v4 }
 0x143   : > { %1038 = vmatpush.msra.mxu1 %v961_v23  ;;  %1184 = vmatpush.msrb.mxu3 %v1107_v26 }
 0x144   : > { %968 = vmatmul.f32.vlgmr.msrb.gmra.mxu2 %v821_v19 }
 0x145   : > { %1161 = vmatpush.msrb.mxu2 %v1134_v13 }
 0x148   : > { %942 = vmatmul.f32.vlgmr.msrb.gmra.mxu1 %v5912_v4  ;;  %1018 = vmatmul.f32.vlgmr.msra.gmra.mxu0 %v818_v12 }
 0x149   : > { %1138 = vmatpush.msrb.mxu1 %v1137_v34  ;;  %1210 = vmatpush.msra.mxu0 %v1135_v32 }
 0x14a   : > { %1088 = vmatmul.f32.vlgmr.msra.gmra.mxu3 %v5912_v4 }
 0x14c   : > { %1066 = vmatmul.f32.vlgmr.msra.gmra.mxu2 %v5912_v4 }
 0x150   : > { %1042 = vmatmul.f32.vlgmr.msra.gmra.mxu1 %v819_v10  ;;  %1114 = vmatmul.f32.vlgmr.msrb.gmra.mxu0 %v821_v19 }
 0x151   : > { %1232 = vmatpush.msra.mxu1 %v1107_v26  ;;  %v1431_v26 = vpop.permute.xlu0 %1430 }
 0x152   : > { %1188 = vmatmul.f32.vlgmr.msrb.gmra.mxu3 %v819_v10 }
 0x154   : > { %1164 = vmatmul.f32.vlgmr.msrb.gmra.mxu2 %v818_v12  ;;  %v1377_v12 = vpop.permute.xlu1 %1376 }
 0x158   : > { %1140 = vmatmul.f32.vlgmr.msrb.gmra.mxu1 %v5912_v4  ;;  %1212 = vmatmul.f32.vlgmr.msra.gmra.mxu0 %v5912_v4 }
 0x160   : > { %1234 = vmatmul.f32.vlgmr.msra.gmra.mxu1 %v5912_v4 }
 0x1b5   : > { %v823_v35 = vpop.f32.mrf.mxu0 }
 0x1b6   : > { %v824_v38 = vadd.f32 %v823_v35, %v780_v36 }
 0x1bb   : > { %v897_v37 = vpop.f32.mrf.mxu3 }
 0x1bd   : > { %v849_v39 = vpop.f32.mrf.mxu1  ;;  %v873_v40 = vpop.f32.mrf.mxu2 }
 0x1be   : > { %v850_v41 = vadd.f32 %v849_v39, %v824_v38  ;;  %v921_v42 = vpop.f32.mrf.mxu0  ;;  %v1458_v39 = vpop.permute.xlu1 %1457 }
 0x1c0   : > { %v874_v43 = vadd.f32 %v873_v40, %v850_v41 }
 0x1c2   : > { %v898_v44 = vadd.f32 %v897_v37, %v874_v43  ;;  %v1480_v43 = vld [vmem:[%s8071_s9] sm:$0xff] }
 0x1c4   : > { %v922_v46 = vadd.f32 %v921_v42, %v898_v44 }
 0x1c5   : > { %v943_v47 = vpop.f32.mrf.mxu1  ;;  %v995_v48 = vpop.f32.mrf.mxu3 }
 0x1c6   : > { %v944_v49 = vadd.f32 %v943_v47, %v922_v46  ;;  %v1019_v52 = vpop.f32.mrf.mxu0 }
 0x1c7   : > { %v969_v51 = vpop.f32.mrf.mxu2 }
 0x1c8   : > { %v1238_v54 = vmax.f32 %v944_v49, 0.0  ;;  %v970_v55 = vadd.f32 %v969_v51, %v780_v36 }
 0x1ca   : > { %v5939_v58 = vmul.f32 %v1243_v50, %v1238_v54  ;;  %v996_v59 = vadd.f32 %v995_v48, %v970_v55 }
 0x1cc   : > { %v1020_v60 = vadd.f32 %v1019_v52, %v996_v59  ;;  %v1325_v61 = vmul.f32 %v5935_v56, %v5939_v58  ;;  %v1298_v62 = vmul.f32 %v5937_v57, %v5939_v58  ;;  %v1271_v63 = vmul.f32 %v5933_v53, %v5939_v58  ;;  %v2404_v52 = vld [vmem:[%s8073_s11] sm:$0xff] }
 0x1cd   : > { %v1043_v0 = vpop.f32.mrf.mxu1  ;;  %v1089_v1 = vpop.f32.mrf.mxu3  ;;  %v1406_v15 = vmul.f32 %v1404_v8, %v5939_v58  ;;  %v1379_v16 = vmul.f32 %v1377_v12, %v5939_v58  ;;  %v1352_v18 = vmul.f32 %v1350_v6, %v5939_v58  ;;  %v1433_v13 = vmul.f32 %v1431_v26, %v5939_v58 }
 0x1ce   : > { %v1044_v2 = vadd.f32 %v1043_v0, %v1020_v60  ;;  %1331 = vrot.lane.b32.xlu1 %v1325_v61, %s8135_s19  ;;  %1304 = vrot.lane.b32.xlu2 %v1298_v62, %s8110_s20  ;;  %v1115_v5 = vpop.f32.mrf.mxu0  ;;  %v1460_v41 = vmul.f32 %v1458_v39, %v5939_v58  ;;  %v1505_v60 = vld [vmem:[%s8074_s12 + $0x68] sm:$0xff]  ;;  %v1504_v0 = vld [vmem:[%s8074_s12 + $0x60] sm:$0xff] }
 0x1cf   : > { %1277 = vrot.lane.b32.xlu0 %v1271_v63, %s8089_s18  ;;  %v1067_v3 = vpop.f32.mrf.mxu2  ;;  %v1116_v10 = vadd.f32 %v1115_v5, %v780_v36  ;;  %v5968_v36 = vpop.permute.xlu2 %1255  ;;  %v6025_v63 = vand.u32 4294901760, %v1505_v60  ;;  %v6040_v5 = vand.u32 4294901760, %v1504_v0 }
 0x1d0   : > { %v1068_v4 = vadd.f32 %v1067_v3, %v1044_v2 }
 0x1d2   : > { %v1090_v7 = vadd.f32 %v1089_v1, %v1068_v4  ;;  %v4033_v1 = vld.sshfl [vmem:[#allocation1] sm:$0xff pattern:$0x75316420]  ;;  %v6038_v4 = vsub.f32 %v1505_v60, %v6025_v63 }
 0x1d4   : > { %v1239_v11 = vmax.f32 %v1090_v7, 0.0 }
 0x1d5   : > { %v1141_v17 = vpop.f32.mrf.mxu1  ;;  %v1189_v21 = vpop.f32.mrf.mxu3 }
 0x1d6   : > { %v1142_v19 = vadd.f32 %v1141_v17, %v1116_v10  ;;  %1412 = vrot.lane.b32.xlu1 %v1406_v15, %s8181_s27  ;;  %1385 = vrot.lane.b32.xlu2 %v1379_v16, %s8182_s28  ;;  %v5956_v22 = vmul.f32 %v1244_v9, %v1239_v11  ;;  %v1213_v24 = vpop.f32.mrf.mxu0  ;;  %v6053_v9 = vsub.f32 %v1504_v0, %v6040_v5  ;;  %v1502_v11 = vld [vmem:[%s8074_s12 + $0x50] sm:$0xff] }
 0x1d7   : > { %1358 = vrot.lane.b32.xlu0 %v1352_v18, %s8183_s23  ;;  %v1165_v20 = vpop.f32.mrf.mxu2  ;;  %v6068_v18 = vand.u32 4294901760, %v1502_v11 }
 0x1d8   : > { %v1166_v23 = vadd.f32 %v1165_v20, %v1142_v19  ;;  %v1272_v27 = vmul.f32 %v5933_v53, %v5956_v22  ;;  %v1326_v28 = vmul.f32 %v5935_v56, %v5956_v22  ;;  %v1353_v34 = vmul.f32 %v1350_v6, %v5956_v22  ;;  %v1501_v20 = vld [vmem:[%s8074_s12 + $0x48] sm:$0xff] }
 0x1d9   : > { %v1407_v35 = vmul.f32 %v1404_v8, %v5956_v22  ;;  %v1299_v37 = vmul.f32 %v5937_v57, %v5956_v22  ;;  %v1434_v40 = vmul.f32 %v1431_v26, %v5956_v22  ;;  %v1380_v42 = vmul.f32 %v1377_v12, %v5956_v22 }
 0x1da   : > { %v1190_v25 = vadd.f32 %v1189_v21, %v1166_v23  ;;  %v1461_v45 = vmul.f32 %v1458_v39, %v5956_v22  ;;  %v1597_v17 = vand.u32 4294901760, %v6053_v9 }
 0x1dc   : > { %v1214_v14 = vadd.f32 %v1213_v24, %v1190_v25  ;;  %v1598_v23 = vsub.f32 %v6053_v9, %v1597_v17  ;;  %v6083_v24 = vsub.f32 %v1502_v11, %v6068_v18  ;;  %v6085_v25 = vand.u32 4294901760, %v1501_v20 }
 0x1dd   : > { %v1235_v29 = vpop.f32.mrf.mxu1 }
 0x1de   : > { %v1236_v30 = vadd.f32 %v1235_v29, %v1214_v14  ;;  %1279 = vrot.lane.b32.xlu1 %v1272_v27, %s8089_s18  ;;  %1333 = vrot.lane.b32.xlu2 %v1326_v28, %s8135_s19  ;;  %v1500_v14 = vld [vmem:[%s8074_s12 + $0x40] sm:$0xff]  ;;  %v4034_v27 = vld.sshfl [vmem:[#allocation1 + $0x8] sm:$0xff pattern:$0x75316420]  ;;  %v1599_v28 = vand.u32 4294901760, %v1598_v23  ;;  %v1609_v29 = vand.u32 4294901760, %v6083_v24 }
 0x1df   : > { %1439 = vrot.lane.b32.xlu0 %v1433_v13, %s8184_s25  ;;  %v6095_v13 = vsub.f32 %v1501_v20, %v6085_v25 }
 0x1e0   : > { %v1240_v32 = vmax.f32 %v1236_v30, 0.0  ;;  %v6097_v30 = vand.u32 4294901760, %v1500_v14 }
 0x1e2   : > { %v1251_v33 = vmul.f32 %v1245_v31, %v1240_v32  ;;  %v1499_v32 = vld [vmem:[%s8074_s12 + $0x38] sm:$0xff] }
 0x1e4   : > { %v5975_v38 = vmul.f32 %v5968_v36, %v1251_v33  ;;  %v1273_v44 = vmul.f32 %v5933_v53, %v1251_v33  ;;  %v1327_v46 = vmul.f32 %v5935_v56, %v1251_v33  ;;  %v1354_v47 = vmul.f32 %v1350_v6, %v1251_v33  ;;  %v1507_v53 = vld [vmem:[%s8074_s12 + $0x78] sm:$0xff]  ;;  %v1506_v56 = vld [vmem:[%s8074_s12 + $0x70] sm:$0xff] }
 0x1e5   : > { %v1300_v48 = vmul.f32 %v5937_v57, %v1251_v33  ;;  %v1408_v49 = vmul.f32 %v1404_v8, %v1251_v33  ;;  %v1435_v50 = vmul.f32 %v1431_v26, %v1251_v33  ;;  %v1381_v51 = vmul.f32 %v1377_v12, %v1251_v33  ;;  %v1503_v6 = vld [vmem:[%s8074_s12 + $0x58] sm:$0xff] }
 0x1e6   : > { %1360 = vrot.lane.b32.xlu1 %v1353_v34, %s8183_s23  ;;  %1414 = vrot.lane.b32.xlu2 %v1407_v35, %s8181_s27  ;;  %v1462_v54 = vmul.f32 %v1458_v39, %v1251_v33  ;;  %v6005_v55 = vand.u32 4294901760, %v1507_v53  ;;  %v6014_v59 = vand.u32 4294901760, %v1506_v56  ;;  %v1591_v12 = vand.u32 4294901760, %v6038_v4 }
 0x1e7   : > { %1306 = vrot.lane.b32.xlu0 %v1299_v37, %s8110_s20  ;;  %v6058_v10 = vand.u32 4294901760, %v1503_v6  ;;  %v1610_v33 = vsub.f32 %v6083_v24, %v1609_v29  ;;  %v1615_v34 = vand.u32 4294901760, %v6095_v13  ;;  %v6113_v35 = vsub.f32 %v1500_v14, %v6097_v30 }
 0x1e8   : > { %v6012_v57 = vsub.f32 %v1507_v53, %v6005_v55  ;;  %1733 = vmatpush.msrb.mxu1 %v6005_v55  ;;  %1537 = vmatpush.msra.mxu2 %v6005_v55  ;;  %v6023_v62 = vsub.f32 %v1506_v56, %v6014_v59  ;;  %v1592_v16 = vsub.f32 %v6038_v4, %v1591_v12  ;;  %v6115_v37 = vand.u32 4294901760, %v1499_v32  ;;  %v4035_v53 = vld.sshfl [vmem:[#allocation1 + $0x10] sm:$0xff pattern:$0x75316420] }
 0x1e9   : > { %v6072_v19 = vsub.f32 %v1503_v6, %v6058_v10 }
 0x1ea   : > { %v1579_v61 = vand.u32 4294901760, %v6012_v57  ;;  %1735 = vmatpush.msrb.mxu1 %v6014_v59  ;;  %1680 = vmatpush.msrb.mxu0 %v6012_v57  ;;  %v1585_v3 = vand.u32 4294901760, %v6023_v62  ;;  %v1593_v21 = vand.u32 4294901760, %v1592_v16  ;;  %v1494_v16 = vld [vmem:[%s8074_s12 + $0x10] sm:$0xff] }
 0x1eb   : > { %1539 = vmatpush.msra.mxu2 %v6014_v59  ;;  %v1603_v26 = vand.u32 4294901760, %v6072_v19  ;;  %v6190_v14 = vand.u32 4294901760, %v1494_v16 }
 0x1ec   : > { %v1580_v2 = vsub.f32 %v6012_v57, %v1579_v61  ;;  %1737 = vmatpush.msrb.mxu1 %v6025_v63  ;;  %1683 = vmatpush.msrb.mxu0 %v6023_v62  ;;  %v1586_v8 = vsub.f32 %v6023_v62, %v1585_v3  ;;  %v1520_v57 = vld [vmem:[%s8074_s12 + $0xe0] sm:$0xff] }
 0x1ed   : > { %1541 = vmatpush.msra.mxu2 %v6025_v63  ;;  %v1604_v31 = vsub.f32 %v6072_v19, %v1603_v26 }
 0x1ee   : > { %1441 = vrot.lane.b32.xlu1 %v1434_v40, %s8184_s25  ;;  %1466 = vrot.lane.b32.xlu2 %v1460_v41, %s8185_s24  ;;  %v1581_v7 = vand.u32 4294901760, %v1580_v2  ;;  %v1587_v15 = vand.u32 4294901760, %v1586_v8  ;;  %v1498_v40 = vld [vmem:[%s8074_s12 + $0x30] sm:$0xff]  ;;  %v1611_v41 = vand.u32 4294901760, %v1610_v33  ;;  %v1495_v2 = vld [vmem:[%s8074_s12 + $0x18] sm:$0xff] }
 0x1ef   : > { %1387 = vrot.lane.b32.xlu0 %v1380_v42, %s8182_s28  ;;  %1739 = vmatpush.msrb.mxu1 %v6040_v5  ;;  %v1605_v39 = vand.u32 4294901760, %v1604_v31  ;;  %v1616_v42 = vsub.f32 %v6095_v13, %v1615_v34  ;;  %v6172_v11 = vand.u32 4294901760, %v1495_v2 }
 0x1f0   : > { %1686 = vmatpush.msrb.mxu0 %v6038_v4  ;;  %1543 = vmatpush.msra.mxu2 %v6040_v5  ;;  %v1518_v4 = vld [vmem:[%s8074_s12 + $0xd0] sm:$0xff] }
 0x1f1   : > { %1582 = vmatpush.msra.mxu3 %v1581_v7  ;;  %1741 = vmatpush.msrb.mxu1 %v6058_v10  ;;  %v6188_v23 = vsub.f32 %v1495_v2, %v6172_v11 }
 0x1f2   : > { %1689 = vmatpush.msrb.mxu0 %v6053_v9  ;;  %1545 = vmatpush.msra.mxu2 %v6058_v10  ;;  %v1517_v9 = vld [vmem:[%s8074_s12 + $0xc8] sm:$0xff] }
 0x1f3   : > { %1588 = vmatpush.msra.mxu3 %v1587_v15  ;;  %1743 = vmatpush.msrb.mxu1 %v6068_v18  ;;  %v1651_v33 = vand.u32 4294901760, %v6188_v23 }
 0x1f4   : > { %1692 = vmatpush.msrb.mxu0 %v6072_v19  ;;  %1547 = vmatpush.msra.mxu2 %v6068_v18 }
 0x1f5   : > { %1594 = vmatpush.msra.mxu3 %v1593_v21  ;;  %1745 = vmatpush.msrb.mxu1 %v6085_v25 }
 0x1f6   : > { %1483 = vperm.xlu1 %5626, %v1480_v43   ;;  %1281 = vrot.lane.b32.xlu2 %v1273_v44, %s8089_s18  ;;  %v1621_v43 = vand.u32 4294901760, %v6113_v35  ;;  %v6128_v44 = vsub.f32 %v1499_v32, %v6115_v37  ;;  %s8106_s18 = smov 101  }
 0x1f7   : > { %1468 = vrot.lane.b32.xlu0 %v1461_v45, %s8185_s24  ;;  %1695 = vmatpush.msrb.mxu0 %v6083_v24  ;;  %v6132_v45 = vand.u32 4294901760, %v1498_v40  ;;  %v1515_v24 = vld [vmem:[%s8074_s12 + $0xb8] sm:$0xff] }
 0x1f8   : > { %1600 = vmatpush.msra.mxu3 %v1599_v28  ;;  %1549 = vmatpush.msra.mxu2 %v6085_v25  ;;  %v1493_v28 = vld [vmem:[%s8074_s12 + $0x8] sm:$0xff] }
 0x1f9   : > { %1747 = vmatpush.msrb.mxu1 %v6097_v30  ;;  %1698 = vmatpush.msrb.mxu0 %v6095_v13 }
 0x1fa   : > { %1551 = vmatpush.msra.mxu2 %v6097_v30  ;;  %1606 = vmatpush.msra.mxu3 %v1605_v39  ;;  %v6203_v39 = vsub.f32 %v1494_v16, %v6190_v14 }
 0x1fb   : > { %1749 = vmatpush.msrb.mxu1 %v6115_v37  ;;  %1701 = vmatpush.msrb.mxu0 %v6113_v35 }
 0x1fc   : > { %1553 = vmatpush.msra.mxu2 %v6115_v37  ;;  %1612 = vmatpush.msra.mxu3 %v1611_v41  ;;  %v1492_v41 = vld [vmem:[%s8074_s12] sm:$0xff] }
 0x1fd   : > { %1751 = vmatpush.msrb.mxu1 %v6132_v45  ;;  %1704 = vmatpush.msrb.mxu0 %v6128_v44 }
 0x1fe   : > { %1335 = vrot.lane.b32.xlu1 %v1327_v46, %s8135_s19  ;;  %1362 = vrot.lane.b32.xlu2 %v1354_v47, %s8183_s23  ;;  %v1497_v46 = vld [vmem:[%s8074_s12 + $0x28] sm:$0xff]  ;;  %v1617_v47 = vand.u32 4294901760, %v1616_v42  ;;  %v4022_v42 = vld [vmem:[%s8065_s3] sm:$0xff] }
 0x1ff   : > { %1308 = vrot.lane.b32.xlu0 %v1300_v48, %s8110_s20  ;;  %v1622_v48 = vsub.f32 %v6113_v35, %v1621_v43  ;;  %1555 = vmatpush.msra.mxu2 %v6132_v45  ;;  %v1513_v35 = vld [vmem:[%s8074_s12 + $0xa8] sm:$0xff]  ;;  %s8139_s20 = smov 123  }
 0x200   : > { %1618 = vmatpush.msra.mxu3 %v1617_v47  ;;  %v1652_v47 = vsub.f32 %v6188_v23, %v1651_v33 }
 0x206   : > { %1416 = vrot.lane.b32.xlu1 %v1408_v49, %s8181_s27  ;;  %1443 = vrot.lane.b32.xlu2 %v1435_v50, %s8184_s25  ;;  %v1627_v49 = vand.u32 4294901760, %v6128_v44  ;;  %v6142_v50 = vand.u32 4294901760, %v1497_v46  ;;  %s8103_s25 = smov 102   ;;  %s8116_s27 = smov 107  }
 0x207   : > { %1389 = vrot.lane.b32.xlu0 %v1381_v51, %s8182_s28  ;;  %v6147_v51 = vsub.f32 %v1498_v40, %v6132_v45  ;;  %v6207_v40 = vand.u32 4294901760, %v1493_v28 }
 0x208   : > { %v1628_v56 = vsub.f32 %v6128_v44, %v1627_v49  ;;  %v6157_v60 = vsub.f32 %v1497_v46, %v6142_v50  ;;  %1753 = vmatpush.msrb.mxu1 %v6142_v50  ;;  %1557 = vmatpush.msra.mxu2 %v6142_v50 }
 0x209   : > { %1707 = vmatpush.msrb.mxu0 %v6147_v51 }
 0x20a   : > { %v1629_v6 = vand.u32 4294901760, %v1628_v56  ;;  %v1639_v7 = vand.u32 4294901760, %v6157_v60 }
 0x20b   : > { %1710 = vmatpush.msrb.mxu0 %v6157_v60 }
 0x20c   : > { %v1640_v20 = vsub.f32 %v6157_v60, %v1639_v7 }
 0x20e   : > { %2407 = vperm.xlu1 %5626, %v2404_v52   ;;  %v1496_v52 = vld [vmem:[%s8074_s12 + $0x20] sm:$0xff]  ;;  %v1641_v31 = vand.u32 4294901760, %v1640_v20  ;;  %v1523_v20 = vld [vmem:[%s8074_s12 + $0xf8] sm:$0xff] }
 0x20f   : > { %1470 = vrot.lane.b32.xlu0 %v1462_v54, %s8185_s24  ;;  %v1623_v54 = vand.u32 4294901760, %v1622_v48  ;;  %v6159_v0 = vand.u32 4294901760, %v1496_v52  ;;  %v1657_v48 = vand.u32 4294901760, %v6203_v39  ;;  %s8204_s24 = smov 115  }
 0x211   : > { %v6170_v8 = vsub.f32 %v1496_v52, %v6159_v0  ;;  %1624 = vmatpush.msra.mxu3 %v1623_v54  ;;  %1755 = vmatpush.msrb.mxu1 %v6159_v0  ;;  %v6220_v52 = vand.u32 4294901760, %v1492_v41  ;;  %v1653_v54 = vand.u32 4294901760, %v1652_v47  ;;  %v1658_v56 = vsub.f32 %v6203_v39, %v1657_v48 }
 0x212   : > { %1559 = vmatpush.msra.mxu2 %v6159_v0 }
 0x213   : > { %v1645_v21 = vand.u32 4294901760, %v6170_v8  ;;  %1630 = vmatpush.msra.mxu3 %v1629_v6  ;;  %1757 = vmatpush.msrb.mxu1 %v6172_v11  ;;  %v6232_v2 = vsub.f32 %v1492_v41, %v6220_v52 }
 0x214   : > { %1713 = vmatpush.msrb.mxu0 %v6170_v8  ;;  %1561 = vmatpush.msra.mxu2 %v6172_v11 }
 0x215   : > { %v1646_v32 = vsub.f32 %v6170_v8, %v1645_v21  ;;  %1759 = vmatpush.msrb.mxu1 %v6190_v14  ;;  %v1669_v16 = vand.u32 4294901760, %v6232_v2 }
 0x216   : > { %4036 = vrot.lane.b32.xlu1 %v4033_v1, %s8183_s23  ;;  %v1633_v1 = vand.u32 4294901760, %v6147_v51  ;;  %1716 = vmatpush.msrb.mxu0 %v6188_v23 }
 0x217   : > { %v1647_v46 = vand.u32 4294901760, %v1646_v32  ;;  %1563 = vmatpush.msra.mxu2 %v6190_v14  ;;  %1761 = vmatpush.msrb.mxu1 %v6207_v40  ;;  %v1522_v32 = vld [vmem:[%s8074_s12 + $0xf0] sm:$0xff] }
 0x218   : > { %v1634_v15 = vsub.f32 %v6147_v51, %v1633_v1  ;;  %1719 = vmatpush.msrb.mxu0 %v6203_v39 }
 0x219   : > { %1763 = vmatpush.msrb.mxu1 %v6220_v52  ;;  %1565 = vmatpush.msra.mxu2 %v6207_v40 }
 0x21b   : > { %1567 = vmatpush.msra.mxu2 %v6220_v52 }
 0x21d   : > { %1774 = vmatpush.msrb.mxu2 %v1579_v61 }
 0x21e   : > { %4038 = vrot.lane.b32.xlu1 %v4034_v27, %s8183_s23  ;;  %v1635_v27 = vand.u32 4294901760, %v1634_v15  ;;  %v1659_v15 = vand.u32 4294901760, %v1658_v56 }
 0x21f   : > { %1778 = vmatpush.msrb.mxu2 %v1585_v3  ;;  %v1519_v3 = vld [vmem:[%s8074_s12 + $0xd8] sm:$0xff] }
 0x220   : > { %1636 = vmatpush.msra.mxu3 %v1635_v27 }
 0x221   : > { %1782 = vmatpush.msrb.mxu2 %v1591_v12 }
 0x222   : > { %1642 = vmatpush.msra.mxu3 %v1641_v31  ;;  %v1670_v31 = vsub.f32 %v6232_v2, %v1669_v16 }
 0x223   : > { %1786 = vmatpush.msrb.mxu2 %v1597_v17 }
 0x224   : > { %1648 = vmatpush.msra.mxu3 %v1647_v46  ;;  %v6259_v46 = vand.u32 4294901760, %v1522_v32  ;;  %v1671_v47 = vand.u32 4294901760, %v1670_v31 }
 0x225   : > { %1790 = vmatpush.msrb.mxu2 %v1603_v26  ;;  %v1516_v26 = vld [vmem:[%s8074_s12 + $0xc0] sm:$0xff] }
 0x226   : > { %4040 = vrot.lane.b32.xlu1 %v4035_v53, %s8183_s23  ;;  %v6225_v53 = vsub.f32 %v1493_v28, %v6207_v40  ;;  %1654 = vmatpush.msra.mxu3 %v1653_v54  ;;  %v6246_v28 = vand.u32 4294901760, %v1523_v20  ;;  %v1521_v54 = vld [vmem:[%s8074_s12 + $0xe8] sm:$0xff] }
 0x227   : > { %1794 = vmatpush.msrb.mxu2 %v1609_v29 }
 0x228   : > { %v1663_v6 = vand.u32 4294901760, %v6225_v53  ;;  %1722 = vmatpush.msrb.mxu0 %v6225_v53  ;;  %1660 = vmatpush.msra.mxu3 %v1659_v15  ;;  %v6270_v15 = vsub.f32 %v1522_v32, %v6259_v46  ;;  %v6287_v32 = vand.u32 4294901760, %v1520_v57  ;;  %v6289_v62 = vpop.permute.xlu2 %1304 }
 0x229   : > { %1798 = vmatpush.msrb.mxu2 %v1615_v34 }
 0x22a   : > { %v1664_v27 = vsub.f32 %v6225_v53, %v1663_v6  ;;  %1725 = vmatpush.msrb.mxu0 %v6232_v2 }
 0x22b   : > { %1802 = vmatpush.msrb.mxu2 %v1621_v43 }
 0x22c   : > { %v1665_v41 = vand.u32 4294901760, %v1664_v27  ;;  %1878 = vmatpush.msra.mxu0 %v6246_v28  ;;  %v8092_v27 = vand.u32 4294901760, %v6270_v15 }
 0x22d   : > { %1806 = vmatpush.msrb.mxu2 %v1627_v49 }
 0x22e   : > { %4025 = vperm.xlu1 %5626, %v4022_v42   ;;  %v6257_v42 = vsub.f32 %v1523_v20, %v6246_v28  ;;  %1666 = vmatpush.msra.mxu3 %v1665_v41  ;;  %v6272_v20 = vand.u32 4294901760, %v1521_v54 }
 0x22f   : > { %1880 = vmatpush.msra.mxu0 %v6259_v46  ;;  %1810 = vmatpush.msrb.mxu2 %v1633_v1 }
 0x230   : > { %v8091_v56 = vand.u32 4294901760, %v6257_v42  ;;  %1672 = vmatpush.msra.mxu3 %v1671_v47  ;;  %v6285_v31 = vsub.f32 %v1521_v54, %v6272_v20  ;;  %v1927_v47 = vsub.f32 %v6270_v15, %v8092_v27  ;;  %v6317_v27 = vand.u32 4294901760, %v1518_v4  ;;  %v6373_v13 = vpop.permute.xlu2 %1385 }
 0x231   : > { %1882 = vmatpush.msra.mxu0 %v6272_v20  ;;  %1814 = vmatpush.msrb.mxu2 %v1639_v7 }
 0x232   : > { %v1921_v61 = vsub.f32 %v6257_v42, %v8091_v56  ;;  %1841 = vmatpush.msrb.mxu3 %v6005_v55  ;;  %v8096_v54 = vand.u32 4294901760, %v6285_v31  ;;  %v6302_v56 = vsub.f32 %v1520_v57, %v6287_v32  ;;  %v6306_v55 = vand.u32 4294901760, %v1519_v3 }
 0x233   : > { %v1928_v12 = vand.u32 4294901760, %v1927_v47  ;;  %1884 = vmatpush.msra.mxu0 %v6287_v32  ;;  %v6333_v47 = vsub.f32 %v1518_v4, %v6317_v27  ;;  %1818 = vmatpush.msrb.mxu2 %v1645_v21 }
 0x234   : > { %v1922_v41 = vand.u32 4294901760, %v1921_v61  ;;  %1843 = vmatpush.msrb.mxu3 %v6014_v59  ;;  %v1933_v57 = vsub.f32 %v6285_v31, %v8096_v54  ;;  %v8095_v61 = vand.u32 4294901760, %v6302_v56  ;;  %v6322_v59 = vsub.f32 %v1519_v3, %v6306_v55 }
 0x235   : > { %1886 = vmatpush.msra.mxu0 %v6306_v55  ;;  %v8093_v4 = vand.u32 4294901760, %v6333_v47  ;;  %1822 = vmatpush.msrb.mxu2 %v1651_v33 }
 0x236   : > { %1923 = vmatpush.msra.mxu1 %v1922_v41  ;;  %1845 = vmatpush.msrb.mxu3 %v6025_v63  ;;  %v1934_v17 = vand.u32 4294901760, %v1933_v57  ;;  %v1939_v41 = vsub.f32 %v6302_v56, %v8095_v61  ;;  %v6335_v63 = vand.u32 4294901760, %v1517_v9  ;;  %v8094_v19 = vand.u32 4294901760, %v6322_v59 }
 0x237   : > { %v6349_v57 = vand.u32 4294901760, %v1516_v26  ;;  %1888 = vmatpush.msra.mxu0 %v6317_v27  ;;  %1826 = vmatpush.msrb.mxu2 %v1657_v48 }
 0x238   : > { %1929 = vmatpush.msra.mxu1 %v1928_v12  ;;  %1847 = vmatpush.msrb.mxu3 %v6040_v5  ;;  %v1940_v3 = vand.u32 4294901760, %v1939_v41  ;;  %v6347_v12 = vsub.f32 %v1517_v9, %v6335_v63  ;;  %v1945_v5 = vsub.f32 %v6322_v59, %v8094_v19  ;;  %v1951_v9 = vsub.f32 %v6333_v47, %v8093_v4  ;;  %v1514_v4 = vld [vmem:[%s8074_s12 + $0xb0] sm:$0xff] }
 0x239   : > { %v6370_v41 = vand.u32 4294901760, %v1515_v24  ;;  %1890 = vmatpush.msra.mxu0 %v6335_v63  ;;  %1830 = vmatpush.msrb.mxu2 %v1663_v6 }
 0x23a   : > { %1935 = vmatpush.msra.mxu1 %v1934_v17  ;;  %1849 = vmatpush.msrb.mxu3 %v6058_v10  ;;  %v1956_v10 = vand.u32 4294901760, %v6347_v12  ;;  %v6368_v17 = vsub.f32 %v1516_v26, %v6349_v57  ;;  %v1952_v26 = vand.u32 4294901760, %v1951_v9 }
 0x23b   : > { %v6388_v54 = vsub.f32 %v1515_v24, %v6370_v41  ;;  %1892 = vmatpush.msra.mxu0 %v6349_v57  ;;  %v6403_v24 = vand.u32 4294901760, %v1513_v35  ;;  %1834 = vmatpush.msrb.mxu2 %v1669_v16 }
 0x23c   : > { %1941 = vmatpush.msra.mxu1 %v1940_v3  ;;  %1851 = vmatpush.msrb.mxu3 %v6068_v18  ;;  %v1946_v3 = vand.u32 4294901760, %v1945_v5  ;;  %v1957_v19 = vsub.f32 %v6347_v12, %v1956_v10  ;;  %v8100_v61 = vand.u32 4294901760, %v6368_v17  ;;  %v6392_v18 = vand.u32 4294901760, %v1514_v4 }
 0x23d   : > { %v8097_v9 = vand.u32 4294901760, %v6388_v54  ;;  %1894 = vmatpush.msra.mxu0 %v6370_v41  ;;  %v6417_v49 = vsub.f32 %v1513_v35, %v6403_v24 }
 0x23e   : > { %1853 = vmatpush.msrb.mxu3 %v6085_v25  ;;  %1947 = vmatpush.msra.mxu1 %v1946_v3  ;;  %v1958_v43 = vand.u32 4294901760, %v1957_v19  ;;  %v1963_v5 = vsub.f32 %v6368_v17, %v8100_v61  ;;  %v6408_v25 = vsub.f32 %v1514_v4, %v6392_v18  ;;  %v1512_v19 = vld [vmem:[%s8074_s12 + $0xa0] sm:$0xff] }
 0x23f   : > { %v1969_v44 = vsub.f32 %v6388_v54, %v8097_v9  ;;  %1896 = vmatpush.msra.mxu0 %v6392_v18  ;;  %v8099_v9 = vand.u32 4294901760, %v6417_v49 }
 0x240   : > { %v6361_v29 = vpop.permute.xlu1 %1331  ;;  %1855 = vmatpush.msrb.mxu3 %v6097_v30  ;;  %1953 = vmatpush.msra.mxu1 %v1952_v26  ;;  %v1964_v3 = vand.u32 4294901760, %v1963_v5  ;;  %v6421_v30 = vand.u32 4294901760, %v1512_v19  ;;  %v8098_v4 = vand.u32 4294901760, %v6408_v25  ;;  %v1511_v26 = vld [vmem:[%s8074_s12 + $0x98] sm:$0xff] }
 0x241   : > { %v6375_v34 = vpop.permute.xlu0 %1277  ;;  %v1970_v35 = vand.u32 4294901760, %v1969_v44  ;;  %v6437_v1 = vand.u32 4294901760, %v1511_v26  ;;  %1898 = vmatpush.msra.mxu0 %v6403_v24  ;;  %v1981_v60 = vsub.f32 %v6417_v49, %v8099_v9  ;;  %v1509_v9 = vld [vmem:[%s8074_s12 + $0x88] sm:$0xff] }
 0x242   : > { %1857 = vmatpush.msrb.mxu3 %v6115_v37  ;;  %1959 = vmatpush.msra.mxu1 %v1958_v43  ;;  %v6433_v51 = vsub.f32 %v1512_v19, %v6421_v30  ;;  %v1975_v43 = vsub.f32 %v6408_v25, %v8098_v4  ;;  %v1510_v19 = vld [vmem:[%s8074_s12 + $0x90] sm:$0xff] }
 0x243   : > { %v6454_v44 = vsub.f32 %v1511_v26, %v6437_v1  ;;  %1900 = vmatpush.msra.mxu0 %v6421_v30  ;;  %v1982_v61 = vand.u32 4294901760, %v1981_v60 }
 0x244   : > { %1859 = vmatpush.msrb.mxu3 %v6132_v45  ;;  %1965 = vmatpush.msra.mxu1 %v1964_v3  ;;  %v1986_v7 = vand.u32 4294901760, %v6433_v51  ;;  %v6458_v45 = vand.u32 4294901760, %v1510_v19  ;;  %v6461_v3 = vpop.permute.xlu2 %1333  ;;  %v1976_v4 = vand.u32 4294901760, %v1975_v43 }
 0x245   : > { %v8101_v21 = vand.u32 4294901760, %v6454_v44  ;;  %1902 = vmatpush.msra.mxu0 %v6437_v1 }
 0x246   : > { %1861 = vmatpush.msrb.mxu3 %v6142_v50  ;;  %1971 = vmatpush.msra.mxu1 %v1970_v35  ;;  %v1987_v8 = vsub.f32 %v6433_v51, %v1986_v7  ;;  %v6472_v26 = vsub.f32 %v1510_v19, %v6458_v45  ;;  %v6478_v50 = vand.u32 4294901760, %v1509_v9  ;;  %v1508_v35 = vld [vmem:[%s8074_s12 + $0x80] sm:$0xff] }
 0x247   : > { %v1993_v19 = vsub.f32 %v6454_v44, %v8101_v21  ;;  %v6489_v23 = vand.u32 4294901760, %v1508_v35  ;;  %1904 = vmatpush.msra.mxu0 %v6458_v45 }
 0x248   : > { %v6429_v5 = vpop.permute.xlu1 %1412  ;;  %1863 = vmatpush.msrb.mxu3 %v6159_v0  ;;  %1977 = vmatpush.msra.mxu1 %v1976_v4  ;;  %v1988_v43 = vand.u32 4294901760, %v1987_v8  ;;  %v1998_v60 = vand.u32 4294901760, %v6472_v26  ;;  %v6494_v0 = vsub.f32 %v1509_v9, %v6478_v50 }
 0x249   : > { %v6440_v37 = vpop.permute.xlu0 %1358  ;;  %v1994_v4 = vand.u32 4294901760, %v1993_v19  ;;  %v6500_v21 = vsub.f32 %v1508_v35, %v6489_v23  ;;  %1906 = vmatpush.msra.mxu0 %v6478_v50 }
 0x24a   : > { %1865 = vmatpush.msrb.mxu3 %v6172_v11  ;;  %1983 = vmatpush.msra.mxu1 %v1982_v61  ;;  %v1999_v8 = vsub.f32 %v6472_v26, %v1998_v60  ;;  %v2004_v11 = vand.u32 4294901760, %v6494_v0 }
 0x24b   : > { %v8102_v61 = vand.u32 4294901760, %v6500_v21  ;;  %1908 = vmatpush.msra.mxu0 %v6489_v23 }
 0x24c   : > { %1867 = vmatpush.msrb.mxu3 %v6190_v14  ;;  %1989 = vmatpush.msra.mxu1 %v1988_v43  ;;  %v2000_v48 = vand.u32 4294901760, %v1999_v8  ;;  %v2005_v53 = vsub.f32 %v6494_v0, %v2004_v11  ;;  %v6518_v6 = vpop.permute.xlu2 %1414 }
 0x24d   : > { %v2011_v14 = vsub.f32 %v6500_v21, %v8102_v61 }
 0x24e   : > { %1869 = vmatpush.msrb.mxu3 %v6207_v40  ;;  %1995 = vmatpush.msra.mxu1 %v1994_v4  ;;  %v2006_v2 = vand.u32 4294901760, %v2005_v53  ;;  %v1258_v40 = vmul.f32 %v5968_v36, %v5939_v58 }
 0x24f   : > { %v2012_v9 = vand.u32 4294901760, %v2011_v14 }
 0x250   : > { %v1280_v33 = vpop.permute.xlu1 %1279  ;;  %1871 = vmatpush.msrb.mxu3 %v6220_v52  ;;  %2001 = vmatpush.msra.mxu1 %v2000_v48  ;;  %v1337_v52 = vsel %vm615_vm3, %v6361_v29, %v6461_v3 }
 0x251   : > { %v1440_v39 = vpop.permute.xlu0 %1439  ;;  %v1283_v16 = vsel %vm559_vm1, %v6375_v34, %v1280_v33 }
 0x252   : > { %2007 = vmatpush.msra.mxu1 %v2006_v2  ;;  %v1288_v43 = vadd.f32 %v1283_v16, %v1258_v40 }
 0x254   : > { %2013 = vmatpush.msra.mxu1 %v2012_v9  ;;  %v1467_v53 = vpop.permute.xlu2 %1466 }
 0x258   : > { %v1361_v35 = vpop.permute.xlu1 %1360 }
 0x259   : > { %v1307_v19 = vpop.permute.xlu0 %1306  ;;  %v1364_v34 = vsel %vm643_vm4, %v6440_v37, %v1361_v35 }
 0x25a   : > { %v1310_v4 = vsel %vm587_vm2, %v6289_v62, %v1307_v19  ;;  %v1418_v62 = vsel %vm699_vm6, %v6429_v5, %v6518_v6  ;;  %v1259_v5 = vmul.f32 %v5968_v36, %v5956_v22 }
 0x25b   : > { %v1315_v8 = vadd.f32 %v1310_v4, %v1288_v43 }
 0x25c   : > { %v1282_v4 = vpop.permute.xlu2 %1281 }
 0x25d   : > { %v1342_v48 = vadd.f32 %v1337_v52, %v1315_v8 }
 0x25f   : > { %v1369_v2 = vadd.f32 %v1364_v34, %v1342_v48  ;;  %v1284_v34 = vsel %vm559_vm1, %v1280_v33, %v1282_v4 }
 0x260   : > { %v6532_v14 = vpop.permute.xlu1 %1441 }
 0x261   : > { %v1388_v58 = vpop.permute.xlu0 %1387  ;;  %v1445_v29 = vsel %vm727_vm7, %v1440_v39, %v6532_v14  ;;  %v1290_v39 = vadd.f32 %v1282_v4, %v5975_v38 }
 0x262   : > { %v1391_v16 = vsel %vm8148_vm5, %v6373_v13, %v1388_v58 }
 0x263   : > { %v1396_v9 = vadd.f32 %v1391_v16, %v1369_v2 }
 0x265   : > { %v1423_v40 = vadd.f32 %v1418_v62, %v1396_v9  ;;  %v1289_v9 = vadd.f32 %v1284_v34, %v1259_v5 }
 0x267   : > { %v1450_v8 = vadd.f32 %v1445_v29, %v1423_v40 }
 0x268   : > { %v6541_v43 = vpop.permute.xlu1 %1483 }
 0x269   : > { %v6543_v37 = vpop.permute.xlu0 %1468 }
 0x26a   : > { %v1472_v52 = vsel %vm755_vm9, %v1467_v53, %v6543_v37  ;;  %v1363_v53 = vpop.permute.xlu2 %1362 }
 0x26b   : > { %v1477_v48 = vadd.f32 %v1472_v52, %v1450_v8  ;;  %v1365_v4 = vsel %vm643_vm4, %v1361_v35, %v1363_v53 }
 0x26d   : > { %v1486_v13 = vadd.f32 %v6541_v43, %v1477_v48 }
 0x26f   : > { %v1489_v2 = vmax.f32 %v1486_v13, 0.0 }
 0x270   : > { %v1336_v16 = vpop.permute.xlu1 %1335 }
 0x271   : > { %v6552_v62 = vand.u32 4294901760, %v1489_v2  ;;  %v1309_v61 = vpop.permute.xlu0 %1308  ;;  %v1338_v22 = vsel %vm615_vm3, %v6461_v3, %v1336_v16 }
 0x272   : > { %v1311_v40 = vsel %vm587_vm2, %v1307_v19, %v1309_v61  ;;  %v1317_v29 = vadd.f32 %v1309_v61, %v1290_v39  ;;  %v8186_v19 = vand.u32 4294901760, %v6257_v42 }
 0x273   : > { %v1569_v8 = vsub.f32 %v1489_v2, %v6552_v62  ;;  %v1316_v52 = vadd.f32 %v1311_v40, %v1289_v9  ;;  %1674 = vmatmul.f32.vlgmr.msra.gmra.mxu3 %v6552_v62  ;;  %v8187_v2 = vand.u32 4294901760, %v6270_v15  ;;  %v1444_v9 = vpop.permute.xlu2 %1443 }
 0x274   : > { %2074 = vmatpush.msra.mxu3 %v6246_v28  ;;  %v1344_v38 = vadd.f32 %v1336_v16, %v1317_v29 }
 0x275   : > { %v1343_v36 = vadd.f32 %v1338_v22, %v1316_v52  ;;  %1728 = vmatmul.f32.vlgmr.msrb.gmra.mxu0 %v1569_v8  ;;  %v1570_v33 = vand.u32 4294901760, %v1569_v8  ;;  %v1525_v22 = vld [vmem:[%s8074_s12 + $0x108] sm:$0xff] }
 0x276   : > { %2076 = vmatpush.msra.mxu3 %v6259_v46  ;;  %2115 = vmatpush.msrb.mxu0 %v8186_v19  ;;  %v1371_v13 = vadd.f32 %v1363_v53, %v1344_v38  ;;  %v1446_v53 = vsel %vm727_vm7, %v6532_v14, %v1444_v9  ;;  %v8191_v38 = vand.u32 4294901760, %v6333_v47 }
 0x277   : > { %1767 = vmatmul.f32.vlgmr.msrb.gmra.mxu1 %v1570_v33  ;;  %v1571_v61 = vsub.f32 %v1569_v8, %v1570_v33  ;;  %v1370_v48 = vadd.f32 %v1365_v4, %v1343_v36  ;;  %v8190_v8 = vand.u32 4294901760, %v6322_v59 }
 0x278   : > { %2078 = vmatpush.msra.mxu3 %v6272_v20  ;;  %2182 = vmatpush.msrb.mxu1 %v6246_v28  ;;  %v1417_v3 = vpop.permute.xlu1 %1416 }
 0x279   : > { %v1390_v34 = vpop.permute.xlu0 %1389  ;;  %v1572_v5 = vand.u32 4294901760, %v1571_v61  ;;  %2119 = vmatpush.msrb.mxu0 %v8187_v2  ;;  %v1419_v28 = vsel %vm699_vm6, %v6518_v6, %v1417_v3  ;;  %vm3203_vm6 = vcmask 740354  }
 0x27a   : > { %v1392_v39 = vsel %vm8148_vm5, %v1388_v58, %v1390_v34  ;;  %2080 = vmatpush.msra.mxu3 %v6287_v32  ;;  %2184 = vmatpush.msrb.mxu1 %v6259_v46  ;;  %v1398_v35 = vadd.f32 %v1390_v34, %v1371_v13  ;;  %v1527_v58 = vld [vmem:[%s8074_s12 + $0x118] sm:$0x3f]  ;;  %v8188_v46 = vand.u32 4294901760, %v6285_v31  ;;  %vm3204_vm7 = vmor %vm3203_vm6, %vm2879_vm15  ;;  %vm3221_vm6 = vcmask 516096  }
 0x27b   : > { %v1397_v16 = vadd.f32 %v1392_v39, %v1370_v48  ;;  %1573 = vmatmul.f32.vlgmr.msra.gmra.mxu2 %v1572_v5  ;;  %1873 = vmatmul.f32.vlgmr.msrb.gmra.mxu3 %v6552_v62  ;;  %v1534_v29 = vsel %vm8144_vm10, %v1527_v58, 0  ;;  %vm3361_vm10 = vcmask 982016   ;;  %vm3237_vm5 = vcmask 826368  }
 0x27c   : > { %2021 = vmatpush.msra.mxu2 %v6257_v42  ;;  %2082 = vmatpush.msra.mxu3 %v6306_v55  ;;  %v1425_v6 = vadd.f32 %v1417_v3, %v1398_v35  ;;  %v8189_v42 = vand.u32 4294901760, %v6302_v56 }
 0x27d   : > { %v1424_v40 = vadd.f32 %v1419_v28, %v1397_v16  ;;  %2186 = vmatpush.msrb.mxu1 %v6272_v20  ;;  %2123 = vmatpush.msrb.mxu0 %v8188_v46 }
 0x27e   : > { %2024 = vmatpush.msra.mxu2 %v6270_v15  ;;  %2084 = vmatpush.msra.mxu3 %v6317_v27  ;;  %v1452_v14 = vadd.f32 %v1444_v9, %v1425_v6 }
 0x27f   : > { %2188 = vmatpush.msrb.mxu1 %v6287_v32  ;;  %2127 = vmatpush.msrb.mxu0 %v8189_v42  ;;  %v1451_v15 = vadd.f32 %v1446_v53, %v1424_v40  ;;  %v1526_v32 = vld [vmem:[%s8074_s12 + $0x110] sm:$0xff] }
 0x280   : > { %2027 = vmatpush.msra.mxu2 %v6285_v31  ;;  %2086 = vmatpush.msra.mxu3 %v6335_v63  ;;  %v6602_v31 = vand.u32 4294901760, %v1534_v29 }
 0x281   : > { %2190 = vmatpush.msrb.mxu1 %v6306_v55  ;;  %v1471_v20 = vpop.permute.xlu0 %1470  ;;  %2131 = vmatpush.msrb.mxu0 %v8190_v8 }
 0x282   : > { %v1473_v52 = vsel %vm755_vm9, %v6543_v37, %v1471_v20  ;;  %2030 = vmatpush.msra.mxu2 %v6302_v56  ;;  %2088 = vmatpush.msra.mxu3 %v6349_v57  ;;  %v6611_v37 = vand.u32 4294901760, %v1526_v32  ;;  %v1479_v56 = vadd.f32 %v1471_v20, %v1452_v14  ;;  %vm2875_vm9 = vcmask 15360  }
 0x283   : > { %v1478_v55 = vadd.f32 %v1473_v52, %v1451_v15  ;;  %2192 = vmatpush.msrb.mxu1 %v6317_v27  ;;  %1836 = vmatmul.f32.vlgmr.msrb.gmra.mxu2 %v6552_v62  ;;  %v1524_v27 = vld [vmem:[%s8074_s12 + $0x100] sm:$0xff]  ;;  %v6625_v62 = vand.u32 4294901760, %v1525_v22 }
 0x284   : > { %2033 = vmatpush.msra.mxu2 %v6322_v59  ;;  %2090 = vmatpush.msra.mxu3 %v6370_v41  ;;  %v6623_v59 = vsub.f32 %v1534_v29, %v6602_v31  ;;  %v1488_v19 = vadd.f32 %v6541_v43, %v1479_v56 }
 0x285   : > { %v1487_v36 = vadd.f32 %v6541_v43, %v1478_v55  ;;  %2194 = vmatpush.msrb.mxu1 %v6335_v63  ;;  %2135 = vmatpush.msrb.mxu0 %v8191_v38  ;;  %v6633_v63 = vsub.f32 %v1526_v32, %v6611_v37  ;;  %v8193_v43 = vand.u32 4294901760, %v6388_v54 }
 0x286   : > { %2036 = vmatpush.msra.mxu2 %v6333_v47  ;;  %2092 = vmatpush.msra.mxu3 %v6392_v18  ;;  %v6635_v47 = vand.u32 4294901760, %v1524_v27  ;;  %v1491_v3 = vmax.f32 %v1488_v19, 0.0 }
 0x287   : > { %v1490_v33 = vmax.f32 %v1487_v36, 0.0  ;;  %2196 = vmatpush.msrb.mxu1 %v6349_v57  ;;  %2139 = vmatpush.msrb.mxu0 %v1956_v10  ;;  %v8192_v57 = vand.u32 4294901760, %v6368_v17  ;;  %v6647_v10 = vsub.f32 %v1525_v22, %v6625_v62 }
 0x288   : > { %2039 = vmatpush.msra.mxu2 %v6347_v12  ;;  %2094 = vmatpush.msra.mxu3 %v6403_v24  ;;  %v2261_v12 = vand.u32 4294901760, %v6623_v59  ;;  %v1530_v2 = vsel %vm8141_vm11, %v1491_v3, 0  ;;  %vm3396_vm11 = vcmask 965632  }
 0x289   : > { %v6638_v61 = vand.u32 4294901760, %v1490_v33  ;;  %2198 = vmatpush.msrb.mxu1 %v6370_v41  ;;  %2143 = vmatpush.msrb.mxu0 %v8192_v57  ;;  %v6657_v41 = vsub.f32 %v1524_v27, %v6635_v47  ;;  %v2273_v13 = vand.u32 4294901760, %v6647_v10  ;;  %v2238_v16 = vand.u32 4294901760, %v1530_v2 }
 0x28a   : > { %2042 = vmatpush.msra.mxu2 %v6368_v17  ;;  %2096 = vmatpush.msra.mxu3 %v6421_v30  ;;  %v2267_v17 = vand.u32 4294901760, %v6633_v63 }
 0x28b   : > { %v1910_v4 = vsub.f32 %v1490_v33, %v6638_v61  ;;  %2200 = vmatpush.msrb.mxu1 %v6392_v18  ;;  %2147 = vmatpush.msrb.mxu0 %v8193_v43  ;;  %v8194_v18 = vand.u32 4294901760, %v6408_v25  ;;  %v2279_v5 = vand.u32 4294901760, %v6657_v41 }
 0x28c   : > { %2015 = vmatmul.f32.vlgmr.msra.gmra.mxu1 %v6638_v61  ;;  %2045 = vmatpush.msra.mxu2 %v6388_v54  ;;  %v2262_v54 = vsub.f32 %v6623_v59, %v2261_v12 }
 0x28d   : > { %2098 = vmatpush.msra.mxu3 %v6437_v1  ;;  %2202 = vmatpush.msrb.mxu1 %v6403_v24  ;;  %v1911_v48 = vand.u32 4294901760, %v1910_v4  ;;  %v8195_v24 = vand.u32 4294901760, %v6417_v49 }
 0x28e   : > { %2048 = vmatpush.msra.mxu2 %v6408_v25  ;;  %2151 = vmatpush.msrb.mxu0 %v8194_v18  ;;  %v2268_v25 = vsub.f32 %v6633_v63, %v2267_v17 }
 0x28f   : > { %2100 = vmatpush.msra.mxu3 %v6458_v45  ;;  %2204 = vmatpush.msrb.mxu1 %v6421_v30  ;;  %v1912_v34 = vsub.f32 %v1910_v4, %v1911_v48  ;;  %v2274_v30 = vsub.f32 %v6647_v10, %v2273_v13 }
 0x290   : > { %2051 = vmatpush.msra.mxu2 %v6417_v49  ;;  %2155 = vmatpush.msrb.mxu0 %v8195_v24  ;;  %v2263_v49 = vand.u32 4294901760, %v2262_v54  ;;  %v2269_v35 = vand.u32 4294901760, %v2268_v25 }
 0x291   : > { %2102 = vmatpush.msra.mxu3 %v6478_v50  ;;  %2206 = vmatpush.msrb.mxu1 %v6437_v1  ;;  %v1913_v39 = vand.u32 4294901760, %v1912_v34  ;;  %v2280_v1 = vsub.f32 %v6657_v41, %v2279_v5 }
 0x292   : > { %2054 = vmatpush.msra.mxu2 %v6433_v51  ;;  %2159 = vmatpush.msrb.mxu0 %v1986_v7  ;;  %v8196_v51 = vand.u32 4294901760, %v6454_v44  ;;  %v2275_v7 = vand.u32 4294901760, %v2274_v30 }
 0x293   : > { %2104 = vmatpush.msra.mxu3 %v6489_v23  ;;  %2208 = vmatpush.msrb.mxu1 %v6458_v45  ;;  %v2239_v45 = vsub.f32 %v1530_v2, %v2238_v16  ;;  %v2281_v28 = vand.u32 4294901760, %v2280_v1 }
 0x294   : > { %2108 = vmatmul.f32.vlgmr.msra.gmra.mxu3 %v1911_v48  ;;  %1914 = vmatmul.f32.vlgmr.msra.gmra.mxu0 %v1913_v39 }
 0x295   : > { %2057 = vmatpush.msra.mxu2 %v6454_v44  ;;  %2210 = vmatpush.msrb.mxu1 %v6478_v50  ;;  %v2240_v44 = vand.u32 4294901760, %v2239_v45 }
 0x296   : > { %2264 = vmatpush.msrb.mxu3 %v2263_v49  ;;  %2163 = vmatpush.msrb.mxu0 %v8196_v51 }
 0x297   : > { %2060 = vmatpush.msra.mxu2 %v6472_v26  ;;  %2212 = vmatpush.msrb.mxu1 %v6489_v23  ;;  %v8197_v26 = vand.u32 4294901760, %v6500_v21  ;;  %v2241_v50 = vsub.f32 %v2239_v45, %v2240_v44 }
 0x298   : > { %2270 = vmatpush.msrb.mxu3 %v2269_v35  ;;  %2167 = vmatpush.msrb.mxu0 %v1998_v60 }
 0x299   : > { %2214 = vmatmul.f32.vlgmr.msrb.gmra.mxu1 %v6638_v61  ;;  %2063 = vmatpush.msra.mxu2 %v6494_v0 }
 0x29a   : > { %2276 = vmatpush.msrb.mxu3 %v2275_v7  ;;  %2331 = vmatpush.msra.mxu1 %v6602_v31 }
 0x29b   : > { %2171 = vmatpush.msrb.mxu0 %v2004_v11  ;;  %2066 = vmatpush.msra.mxu2 %v6500_v21  ;;  %v2242_v21 = vand.u32 4294901760, %v2241_v50 }
 0x29c   : > { %2282 = vmatpush.msrb.mxu3 %v2281_v28  ;;  %2333 = vmatpush.msra.mxu1 %v6611_v37 }
 0x29d   : > { %2069 = vmatmul.f32.vlgmr.msra.gmra.mxu2 %v1910_v4  ;;  %2175 = vmatpush.msrb.mxu0 %v8197_v26 }
 0x29e   : > { %2284 = vmatmul.f32.vlgmr.msrb.gmra.mxu3 %v2238_v16  ;;  %2177 = vmatmul.f32.vlgmr.msrb.gmra.mxu0 %v6638_v61 }
 0x29f   : > { %2231 = vmatpush.msrb.mxu2 %v6602_v31  ;;  %2335 = vmatpush.msra.mxu1 %v6625_v62 }
 0x2a0   : > { %2391 = vmatpush.msra.mxu3 %v6602_v31  ;;  %2302 = vmatpush.msra.mxu0 %v6623_v59  ;;  %v2403_v31 = vld [vmem:[%s8072_s10] sm:$0xff] }
 0x2a1   : > { %2233 = vmatpush.msrb.mxu2 %v6611_v37  ;;  %2337 = vmatpush.msra.mxu1 %v6635_v47 }
 0x2a2   : > { %2393 = vmatpush.msra.mxu3 %v6611_v37  ;;  %2305 = vmatpush.msra.mxu0 %v6633_v63  ;;  %v2412_v37 = vsel %vm2410_vm12, %v2403_v31, 0 }
 0x2a3   : > { %2341 = vmatmul.f32.vlgmr.msra.gmra.mxu1 %v2240_v44  ;;  %2235 = vmatpush.msrb.mxu2 %v6625_v62  ;;  %v2431_v38 = vand.u32 4294901760, %v2412_v37 }
 0x2a4   : > { %2395 = vmatpush.msra.mxu3 %v6625_v62  ;;  %2308 = vmatpush.msra.mxu0 %v6647_v10 }
 0x2a5   : > { %2237 = vmatpush.msrb.mxu2 %v6635_v47  ;;  %v2432_v63 = vsub.f32 %v2412_v37, %v2431_v38 }
 0x2a6   : > { %2397 = vmatpush.msra.mxu3 %v6635_v47  ;;  %2243 = vmatmul.f32.vlgmr.msrb.gmra.mxu2 %v2242_v21  ;;  %v5658_v21 = vmov 64.0  }
 0x2a7   : > { %2311 = vmatpush.msra.mxu0 %v6657_v41  ;;  %2399 = vmatmul.f32.vlgmr.msra.gmra.mxu3 %v2238_v16  ;;  %v2433_v57 = vand.u32 4294901760, %v2432_v63  ;;  %5628 = vrcp.f32 %v5658_v21 }
 0x2a8   : > { %2314 = vmatmul.f32.vlgmr.msra.gmra.mxu0 %v2239_v45  ;;  %2360 = vmatpush.msra.mxu2 %v2261_v12 }
 0x2a9   : > { %v2434_v43 = vsub.f32 %v2432_v63, %v2433_v57 }
 0x2aa   : > { %2364 = vmatpush.msra.mxu2 %v2267_v17 }
 0x2ab   : > { %v2435_v48 = vand.u32 4294901760, %v2434_v43 }
 0x2ac   : > { %2368 = vmatpush.msra.mxu2 %v2273_v13 }
 0x2ae   : > { %2372 = vmatpush.msra.mxu2 %v2279_v5  ;;  %v2408_v5 = vpop.permute.xlu1 %2407 }
 0x2af   : > { %2374 = vmatmul.f32.vlgmr.msra.gmra.mxu2 %v2238_v16 }
 0x2f2   : > { %v1729_v11 = vpop.f32.mrf.mxu0 }
 0x2f4   : > { %v1768_v9 = vpop.f32.mrf.mxu1 }
 0x2f6   : > { %v1675_v23 = vpop.f32.mrf.mxu3 }
 0x2fe   : > { %v1574_v60 = vpop.f32.mrf.mxu2  ;;  %v1874_v42 = vpop.f32.mrf.mxu3 }
 0x2ff   : > { %v1676_v0 = vadd.f32 %v1675_v23, %v1574_v60  ;;  %v5629_v60 = vpop.eup %5628  ;;  %v2576_v23 = vld [vmem:[%s8075_s13] sm:$0x3] }
 0x300   : > { %vm2570_vm14 = vweird.f32 %v5629_v60 }
 0x301   : > { %v1730_v58 = vadd.f32 %v1729_v11, %v1676_v0  ;;  %v2566_v0 = vmul.f32 64.0, %v5629_v60  ;;  %v2578_v11 = vsel %vm2410_vm12, %v2576_v23, 0 }
 0x303   : > { %v1769_v46 = vadd.f32 %v1768_v9, %v1730_v58  ;;  %v2567_v58 = vsub.f32 1.0, %v2566_v0  ;;  %v2597_v9 = vand.u32 4294901760, %v2578_v11 }
 0x306   : > { %v1837_v40 = vpop.f32.mrf.mxu2 }
 0x307   : > { %v1838_v6 = vadd.f32 %v1837_v40, %v1769_v46  ;;  %v2568_v40 = vmul.f32 %v5629_v60, %v2567_v58  ;;  %v2598_v46 = vsub.f32 %v2578_v11, %v2597_v9 }
 0x309   : > { %v1875_v53 = vadd.f32 %v1874_v42, %v1838_v6  ;;  %v2016_v20 = vpop.f32.mrf.mxu1  ;;  %v2569_v6 = vadd.f32 %v5629_v60, %v2568_v40  ;;  %v2599_v42 = vand.u32 4294901760, %v2598_v46 }
 0x311   : > { %v1915_v29 = vpop.f32.mrf.mxu0 }
 0x312   : > { %v1916_v15 = vadd.f32 %v1915_v29, %v1875_v53  ;;  %v2571_v29 = vsel %vm2570_vm14, %v5629_v60, %v2569_v6  ;;  %v2600_v53 = vsub.f32 %v2598_v46, %v2599_v42 }
 0x314   : > { %v2017_v8 = vadd.f32 %v2016_v20, %v1916_v15 }
 0x316   : > { %v2215_v56 = vpop.f32.mrf.mxu1 }
 0x317   : > { %v2109_v32 = vpop.f32.mrf.mxu3 }
 0x31b   : > { %v2178_v55 = vpop.f32.mrf.mxu0 }
 0x320   : > { %v2070_v52 = vpop.f32.mrf.mxu2  ;;  %v2342_v12 = vpop.f32.mrf.mxu1 }
 0x321   : > { %v2071_v14 = vadd.f32 %v2070_v52, %v2017_v8  ;;  %v2285_v62 = vpop.f32.mrf.mxu3  ;;  %v2601_v52 = vand.u32 4294901760, %v2600_v53 }
 0x323   : > { %v2110_v22 = vadd.f32 %v2109_v32, %v2071_v14 }
 0x325   : > { %v2179_v36 = vadd.f32 %v2178_v55, %v2110_v22  ;;  %v2315_v19 = vpop.f32.mrf.mxu0 }
 0x327   : > { %v2216_v27 = vadd.f32 %v2215_v56, %v2179_v36 }
 0x329   : > { %v2244_v59 = vpop.f32.mrf.mxu2 }
 0x32a   : > { %v2245_v33 = vadd.f32 %v2244_v59, %v2216_v27  ;;  %v2400_v41 = vpop.f32.mrf.mxu3  ;;  %v5659_v59 = vmov 0.0  }
 0x32b   : > { %3205 = vst.msk [vmem:[#allocation2] sm:$0xf] %vm3204_vm7, %v5659_v59  ;;  %vm3300_vm7 = vcmask 859136  }
 0x32c   : > { %v2286_v47 = vadd.f32 %v2285_v62, %v2245_v33 }
 0x32e   : > { %v2316_v61 = vadd.f32 %v2315_v19, %v2286_v47  ;;  %v4037_v19 = vpop.permute.xlu1 %4036 }
 0x330   : > { %v2343_v10 = vadd.f32 %v2342_v12, %v2316_v61 }
 0x332   : > { %v2375_v4 = vpop.f32.mrf.mxu2 }
 0x333   : > { %v2376_v17 = vadd.f32 %v2375_v4, %v2343_v10  ;;  %v2727_v10 = vld [vmem:[%s8076_s14] sm:$0xff] }
 0x335   : > { %v2401_v3 = vadd.f32 %v2400_v41, %v2376_v17  ;;  %v2877_v17 = vsel %vm2875_vm9, %v2727_v10, 0  ;;  %v5528_v10 = vld [vmem:[%s8077_s15 + $0x2] sm:$0x3]  ;;  %vm8143_vm9 = vcmask 842752  }
 0x336   : > { %3245 = vrot.lane.b32.xlu1 %v5528_v10, %s8103_s25  ;;  %s8201_s25 = smov 120  }
 0x337   : > { %v2429_v18 = vand.u32 4294901760, %v2401_v3 }
 0x339   : > { %v2456_v54 = vsub.f32 %v2401_v3, %v2429_v18  ;;  %2430 = vmatpush.msrb.mxu0 %v2429_v18  ;;  %2506 = vmatpush.msrb.mxu3 %v2429_v18 }
 0x33a   : > { %2436 = vmatmul.f32.vlgmr.msrb.gmra.mxu0 %v2435_v48  ;;  %2510 = vmatmul.f32.vlgmr.msrb.gmra.mxu3 %v2433_v57 }
 0x33b   : > { %2483 = vmatpush.msrb.mxu2 %v2456_v54  ;;  %v2457_v13 = vand.u32 4294901760, %v2456_v54 }
 0x33c   : > { %2486 = vmatmul.f32.vlgmr.msrb.gmra.mxu2 %v2432_v63 }
 0x33d   : > { %2532 = vmatpush.msra.mxu0 %v2457_v13  ;;  %v2458_v34 = vsub.f32 %v2456_v54, %v2457_v13  ;;  %v6745_v54 = vand.u32 4294901760, %v2877_v17  ;;  %v4039_v13 = vpop.permute.xlu1 %4038 }
 0x33f   : > { %v2459_v24 = vand.u32 4294901760, %v2458_v34 }
 0x341   : > { %2460 = vmatpush.msrb.mxu1 %v2459_v24 }
 0x342   : > { %2462 = vmatmul.f32.vlgmr.msrb.gmra.mxu1 %v2431_v38  ;;  %2534 = vmatmul.f32.vlgmr.msra.gmra.mxu0 %v2431_v38 }
 0x343   : > { %2554 = vmatpush.msra.mxu1 %v2429_v18 }
 0x34a   : > { %2556 = vmatmul.f32.vlgmr.msra.gmra.mxu1 %v2431_v38 }
 0x3b7   : > { %v2437_v25 = vpop.f32.mrf.mxu0 }
 0x3b8   : > { %v2438_v2 = vadd.f32 %v2437_v25, %v2408_v5 }
 0x3bd   : > { %v2511_v16 = vpop.f32.mrf.mxu3 }
 0x3bf   : > { %v2463_v39 = vpop.f32.mrf.mxu1  ;;  %v2487_v49 = vpop.f32.mrf.mxu2 }
 0x3c0   : > { %v2464_v30 = vadd.f32 %v2463_v39, %v2438_v2  ;;  %v2535_v1 = vpop.f32.mrf.mxu0  ;;  %v6749_v2 = vsub.f32 %v2877_v17, %v6745_v54 }
 0x3c2   : > { %v2488_v35 = vadd.f32 %v2487_v49, %v2464_v30 }
 0x3c4   : > { %v2512_v51 = vadd.f32 %v2511_v16, %v2488_v35 }
 0x3c6   : > { %v2536_v7 = vadd.f32 %v2535_v1, %v2512_v51  ;;  %v6752_v51 = vand.u32 4294901760, %v6749_v2 }
 0x3c7   : > { %v2557_v45 = vpop.f32.mrf.mxu1 }
 0x3c8   : > { %v2558_v28 = vadd.f32 %v2557_v45, %v2536_v7  ;;  %v2903_v60 = vsub.f32 %v6749_v2, %v6752_v51 }
 0x3ca   : > { %v6731_v44 = vmax.f32 %v2558_v28, 0.0 }
 0x3cc   : > { %v2573_v26 = vsel %vm8140_vm13, %v6731_v44, -inf  ;;  %v2562_v50 = vsel %vm8140_vm13, %v6731_v44, 0.0 }
 0x3cd   : > { %2574 = vmax.xlane.f32.xlu0 %v2573_v26  ;;  %2563 = vadd.xlane.f32.xlu2 %v2562_v50  ;;  %v4042_v26 = vsel %vm643_vm4, %v4037_v19, %v4039_v13  ;;  %v4041_v50 = vpop.permute.xlu1 %4040 }
 0x3ce   : > { %v4043_v23 = vsel %vm643_vm4, %v4039_v13, %v4041_v50  ;;  %v4047_v11 = vsel %vm557_vm0, %v4042_v26, 0  ;;  %v5533_v13 = vld [vmem:[%s8077_s15 + $0xc] sm:$0x3] }
 0x440   : > { %v2575_v15 = vpop.xlane.xlu0 %2574  ;;  %v2564_v20 = vpop.xlane.xlu2 %2563 }
 0x441   : > { %v2743_v8 = vand.u32 4294901760, %v2575_v15  ;;  %v2572_v32 = vmul.f32 %v2571_v29, %v2564_v20  ;;  %v4068_v29 = vand.u32 4294901760, %v4047_v11 }
 0x443   : > { %v2770_v31 = vsub.f32 %v2575_v15, %v2743_v8  ;;  %v2595_v14 = vand.u32 4294901760, %v2572_v32 }
 0x445   : > { %v2771_v55 = vand.u32 4294901760, %v2770_v31  ;;  %v2622_v22 = vsub.f32 %v2572_v32, %v2595_v14  ;;  %2596 = vmatpush.msra.mxu2 %v2595_v14  ;;  %2672 = vmatpush.msrb.mxu1 %v2595_v14 }
 0x446   : > { %2602 = vmatmul.f32.vlgmr.msra.gmra.mxu2 %v2601_v52  ;;  %2676 = vmatmul.f32.vlgmr.msrb.gmra.mxu1 %v2599_v42 }
 0x447   : > { %v2772_v37 = vsub.f32 %v2770_v31, %v2771_v55  ;;  %v2623_v56 = vand.u32 4294901760, %v2622_v22  ;;  %2649 = vmatpush.msrb.mxu0 %v2622_v22 }
 0x448   : > { %2652 = vmatmul.f32.vlgmr.msrb.gmra.mxu0 %v2598_v46 }
 0x449   : > { %2744 = vmatpush.msra.mxu0 %v2743_v8  ;;  %v2773_v36 = vand.u32 4294901760, %v2772_v37  ;;  %v2624_v38 = vsub.f32 %v2622_v22, %v2623_v56  ;;  %2698 = vmatpush.msrb.mxu2 %v2623_v56 }
 0x44b   : > { %2846 = vmatpush.msrb.mxu0 %v2771_v55  ;;  %2797 = vmatpush.msra.mxu2 %v2770_v31  ;;  %v2625_v27 = vand.u32 4294901760, %v2624_v38 }
 0x44c   : > { %2774 = vmatpush.msra.mxu1 %v2773_v36 }
 0x44d   : > { %2626 = vmatpush.msra.mxu3 %v2625_v27 }
 0x44e   : > { %2868 = vmatpush.msrb.mxu1 %v2743_v8  ;;  %2628 = vmatmul.f32.vlgmr.msra.gmra.mxu3 %v2597_v9 }
 0x44f   : > { %2700 = vmatmul.f32.vlgmr.msrb.gmra.mxu2 %v2597_v9  ;;  %2720 = vmatpush.msrb.mxu3 %v2595_v14 }
 0x450   : > { %2776 = vmatmul.f32.vlgmr.msra.gmra.mxu1 %v2597_v9  ;;  %2750 = vmatmul.f32.vlgmr.msra.gmra.mxu0 %v2601_v52  ;;  %v4095_v52 = vsub.f32 %v4047_v11, %v4068_v29  ;;  %v5543_v11 = vld [vmem:[%s8077_s15 + $0x20] sm:$0x3] }
 0x451   : > { %2820 = vmatpush.msra.mxu3 %v2743_v8 }
 0x452   : > { %v4096_v37 = vand.u32 4294901760, %v4095_v52 }
 0x454   : > { %v4097_v38 = vsub.f32 %v4095_v52, %v4096_v37 }
 0x456   : > { %2722 = vmatmul.f32.vlgmr.msrb.gmra.mxu3 %v2597_v9 }
 0x457   : > { %2800 = vmatmul.f32.vlgmr.msra.gmra.mxu2 %v2598_v46  ;;  %v2904_v46 = vand.u32 4294901760, %v2903_v60 }
 0x458   : > { %2870 = vmatmul.f32.vlgmr.msrb.gmra.mxu1 %v2597_v9  ;;  %2848 = vmatmul.f32.vlgmr.msrb.gmra.mxu0 %v2597_v9  ;;  %v4049_v9 = vsel %vm557_vm0, %v4043_v23, 0  ;;  %v5546_v23 = vld [vmem:[%s8077_s15 + $0x26] sm:$0x3] }
 0x459   : > { %v6764_v53 = vand.u32 4294901760, %v4049_v9 }
 0x45b   : > { %v4241_v31 = vsub.f32 %v4049_v9, %v6764_v53 }
 0x45d   : > { %v4242_v56 = vand.u32 4294901760, %v4241_v31 }
 0x45e   : > { %2824 = vmatmul.f32.vlgmr.msra.gmra.mxu3 %v2599_v42  ;;  %v4021_v42 = vld [vmem:[%s8064_s2] sm:$0xff] }
 0x45f   : > { %v4045_v8 = vsel %vm790_vm8, %v4021_v42, 0  ;;  %v4243_v27 = vsub.f32 %v4241_v31, %v4242_v56  ;;  %v5549_v42 = vld [vmem:[%s8077_s15 + $0x2c] sm:$0x3] }
 0x460   : > { %v6770_v55 = vand.u32 4294901760, %v4045_v8 }
 0x462   : > { %v6775_v36 = vsub.f32 %v4045_v8, %v6770_v55 }
 0x464   : > { %v4072_v59 = vand.u32 4294901760, %v6775_v36 }
 0x4c3   : > { %v2677_v63 = vpop.f32.mrf.mxu1 }
 0x4c5   : > { %v2653_v33 = vpop.f32.mrf.mxu0 }
 0x4c9   : > { %v2603_v62 = vpop.f32.mrf.mxu2 }
 0x4cd   : > { %v2751_v43 = vpop.f32.mrf.mxu0  ;;  %v2777_v48 = vpop.f32.mrf.mxu1 }
 0x4ce   : > { %v2778_v24 = vadd.f32 %v2777_v48, %v2751_v43  ;;  %v3232_v43 = vld [vmem:[%s8077_s15] sm:$0x3]  ;;  %v5534_v48 = vld [vmem:[%s8077_s15 + $0xe] sm:$0x3] }
 0x4cf   : > { %3234 = vrot.lane.b32.xlu2 %v3232_v43, %s8106_s18  ;;  %s8114_s18 = smov 112  }
 0x4d1   : > { %v2629_v47 = vpop.f32.mrf.mxu3 }
 0x4d2   : > { %v2630_v61 = vadd.f32 %v2629_v47, %v2603_v62  ;;  %v2701_v57 = vpop.f32.mrf.mxu2  ;;  %v4098_v62 = vand.u32 4294901760, %v4097_v38  ;;  %v4051_v47 = vsel %vm557_vm0, %v4041_v50, 0 }
 0x4d4   : > { %v2654_v12 = vadd.f32 %v2653_v33, %v2630_v61  ;;  %v4244_v33 = vand.u32 4294901760, %v4243_v27  ;;  %v4360_v61 = vand.u32 4294901760, %v4051_v47 }
 0x4d5   : > { %v2849_v35 = vpop.f32.mrf.mxu0  ;;  %v2871_v7 = vpop.f32.mrf.mxu1 }
 0x4d6   : > { %v2678_v4 = vadd.f32 %v2677_v63, %v2654_v12  ;;  %v4073_v63 = vsub.f32 %v6775_v36, %v4072_v59 }
 0x4d8   : > { %v2702_v41 = vadd.f32 %v2701_v57, %v2678_v4  ;;  %v4074_v19 = vand.u32 4294901760, %v4073_v63  ;;  %v4387_v57 = vsub.f32 %v4051_v47, %v4360_v61 }
 0x4d9   : > { %v2723_v3 = vpop.f32.mrf.mxu3 }
 0x4da   : > { %v2724_v18 = vadd.f32 %v2723_v3, %v2702_v41  ;;  %v2801_v25 = vpop.f32.mrf.mxu2  ;;  %v4388_v12 = vand.u32 4294901760, %v4387_v57  ;;  %v5529_v41 = vld [vmem:[%s8077_s15 + $0x4] sm:$0x3]  ;;  %v5531_v3 = vld [vmem:[%s8077_s15 + $0x8] sm:$0x3] }
 0x4db   : > { %v2802_v49 = vadd.f32 %v2801_v25, %v2778_v24  ;;  %3262 = vrot.lane.b32.xlu1 %v5529_v41, %s8108_s26  ;;  %v5541_v24 = vld [vmem:[%s8077_s15 + $0x1c] sm:$0x3]  ;;  %v5536_v25 = vld [vmem:[%s8077_s15 + $0x12] sm:$0x3]  ;;  %s8122_s26 = smov 111  }
 0x4dc   : > { %v2726_v34 = vmax.f32 %v2724_v18, 0.0  ;;  %v4389_v4 = vsub.f32 %v4387_v57, %v4388_v12  ;;  %v5530_v18 = vld [vmem:[%s8077_s15 + $0x6] sm:$0x3] }
 0x4dd   : > { %3279 = vrot.lane.b32.xlu2 %v5530_v18, %s8112_s29  ;;  %s8127_s29 = smov 120  }
 0x4de   : > { %v3030_v5 = vsel %vm2879_vm15, %v2726_v34, 0  ;;  %v4390_v17 = vand.u32 4294901760, %v4389_v4  ;;  %v5532_v34 = vld [vmem:[%s8077_s15 + $0xa] sm:$0x3] }
 0x4df   : > { %v3047_v39 = vand.u32 4294901760, %v3030_v5  ;;  %3315 = vrot.lane.b32.xlu0 %v5532_v34, %s8118_s17  ;;  %s8133_s17 = smov 119  }
 0x4e1   : > { %v3074_v30 = vsub.f32 %v3030_v5, %v3047_v39  ;;  %v2825_v16 = vpop.f32.mrf.mxu3  ;;  %v5535_v5 = vld [vmem:[%s8077_s15 + $0x10] sm:$0x3] }
 0x4e2   : > { %v2826_v1 = vadd.f32 %v2825_v16, %v2802_v49  ;;  %v5538_v49 = vld [vmem:[%s8077_s15 + $0x16] sm:$0x3]  ;;  %v5545_v16 = vld [vmem:[%s8077_s15 + $0x24] sm:$0x3] }
 0x4e3   : > { %v3075_v28 = vand.u32 4294901760, %v3074_v30  ;;  %3297 = vrot.lane.b32.xlu1 %v5531_v3, %s8105_s30  ;;  %s8120_s30 = smov 117  }
 0x4e4   : > { %v2850_v45 = vadd.f32 %v2849_v35, %v2826_v1 }
 0x4e5   : > { %v3076_v58 = vsub.f32 %v3074_v30, %v3075_v28  ;;  %3333 = vrot.lane.b32.xlu2 %v5533_v13, %s8116_s27  ;;  %s8126_s27 = smov 113  }
 0x4e6   : > { %v2872_v21 = vadd.f32 %v2871_v7, %v2850_v45  ;;  %v5540_v7 = vld [vmem:[%s8077_s15 + $0x1a] sm:$0x3]  ;;  %v5548_v45 = vld [vmem:[%s8077_s15 + $0x2a] sm:$0x3] }
 0x4e7   : > { %v3077_v20 = vand.u32 4294901760, %v3076_v58  ;;  %3368 = vrot.lane.b32.xlu0 %v5535_v5, %s8135_s19 }
 0x4e8   : > { %v2874_v0 = vmax.f32 %v2872_v21, 0.0 }
 0x4ea   : > { %v2881_v40 = vsel %vm2879_vm15, %v2874_v0, 0 }
 0x4eb   : > { %v2898_v6 = vand.u32 4294901760, %v2881_v40  ;;  %3351 = vrot.lane.b32.xlu1 %v5534_v48, %s8183_s23 }
 0x4ed   : > { %v2925_v15 = vsub.f32 %v2881_v40, %v2898_v6  ;;  %2899 = vmatpush.msrb.mxu2 %v2898_v6  ;;  %2975 = vmatpush.msra.mxu1 %v2898_v6 }
 0x4ee   : > { %2905 = vmatmul.f32.vlgmr.msrb.gmra.mxu2 %v2904_v46  ;;  %2979 = vmatmul.f32.vlgmr.msra.gmra.mxu1 %v6752_v51 }
 0x4ef   : > { %3078 = vmatpush.msrb.mxu1 %v3077_v20  ;;  %2952 = vmatpush.msra.mxu0 %v2925_v15  ;;  %v2926_v32 = vand.u32 4294901760, %v2925_v15  ;;  %v5547_v20 = vld [vmem:[%s8077_s15 + $0x28] sm:$0x3] }
 0x4f0   : > { %2955 = vmatmul.f32.vlgmr.msra.gmra.mxu0 %v6749_v2  ;;  %3385 = vrot.lane.b32.xlu2 %v5536_v25, %s8122_s26  ;;  %s8138_s26 = smov 122  }
 0x4f1   : > { %3172 = vmatpush.msra.mxu1 %v3047_v39  ;;  %3048 = vmatpush.msrb.mxu0 %v3047_v39  ;;  %v2927_v14 = vsub.f32 %v2925_v15, %v2926_v32 }
 0x4f2   : > { %3001 = vmatpush.msra.mxu2 %v2926_v32  ;;  %3421 = vrot.lane.b32.xlu0 %v5538_v49, %s8126_s27  ;;  %s8129_s27 = smov 115  }
 0x4f3   : > { %3150 = vmatpush.msra.mxu0 %v3075_v28  ;;  %v2928_v22 = vand.u32 4294901760, %v2927_v14 }
 0x4f4   : > { %3101 = vmatpush.msrb.mxu2 %v3074_v30 }
 0x4f5   : > { %2929 = vmatpush.msrb.mxu3 %v2928_v22 }
 0x4f6   : > { %2931 = vmatmul.f32.vlgmr.msrb.gmra.mxu3 %v6745_v54  ;;  %3003 = vmatmul.f32.vlgmr.msra.gmra.mxu2 %v6745_v54 }
 0x4f7   : > { %3023 = vmatpush.msra.mxu3 %v2898_v6  ;;  %3080 = vmatmul.f32.vlgmr.msrb.gmra.mxu1 %v6745_v54 }
 0x4f8   : > { %3054 = vmatmul.f32.vlgmr.msrb.gmra.mxu0 %v2904_v46  ;;  %4069 = vmatpush.msra.mxu2 %v4068_v29 }
 0x4f9   : > { %3124 = vmatpush.msrb.mxu3 %v3047_v39  ;;  %4122 = vmatpush.msrb.mxu0 %v4095_v52  ;;  %v5539_v39 = vld [vmem:[%s8077_s15 + $0x18] sm:$0x3] }
 0x4fa   : > { %4145 = vmatpush.msrb.mxu1 %v4068_v29  ;;  %3457 = vrot.lane.b32.xlu0 %v5540_v7, %s8129_s27  ;;  %s8202_s27 = smov 118  }
 0x4fe   : > { %3025 = vmatmul.f32.vlgmr.msra.gmra.mxu3 %v6745_v54  ;;  %3104 = vmatmul.f32.vlgmr.msrb.gmra.mxu2 %v6749_v2  ;;  %v5544_v2 = vld [vmem:[%s8077_s15 + $0x22] sm:$0x3] }
 0x4ff   : > { %3174 = vmatmul.f32.vlgmr.msra.gmra.mxu1 %v6745_v54  ;;  %4171 = vmatpush.msrb.mxu2 %v4096_v37  ;;  %v5550_v37 = vld [vmem:[%s8077_s15 + $0x2e] sm:$0x3] }
 0x500   : > { %3152 = vmatmul.f32.vlgmr.msra.gmra.mxu0 %v6745_v54  ;;  %4099 = vmatpush.msra.mxu3 %v4098_v62  ;;  %v5537_v54 = vld [vmem:[%s8077_s15 + $0x14] sm:$0x3] }
 0x501   : > { %4215 = vmatpush.msra.mxu0 %v6764_v53  ;;  %4245 = vmatpush.msra.mxu1 %v4244_v33 }
 0x502   : > { %3403 = vrot.lane.b32.xlu1 %v5537_v54, %s8114_s18  ;;  %s8124_s18 = smov 114   ;;  %3505 = vrot.lane.b32.xlu0 %v5543_v11, %s8133_s17  ;;  %s8199_s17 = smov 127  }
 0x503   : > { %3439 = vrot.lane.b32.xlu2 %v5539_v39, %s8124_s18  ;;  %s8131_s18 = smov 118  }
 0x506   : > { %3128 = vmatmul.f32.vlgmr.msrb.gmra.mxu3 %v6752_v51  ;;  %4075 = vmatmul.f32.vlgmr.msra.gmra.mxu2 %v4074_v19  ;;  %v5542_v51 = vld [vmem:[%s8077_s15 + $0x1e] sm:$0x3] }
 0x507   : > { %4149 = vmatmul.f32.vlgmr.msrb.gmra.mxu1 %v4072_v59  ;;  %4193 = vmatpush.msrb.mxu3 %v4068_v29 }
 0x508   : > { %4268 = vmatpush.msra.mxu2 %v4241_v31  ;;  %4339 = vmatpush.msrb.mxu1 %v6764_v53 }
 0x509   : > { %4125 = vmatmul.f32.vlgmr.msrb.gmra.mxu0 %v6775_v36 }
 0x50a   : > { %4317 = vmatpush.msrb.mxu0 %v4242_v56  ;;  %3473 = vrot.lane.b32.xlu1 %v5541_v24, %s8120_s30  ;;  %s8198_s30 = smov 126  }
 0x50b   : > { %3489 = vrot.lane.b32.xlu2 %v5542_v51, %s8131_s18  ;;  %3570 = vrot.lane.b32.xlu0 %v5547_v20, %s8139_s20  ;;  %s8203_s18 = smov 119  }
 0x50e   : > { %4101 = vmatmul.f32.vlgmr.msra.gmra.mxu3 %v6770_v55  ;;  %4173 = vmatmul.f32.vlgmr.msrb.gmra.mxu2 %v6770_v55 }
 0x50f   : > { %4291 = vmatpush.msra.mxu3 %v6764_v53  ;;  %4247 = vmatmul.f32.vlgmr.msra.gmra.mxu1 %v6770_v55 }
 0x510   : > { %4361 = vmatpush.msrb.mxu2 %v4360_v61  ;;  %4437 = vmatpush.msra.mxu1 %v4360_v61 }
 0x511   : > { %4221 = vmatmul.f32.vlgmr.msra.gmra.mxu0 %v4074_v19 }
 0x512   : > { %4414 = vmatpush.msra.mxu0 %v4387_v57  ;;  %3521 = vrot.lane.b32.xlu1 %v5544_v2, %s8127_s29  ;;  %s8137_s29 = smov 125  }
 0x513   : > { %3554 = vrot.lane.b32.xlu2 %v5546_v23, %s8138_s26  ;;  %3618 = vrot.lane.b32.xlu0 %v5550_v37, %s8199_s17 }
 0x516   : > { %4195 = vmatmul.f32.vlgmr.msrb.gmra.mxu3 %v6770_v55  ;;  %4271 = vmatmul.f32.vlgmr.msra.gmra.mxu2 %v6775_v36 }
 0x517   : > { %4463 = vmatpush.msra.mxu2 %v4388_v12  ;;  %4391 = vmatpush.msrb.mxu3 %v4390_v17 }
 0x518   : > { %4341 = vmatmul.f32.vlgmr.msrb.gmra.mxu1 %v6770_v55 }
 0x519   : > { %4319 = vmatmul.f32.vlgmr.msrb.gmra.mxu0 %v6770_v55 }
 0x51a   : > { %3537 = vrot.lane.b32.xlu1 %v5545_v16, %s5673_s0 }
 0x51b   : > { %3602 = vrot.lane.b32.xlu2 %v5549_v42, %s8198_s30 }
 0x51e   : > { %4295 = vmatmul.f32.vlgmr.msra.gmra.mxu3 %v4072_v59  ;;  %4367 = vmatmul.f32.vlgmr.msrb.gmra.mxu2 %v4074_v19 }
 0x51f   : > { %4485 = vmatpush.msra.mxu3 %v4360_v61 }
 0x520   : > { %4441 = vmatmul.f32.vlgmr.msra.gmra.mxu1 %v4072_v59 }
 0x521   : > { %4417 = vmatmul.f32.vlgmr.msra.gmra.mxu0 %v6775_v36  ;;  %v4026_v36 = vpop.permute.xlu1 %4025 }
 0x522   : > { %3586 = vrot.lane.b32.xlu1 %v5548_v45, %s8137_s29 }
 0x526   : > { %4393 = vmatmul.f32.vlgmr.msrb.gmra.mxu3 %v6770_v55  ;;  %4465 = vmatmul.f32.vlgmr.msra.gmra.mxu2 %v6770_v55 }
 0x52e   : > { %4487 = vmatmul.f32.vlgmr.msra.gmra.mxu3 %v6770_v55 }
 0x56b   : > { %v2980_v35 = vpop.f32.mrf.mxu1 }
 0x56d   : > { %v2956_v30 = vpop.f32.mrf.mxu0 }
 0x571   : > { %v2906_v1 = vpop.f32.mrf.mxu2 }
 0x574   : > { %v3081_v60 = vpop.f32.mrf.mxu1 }
 0x575   : > { %v3055_v28 = vpop.f32.mrf.mxu0 }
 0x579   : > { %v2932_v26 = vpop.f32.mrf.mxu3  ;;  %v3004_v50 = vpop.f32.mrf.mxu2 }
 0x57a   : > { %v2933_v21 = vadd.f32 %v2932_v26, %v2906_v1 }
 0x57c   : > { %v2957_v0 = vadd.f32 %v2956_v30, %v2933_v21  ;;  %v3175_v15 = vpop.f32.mrf.mxu1 }
 0x57d   : > { %v3153_v29 = vpop.f32.mrf.mxu0 }
 0x57e   : > { %v2981_v58 = vadd.f32 %v2980_v35, %v2957_v0 }
 0x580   : > { %v3005_v9 = vadd.f32 %v3004_v50, %v2981_v58 }
 0x581   : > { %v3026_v40 = vpop.f32.mrf.mxu3  ;;  %v3105_v46 = vpop.f32.mrf.mxu2 }
 0x582   : > { %v3027_v6 = vadd.f32 %v3026_v40, %v3005_v9 }
 0x584   : > { %v3056_v53 = vadd.f32 %v3055_v28, %v3027_v6  ;;  %v4150_v38 = vpop.f32.mrf.mxu1 }
 0x586   : > { %v3082_v8 = vadd.f32 %v3081_v60, %v3056_v53  ;;  %v4126_v22 = vpop.f32.mrf.mxu0  ;;  %v6910_v53 = vpop.permute.xlu1 %3245 }
 0x588   : > { %v3106_v32 = vadd.f32 %v3105_v46, %v3082_v8 }
 0x589   : > { %v3129_v52 = vpop.f32.mrf.mxu3  ;;  %v4076_v31 = vpop.f32.mrf.mxu2 }
 0x58a   : > { %v3130_v14 = vadd.f32 %v3129_v52, %v3106_v32  ;;  %v4077_v59 = vadd.f32 %v4076_v31, %v4026_v36 }
 0x58c   : > { %v3154_v55 = vadd.f32 %v3153_v29, %v3130_v14  ;;  %v4248_v4 = vpop.f32.mrf.mxu1 }
 0x58e   : > { %v3176_v56 = vadd.f32 %v3175_v15, %v3154_v55  ;;  %v4222_v61 = vpop.f32.mrf.mxu0  ;;  %v6912_v15 = vpop.permute.xlu2 %3234 }
 0x58f   : > { %v4223_v17 = vadd.f32 %v4222_v61, %v4026_v36  ;;  %v6914_v20 = vpop.permute.xlu1 %3262 }
 0x590   : > { %v5527_v27 = vmul.f32 -1.442695, %v3176_v56 }
 0x591   : > { %v4102_v62 = vpop.f32.mrf.mxu3  ;;  %v4174_v33 = vpop.f32.mrf.mxu2  ;;  %v4249_v18 = vadd.f32 %v4248_v4, %v4223_v17 }
 0x592   : > { %5630 = vpow2.f32 %v5527_v27  ;;  %v4103_v63 = vadd.f32 %v4102_v62, %v4077_v59 }
 0x594   : > { %v4127_v47 = vadd.f32 %v4126_v22, %v4103_v63  ;;  %v6928_v22 = vpop.permute.xlu0 %3315 }
 0x595   : > { %v4342_v25 = vpop.f32.mrf.mxu1 }
 0x596   : > { %v4151_v19 = vadd.f32 %v4150_v38, %v4127_v47  ;;  %v4320_v54 = vpop.f32.mrf.mxu0  ;;  %v6916_v8 = vpop.permute.xlu2 %3279 }
 0x597   : > { %v6918_v32 = vpop.permute.xlu1 %3297 }
 0x598   : > { %v5631_v57 = vpop.eup %5630  ;;  %v4175_v12 = vadd.f32 %v4174_v33, %v4151_v19 }
 0x599   : > { %v3181_v10 = vadd.f32 1.0, %v5631_v57  ;;  %v4196_v43 = vpop.f32.mrf.mxu3  ;;  %v4272_v3 = vpop.f32.mrf.mxu2 }
 0x59a   : > { %v6897_v41 = vadd.f32 %v4196_v43, %v4175_v12  ;;  %v4273_v13 = vadd.f32 %v4272_v3, %v4249_v18  ;;  %v5680_v43 = vmov 8.0  }
 0x59b   : > { %5632 = vrcp.f32 %v3181_v10  ;;  %v3193_v16 = vand.u32 2147483648, %v3181_v10  ;;  %v3191_v51 = vand.u32 2147483647, %v3181_v10  ;;  %vm3187_vm8 = vweird.f32 %v3181_v10 }
 0x59c   : > { %v4491_v48 = vmax.f32 %v6897_v41, 0.0  ;;  %5634 = vrcp.f32 %v5680_v43 }
 0x59d   : > { %v3194_v21 = vor.u32 1.1754944e-38, %v3193_v16  ;;  %vm3192_vm14 = vcmp.eq.f32.partialorder %v3191_v51, 8.507059e+37  ;;  %v4442_v11 = vpop.f32.mrf.mxu1 }
 0x59e   : > { %4497 = vrot.lane.b32.xlu1 %v4491_v48, %s8199_s17  ;;  %v4418_v50 = vpop.f32.mrf.mxu0  ;;  %v6920_v52 = vpop.permute.xlu2 %3333 }
 0x59f   : > { %v6922_v31 = vpop.permute.xlu1 %3351 }
 0x5a1   : > { %v5633_v34 = vpop.eup %5632  ;;  %v4296_v24 = vpop.f32.mrf.mxu3 }
 0x5a2   : > { %v4297_v5 = vadd.f32 %v4296_v24, %v4273_v13  ;;  %v3183_v2 = vmul.f32 %v5633_v34, %v3181_v10  ;;  %v4368_v30 = vpop.f32.mrf.mxu2  ;;  %vm3188_vm0 = vweird.f32 %v5633_v34  ;;  %v5635_v3 = vpop.eup %5634 }
 0x5a3   : > { %v4369_v7 = vadd.f32 %v4368_v30, %v4026_v36  ;;  %vm3189_vm12 = vmor %vm3187_vm8, %vm3188_vm0  ;;  %v6934_v36 = vpop.permute.xlu0 %3368  ;;  %v3214_v18 = vmul.f32 8.0, %v5635_v3  ;;  %vm3218_vm15 = vweird.f32 %v5635_v3  ;;  %vm8142_vm0 = vcmask 834560  }
 0x5a4   : > { %v4321_v39 = vadd.f32 %v4320_v54, %v4297_v5  ;;  %v3184_v49 = vsub.f32 1.0, %v3183_v2  ;;  %vm8146_vm8 = vcmask 867328  }
 0x5a5   : > { %v3215_v13 = vsub.f32 1.0, %v3214_v18 }
 0x5a6   : > { %v6903_v35 = vadd.f32 %v4342_v25, %v4321_v39  ;;  %v3185_v1 = vmul.f32 %v5633_v34, %v3184_v49  ;;  %v6924_v14 = vpop.permute.xlu2 %3385 }
 0x5a7   : > { %v6926_v55 = vpop.permute.xlu1 %3403  ;;  %v3216_v2 = vmul.f32 %v5635_v3, %v3215_v13 }
 0x5a8   : > { %v4492_v45 = vmax.f32 %v6903_v35, 0.0  ;;  %v3186_v28 = vadd.f32 %v5633_v34, %v3185_v1  ;;  %v3299_v35 = vrot.slane %v6918_v32, 6 }
 0x5a9   : > { %v4394_v26 = vpop.f32.mrf.mxu3  ;;  %v3217_v1 = vadd.f32 %v5635_v3, %v3216_v2 }
 0x5aa   : > { %v4395_v60 = vadd.f32 %v4394_v26, %v4369_v7  ;;  %4499 = vrot.lane.b32.xlu2 %v4492_v45, %s8199_s17  ;;  %v3190_v23 = vsel %vm3189_vm12, %v5633_v34, %v3186_v28  ;;  %v4466_v9 = vpop.f32.mrf.mxu2  ;;  %vm8145_vm12 = vcmask 850944  }
 0x5ab   : > { %v3195_v0 = vsel %vm3192_vm14, %v3194_v21, %v3190_v23  ;;  %v6940_v59 = vpop.permute.xlu0 %3421  ;;  %v3219_v23 = vsel %vm3218_vm15, %v5635_v3, %v3217_v1  ;;  %vm3406_vm14 = vcmask 916480   ;;  %vm8147_vm15 = vcmask 875520  }
 0x5ac   : > { %v4419_v58 = vadd.f32 %v4418_v50, %v4395_v60  ;;  %3199 = vperm.xlu1 %5626, %v3195_v0  }
 0x5ae   : > { %v4443_v40 = vadd.f32 %v4442_v11, %v4419_v58  ;;  %v6930_v37 = vpop.permute.xlu2 %3439 }
 0x5af   : > { %v6932_v56 = vpop.permute.xlu1 %3473 }
 0x5b0   : > { %v4467_v46 = vadd.f32 %v4466_v9, %v4443_v40  ;;  %v3247_v40 = vrot.slane %v6910_v53, 6 }
 0x5b1   : > { %v4488_v6 = vpop.f32.mrf.mxu3 }
 0x5b2   : > { %v4489_v42 = vadd.f32 %v4488_v6, %v4467_v46  ;;  %v3301_v46 = vsel %vm3300_vm7, %v3299_v35, %v6918_v32  ;;  %v3317_v32 = vrot.slane %v6928_v22, 6  ;;  %vm3424_vm7 = vcmask 924672  }
 0x5b3   : > { %v6946_v63 = vpop.permute.xlu0 %3457 }
 0x5b4   : > { %v4493_v29 = vmax.f32 %v4489_v42, 0.0  ;;  %v3319_v43 = vsel %vm8146_vm8, %v3317_v32, %v6928_v22  ;;  %v3335_v22 = vrot.slane %v6920_v52, 6  ;;  %vm3540_vm8 = vcmask 990208  }
 0x5b6   : > { %4501 = vrot.lane.b32.xlu0 %v4493_v29, %s8199_s17  ;;  %v6936_v38 = vpop.permute.xlu2 %3489 }
 0x5b7   : > { %v6938_v27 = vpop.permute.xlu1 %3521 }
 0x5bb   : > { %v6952_v61 = vpop.permute.xlu0 %3505 }
 0x5be   : > { %v6942_v62 = vpop.permute.xlu2 %3554 }
 0x5bf   : > { %v6944_v33 = vpop.permute.xlu1 %3537 }
 0x5c0   : > { %v3539_v32 = vrot.slane %v6944_v33, 6 }
 0x5c3   : > { %v6961_v17 = vpop.permute.xlu0 %3570 }
 0x5c6   : > { %v6948_v47 = vpop.permute.xlu2 %3602 }
 0x5c7   : > { %v6950_v19 = vpop.permute.xlu1 %3586 }
 0x5cb   : > { %v6966_v24 = vpop.permute.xlu0 %3618 }
 0x604   : > { %v4500_v57 = vpop.permute.xlu2 %4499 }
 0x610   : > { %v4498_v12 = vpop.permute.xlu1 %4497 }
 0x611   : > { %v4503_v10 = vsel %vm559_vm1, %v4498_v12, %v4500_v57 }
 0x612   : > { %v6957_v4 = vmax.f32 %v4491_v48, %v4503_v10  ;;  %v3353_v10 = vrot.slane %v6922_v31, 6 }
 0x614   : > { %4514 = vrot.lane.b32.xlu0 %v6957_v4, %s8135_s19 }
 0x61e   : > { %v3200_v54 = vpop.permute.xlu1 %3199 }
 0x61f   : > { %v6964_v34 = vmul.f32 %v3200_v54, %v6731_v44 }
 0x621   : > { %8200 = vst [vmem:[#allocation3_spill] sm:$0xff] %v6964_v34  ;;  %v3206_v41 = vsel %vm8140_vm13, %v6964_v34, 0.0  ;;  %v3223_v48 = vsel %vm8140_vm13, %v6964_v34, -inf  ;;  %vm3388_vm13 = vcmask 908288  }
 0x622   : > { %v3207_v25 = vrot.slane %v3206_v41, 4  ;;  %v3224_v5 = vrot.slane %v3223_v48, 4 }
 0x624   : > { %v3208_v39 = vadd.f32 %v3207_v25, %v3206_v41  ;;  %v3225_v49 = vmax.f32 %v3223_v48, %v3224_v5  ;;  %v3405_v41 = vrot.slane %v6926_v55, 6  ;;  %v3337_v5 = vsel %vm8147_vm15, %v3335_v22, %v6920_v52 }
 0x625   : > { %vm3326_vm15 = vcmask 1006592  }
 0x626   : > { %v3209_v30 = vrot.slane %v3208_v39, 2  ;;  %v3226_v16 = vrot.slane %v3225_v49, 2 }
 0x628   : > { %v3210_v51 = vadd.f32 %v3209_v30, %v3208_v39  ;;  %v3227_v44 = vmax.f32 %v3225_v49, %v3226_v16  ;;  %v4502_v7 = vpop.permute.xlu0 %4501  ;;  %v3441_v49 = vrot.slane %v6930_v37, 6 }
 0x629   : > { %v4504_v28 = vsel %vm559_vm1, %v4500_v57, %v4502_v7  ;;  %v6973_v26 = vmax.f32 %v4493_v29, %v4502_v7  ;;  %v3249_v29 = vsel %vm8142_vm0, %v3247_v40, %v6910_v53  ;;  %v3354_v53 = vsel %vm643_vm4, %v3353_v10, %v6922_v31 }
 0x62a   : > { %v3211_v50 = vrot.slane %v3210_v51, 1  ;;  %v3228_v21 = vrot.slane %v3227_v44, 1  ;;  %v6977_v60 = vmax.f32 %v4492_v45, %v4504_v28  ;;  %v3264_v45 = vrot.slane %v6914_v20, 6 }
 0x62b   : > { %4518 = vrot.lane.b32.xlu2 %v6973_v26, %s8135_s19  ;;  %v3370_v31 = vrot.slane %v6934_v36, 6  ;;  %v3491_v7 = vrot.slane %v6936_v38, 6  ;;  %vm3414_vm0 = vcmask 957440  }
 0x62c   : > { %v3212_v0 = vadd.f32 %v3211_v50, %v3210_v51  ;;  %v3229_v11 = vmax.f32 %v3227_v44, %v3228_v21  ;;  %4516 = vrot.lane.b32.xlu1 %v6977_v60, %s8135_s19  ;;  %s8205_s19 = smov 114   ;;  %v3266_v6 = vsel %vm8143_vm9, %v3264_v45, %v6914_v20  ;;  %v3281_v20 = vrot.slane %v6916_v8, 6 }
 0x62d   : > { %v3371_v48 = vsel %vm615_vm3, %v3370_v31, %v6934_v36  ;;  %v3387_v36 = vrot.slane %v6924_v14, 6  ;;  %vm3378_vm9 = vcmask 973824  }
 0x62e   : > { %v3220_v58 = vmul.f32 %v3219_v23, %v3212_v0  ;;  %3230 = vst.msk [vmem:[#allocation2 + $0x3] sm:$0x1] %vm3221_vm6, %v3229_v11  ;;  %v3283_v18 = vsel %vm8145_vm12, %v3281_v20, %v6916_v8  ;;  %v3407_v8 = vsel %vm3406_vm14, %v3405_v41, %v6926_v55  ;;  %v3423_v55 = vrot.slane %v6940_v59, 6 }
 0x62f   : > { %v3389_v1 = vsel %vm3388_vm13, %v3387_v36, %v6924_v14  ;;  %v3492_v14 = vsel %vm3396_vm11, %v3491_v7, %v6936_v38  ;;  %v3507_v11 = vrot.slane %v6952_v61, 6  ;;  %v3523_v38 = vrot.slane %v6938_v27, 6 }
 0x630   : > { %3222 = vst.msk [vmem:[#allocation2 + $0x2] sm:$0x1] %vm3221_vm6, %v3220_v58  ;;  %vm3442_vm6 = vcmask 932864   ;;  %v3425_v30 = vsel %vm3424_vm7, %v3423_v55, %v6940_v59  ;;  %v3475_v59 = vrot.slane %v6932_v56, 6  ;;  %vm3450_vm7 = vcmask 941056  }
 0x631   : > { %v3443_v52 = vsel %vm3442_vm6, %v3441_v49, %v6930_v37  ;;  %v3459_v37 = vrot.slane %v6946_v63, 6  ;;  %vm3344_vm12 = vcmask 998400   ;;  %v3588_v41 = vrot.slane %v6950_v19, 6 }
 0x632   : > { %v3476_v21 = vsel %vm3414_vm0, %v3475_v59, %v6932_v56  ;;  %v3524_v56 = vsel %vm3361_vm10, %v3523_v38, %v6938_v27 }
 0x633   : > { %v3460_v28 = vsel %vm3450_vm7, %v3459_v37, %v6946_v63  ;;  %v3508_v63 = vsel %vm3378_vm9, %v3507_v11, %v6952_v61 }
 0x637   : > { %v6983_v9 = vld [vmem:[#allocation2] sm:$0xf] }
 0x638   : > { %3660 = vrot.lane.b32.xlu2 %v6983_v9, %s8198_s30  ;;  %3646 = vrot.lane.b32.xlu1 %v6983_v9, %s8199_s17  ;;  %v3303_v42 = vmul.f32 %v3301_v46, %v6983_v9  ;;  %v3268_v57 = vmul.f32 %v3266_v6, %v6983_v9  ;;  %v3251_v12 = vmul.f32 %v3249_v29, %v6983_v9  ;;  %v3556_v46 = vrot.slane %v6942_v62, 6 }
 0x639   : > { %3674 = vrot.lane.b32.xlu0 %v6983_v9, %s8137_s29  ;;  %s8206_s29 = smov 117   ;;  %v3356_v3 = vmul.f32 %v3354_v53, %v6983_v9  ;;  %v3321_v54 = vmul.f32 %v3319_v43, %v6983_v9  ;;  %v3285_v13 = vmul.f32 %v3283_v18, %v6983_v9  ;;  %v3409_v25 = vmul.f32 %v3407_v8, %v6983_v9 }
 0x63a   : > { %v3373_v2 = vmul.f32 %v3371_v48, %v6983_v9  ;;  %v3339_v39 = vmul.f32 %v3337_v5, %v6983_v9  ;;  %v3445_v16 = vmul.f32 %v3443_v52, %v6983_v9  ;;  %v3427_v51 = vmul.f32 %v3425_v30, %v6983_v9  ;;  %v4542_v5 = vld [vmem:[%s8074_s12 + $0x70] sm:$0xff] }
 0x63b   : > { %v3391_v44 = vmul.f32 %v3389_v1, %v6983_v9  ;;  %v3494_v50 = vmul.f32 %v3492_v14, %v6983_v9  ;;  %v3462_v23 = vmul.f32 %v3460_v28, %v6983_v9  ;;  %v3478_v0 = vmul.f32 %v3476_v21, %v6983_v9 }
 0x63c   : > { %v3510_v58 = vmul.f32 %v3508_v63, %v6983_v9  ;;  %v3526_v35 = vmul.f32 %v3524_v56, %v6983_v9  ;;  %v3557_v61 = vsel %vm3344_vm12, %v3556_v46, %v6942_v62  ;;  %v3604_v62 = vrot.slane %v6948_v47, 6 }
 0x63d   : > { %v3559_v27 = vmul.f32 %v3557_v61, %v6983_v9  ;;  %v7160_v49 = vand.u32 4294901760, %v4542_v5  ;;  %v3620_v30 = vrot.slane %v6966_v24, 6 }
 0x63e   : > { %v3605_v53 = vsel %vm587_vm2, %v3604_v62, %v6948_v47  ;;  %v3634_v62 = vrot.slane %v6983_v9, 2 }
 0x63f   : > { %v7174_v36 = vsub.f32 %v4542_v5, %v7160_v49  ;;  %v3621_v11 = vsel %vm559_vm1, %v3620_v30, %v6966_v24 }
 0x640   : > { %3688 = vrot.lane.b32.xlu2 %v6983_v9, %s8139_s20  ;;  %3716 = vrot.lane.b32.xlu1 %v6983_v9, %s5673_s0  ;;  %s8207_s0 = smov 112   ;;  %s8209_s20 = smov 113  }
 0x641   : > { %3702 = vrot.lane.b32.xlu0 %v6983_v9, %s8138_s26  ;;  %s8208_s26 = smov 111   ;;  %v8160_v59 = vand.u32 4294901760, %v7174_v36 }
 0x648   : > { %3730 = vrot.lane.b32.xlu2 %v6983_v9, %s8201_s25  ;;  %3758 = vrot.lane.b32.xlu1 %v6983_v9, %s8202_s27 }
 0x649   : > { %3744 = vrot.lane.b32.xlu0 %v6983_v9, %s8203_s18 }
 0x650   : > { %3786 = vrot.lane.b32.xlu2 %v6983_v9, %s8204_s24  ;;  %3800 = vrot.lane.b32.xlu1 %v6983_v9, %s8205_s19 }
 0x651   : > { %3772 = vrot.lane.b32.xlu0 %v6983_v9, %s8206_s29 }
 0x658   : > { %3828 = vrot.lane.b32.xlu2 %v6983_v9, %s8207_s0  ;;  %3842 = vrot.lane.b32.xlu1 %v6983_v9, %s8208_s26 }
 0x659   : > { %3814 = vrot.lane.b32.xlu0 %v6983_v9, %s8209_s20  ;;  %s8215_s20 = smov 103  }
 0x660   : > { %3305 = vrot.lane.b32.xlu2 %v3303_v42, %s5681_s1  ;;  %3270 = vrot.lane.b32.xlu1 %v3268_v57, %s8198_s30  ;;  %s8210_s1 = smov 123   ;;  %s8212_s30 = smov 122  }
 0x661   : > { %3253 = vrot.lane.b32.xlu0 %v3251_v12, %s8199_s17  ;;  %s8211_s17 = smov 125  }
 0x668   : > { %3358 = vrot.lane.b32.xlu2 %v3356_v3, %s8201_s25  ;;  %3323 = vrot.lane.b32.xlu1 %v3321_v54, %s8210_s1  ;;  %v3572_v3 = vrot.slane %v6961_v17, 6  ;;  %s8216_s25 = smov 104   ;;  %s8219_s1 = smov 105  }
 0x669   : > { %3287 = vrot.lane.b32.xlu0 %v3285_v13, %s8211_s17  ;;  %s8220_s17 = smov 102  }
 0x670   : > { %3411 = vrot.lane.b32.xlu2 %v3409_v25, %s8206_s29  ;;  %3375 = vrot.lane.b32.xlu1 %v3373_v2, %s8203_s18  ;;  %s5682_s29 = smov 116  }
 0x671   : > { %3341 = vrot.lane.b32.xlu0 %v3339_v39, %s8212_s30 }
 0x678   : > { %3447 = vrot.lane.b32.xlu2 %v3445_v16, %s8204_s24  ;;  %3429 = vrot.lane.b32.xlu1 %v3427_v51, %s5682_s29  ;;  %v4540_v51 = vld [vmem:[%s8074_s12 + $0x60] sm:$0xff] }
 0x679   : > { %3393 = vrot.lane.b32.xlu0 %v3391_v44, %s8202_s27  ;;  %v5552_v44 = vld [vmem:[%s8077_s15 + $0x32] sm:$0x3]  ;;  %v7200_v28 = vand.u32 4294901760, %v4540_v51 }
 0x67b   : > { %v7214_v63 = vsub.f32 %v4540_v51, %v7200_v28 }
 0x67d   : > { %v8158_v61 = vand.u32 4294901760, %v7214_v63 }
 0x680   : > { %3496 = vrot.lane.b32.xlu2 %v3494_v50, %s8208_s26  ;;  %3464 = vrot.lane.b32.xlu1 %v3462_v23, %s8205_s19  ;;  %s8213_s26 = smov 110   ;;  %s8214_s19 = smov 107   ;;  %v4539_v50 = vld [vmem:[%s8074_s12 + $0x58] sm:$0xff]  ;;  %v4632_v23 = vsub.f32 %v7174_v36, %v8160_v59 }
 0x681   : > { %3480 = vrot.lane.b32.xlu0 %v3478_v0, %s8207_s0  ;;  %s8218_s0 = smov 101   ;;  %v7217_v56 = vand.u32 4294901760, %v4539_v50 }
 0x685   : > { %v4519_v45 = vpop.permute.xlu2 %4518 }
 0x686   : > { %v4527_v40 = vmax.f32 %v6973_v26, %v4519_v45  ;;  %v4515_v42 = vpop.permute.xlu0 %4514 }
 0x688   : > { %3512 = vrot.lane.b32.xlu1 %v3510_v58, %s8213_s26  ;;  %v4538_v58 = vld [vmem:[%s8074_s12 + $0x50] sm:$0xff] }
 0x689   : > { %3528 = vrot.lane.b32.xlu0 %v3526_v35, %s8183_s23  ;;  %v3623_v35 = vmul.f32 %v3621_v11, %v6983_v9 }
 0x690   : > { %4571 = vrot.lane.b32.xlu1 %v4527_v40, %s8183_s23  ;;  %v7227_v40 = vand.u32 4294901760, %v4538_v58 }
 0x692   : > { %v7102_v6 = vpop.permute.xlu2 %3660 }
 0x698   : > { %3561 = vrot.lane.b32.xlu1 %v3559_v27, %s8214_s19  ;;  %v7235_v27 = vsub.f32 %v4539_v50, %v7217_v56 }
 0x69a   : > { %v7115_v20 = vpop.permute.xlu2 %3688 }
 0x69e   : > { %v4517_v29 = vpop.permute.xlu1 %4516 }
 0x69f   : > { %v4520_v57 = vsel %vm615_vm3, %v4515_v42, %v4517_v29  ;;  %v4521_v26 = vsel %vm615_vm3, %v4517_v29, %v4519_v45  ;;  %v4633_v45 = vand.u32 4294901760, %v4632_v23  ;;  %v4537_v42 = vld [vmem:[%s8074_s12 + $0x48] sm:$0xff] }
 0x6a0   : > { %v4525_v12 = vmax.f32 %v6957_v4, %v4520_v57  ;;  %v4526_v10 = vmax.f32 %v6977_v60, %v4521_v26  ;;  %3884 = vrot.lane.b32.xlu1 %v6983_v9, %s8214_s19  ;;  %v3541_v4 = vsel %vm3540_vm8, %v3539_v32, %v6944_v33  ;;  %v3607_v60 = vmul.f32 %v3605_v53, %v6983_v9 }
 0x6a1   : > { %v3543_v43 = vmul.f32 %v3541_v4, %v6983_v9  ;;  %v3573_v33 = vsel %vm3326_vm15, %v3572_v3, %v6961_v17  ;;  %vm3290_vm8 = vcmask 1022976   ;;  %v4543_v17 = vld [vmem:[%s8074_s12 + $0x78] sm:$0xff]  ;;  %v7245_v57 = vsub.f32 %v4538_v58, %v7227_v40  ;;  %v4536_v4 = vld [vmem:[%s8074_s12 + $0x40] sm:$0xff]  ;;  %v5551_v3 = vld [vmem:[%s8077_s15 + $0x30] sm:$0x3] }
 0x6a2   : > { %4567 = vrot.lane.b32.xlu2 %v4525_v12, %s8183_s23  ;;  %4569 = vrot.lane.b32.xlu0 %v4526_v10, %s8183_s23  ;;  %v7129_v47 = vpop.permute.xlu2 %3730  ;;  %v3575_v13 = vmul.f32 %v3573_v33, %v6983_v9  ;;  %v7147_v8 = vand.u32 4294901760, %v4543_v17  ;;  %v3589_v48 = vsel %vm3290_vm8, %v3588_v41, %v6950_v19  ;;  %v4541_v19 = vld [vmem:[%s8074_s12 + $0x68] sm:$0xff]  ;;  %v7247_v26 = vand.u32 4294901760, %v4537_v42 }
 0x6a3   : > { %v3591_v2 = vmul.f32 %v3589_v48, %v6983_v9  ;;  %v7176_v52 = vand.u32 4294901760, %v4541_v19  ;;  %v4644_v32 = vsub.f32 %v7214_v63, %v8158_v61  ;;  %v8156_v53 = vand.u32 4294901760, %v7235_v27 }
 0x6a4   : > { %v7158_v39 = vsub.f32 %v4543_v17, %v7147_v8  ;;  %4779 = vmatpush.msrb.mxu3 %v7147_v8  ;;  %4583 = vmatpush.msrb.mxu0 %v7147_v8  ;;  %v7271_v33 = vsub.f32 %v4537_v42, %v7247_v26  ;;  %v4535_v17 = vld [vmem:[%s8074_s12 + $0x38] sm:$0xff]  ;;  %v3636_v30 = vmul.f32 %v5551_v3, %v3634_v62  ;;  %v3662_v58 = vrot.slane %v7102_v6, 2  ;;  %v5553_v42 = vld [vmem:[%s8077_s15 + $0x34] sm:$0x3] }
 0x6a5   : > { %v7196_v14 = vsub.f32 %v4541_v19, %v7176_v52  ;;  %v4645_v41 = vand.u32 4294901760, %v4644_v32  ;;  %v7294_v51 = vand.u32 4294901760, %v4535_v17 }
 0x6a6   : > { %v8163_v55 = vand.u32 4294901760, %v7158_v39  ;;  %4726 = vmatpush.msrb.mxu2 %v7158_v39  ;;  %4781 = vmatpush.msrb.mxu3 %v7160_v49  ;;  %v8154_v5 = vand.u32 4294901760, %v7271_v33 }
 0x6a7   : > { %4585 = vmatpush.msrb.mxu0 %v7160_v49  ;;  %v8159_v0 = vand.u32 4294901760, %v7196_v14  ;;  %v7309_v11 = vsub.f32 %v4535_v17, %v7294_v51  ;;  %v3236_v17 = vrot.slane %v6912_v15, 6 }
 0x6a8   : > { %3609 = vrot.lane.b32.xlu1 %v3607_v60, %s8215_s20  ;;  %v4626_v37 = vsub.f32 %v7158_v39, %v8163_v55  ;;  %4729 = vmatpush.msrb.mxu2 %v7174_v36  ;;  %v5556_v60 = vld [vmem:[%s8077_s15 + $0x3a] sm:$0x3]  ;;  %v4662_v50 = vsub.f32 %v7271_v33, %v8154_v5 }
 0x6a9   : > { %4783 = vmatpush.msrb.mxu3 %v7176_v52  ;;  %4587 = vmatpush.msrb.mxu0 %v7176_v52  ;;  %v4638_v24 = vsub.f32 %v7196_v14, %v8159_v0  ;;  %v8150_v62 = vand.u32 4294901760, %v7309_v11 }
 0x6aa   : > { %3545 = vrot.lane.b32.xlu2 %v3543_v43, %s8182_s28  ;;  %3856 = vrot.lane.b32.xlu0 %v6983_v9, %s8213_s26  ;;  %v3647_v18 = vpop.permute.xlu1 %3646  ;;  %s8217_s28 = smov 106   ;;  %v7151_v25 = vpop.permute.xlu2 %3786  ;;  %v4627_v21 = vand.u32 4294901760, %v4626_v37 }
 0x6ab   : > { %v7127_v54 = vpop.permute.xlu0 %3674  ;;  %v3648_v16 = vrot.slane %v3647_v18, 2  ;;  %4732 = vmatpush.msrb.mxu2 %v7196_v14  ;;  %4785 = vmatpush.msrb.mxu3 %v7200_v28  ;;  %v4639_v29 = vand.u32 4294901760, %v4638_v24  ;;  %v8155_v18 = vand.u32 4294901760, %v7245_v57 }
 0x6ac   : > { %4628 = vmatpush.msrb.mxu1 %v4627_v21  ;;  %4589 = vmatpush.msrb.mxu0 %v7200_v28 }
 0x6ad   : > { %v3650_v38 = vmul.f32 %v5552_v44, %v3648_v16  ;;  %4735 = vmatpush.msrb.mxu2 %v7214_v63  ;;  %4787 = vmatpush.msrb.mxu3 %v7217_v56  ;;  %v4656_v48 = vsub.f32 %v7245_v57, %v8155_v18  ;;  %v4534_v44 = vld [vmem:[%s8074_s12 + $0x30] sm:$0xff] }
 0x6ae   : > { %4634 = vmatpush.msrb.mxu1 %v4633_v45  ;;  %4591 = vmatpush.msrb.mxu0 %v7217_v56  ;;  %v7304_v23 = vand.u32 4294901760, %v4534_v44 }
 0x6af   : > { %4738 = vmatpush.msrb.mxu2 %v7235_v27  ;;  %4789 = vmatpush.msrb.mxu3 %v7227_v40  ;;  %v4657_v37 = vand.u32 4294901760, %v4656_v48  ;;  %v4674_v48 = vsub.f32 %v7309_v11, %v8150_v62 }
 0x6b0   : > { %3926 = vrot.lane.b32.xlu1 %v6983_v9, %s8216_s25  ;;  %4640 = vmatpush.msrb.mxu1 %v4639_v29  ;;  %v7322_v24 = vsub.f32 %v4534_v44, %v7304_v23 }
 0x6b1   : > { %4741 = vmatpush.msrb.mxu2 %v7245_v57  ;;  %4593 = vmatpush.msrb.mxu0 %v7227_v40 }
 0x6b2   : > { %3870 = vrot.lane.b32.xlu2 %v6983_v9, %s8183_s23  ;;  %3577 = vrot.lane.b32.xlu0 %v3575_v13, %s8217_s28  ;;  %v7140_v31 = vpop.permute.xlu1 %3716  ;;  %v7230_v46 = vpop.permute.xlu2 %3828  ;;  %v7274_v13 = vand.u32 4294901760, %v4536_v4 }
 0x6b3   : > { %v7142_v22 = vpop.permute.xlu0 %3702  ;;  %4646 = vmatpush.msrb.mxu1 %v4645_v41  ;;  %4744 = vmatpush.msrb.mxu2 %v7271_v33  ;;  %v8149_v41 = vand.u32 4294901760, %v7322_v24 }
 0x6b4   : > { %v3704_v12 = vrot.slane %v7142_v22, 2  ;;  %v4650_v22 = vsub.f32 %v7235_v27, %v8156_v53  ;;  %4791 = vmatpush.msrb.mxu3 %v7247_v26  ;;  %4595 = vmatpush.msrb.mxu0 %v7247_v26 }
 0x6b5   : > { %v4680_v44 = vsub.f32 %v7322_v24, %v8149_v41 }
 0x6b6   : > { %v3706_v19 = vmul.f32 %v5556_v60, %v3704_v12  ;;  %v4651_v16 = vand.u32 4294901760, %v4650_v22  ;;  %v5559_v60 = vld [vmem:[%s8077_s15 + $0x40] sm:$0x3]  ;;  %4793 = vmatpush.msrb.mxu3 %v7274_v13  ;;  %4597 = vmatpush.msrb.mxu0 %v7274_v13 }
 0x6b7   : > { %v4681_v41 = vand.u32 4294901760, %v4680_v44 }
 0x6b8   : > { %3968 = vrot.lane.b32.xlu1 %v6983_v9, %s8218_s0  ;;  %4652 = vmatpush.msrb.mxu1 %v4651_v16  ;;  %v3664_v16 = vmul.f32 %v5553_v42, %v3662_v58  ;;  %v4530_v42 = vld [vmem:[%s8074_s12 + $0x10] sm:$0xff] }
 0x6b9   : > { %4795 = vmatpush.msrb.mxu3 %v7294_v51  ;;  %4599 = vmatpush.msrb.mxu0 %v7294_v51 }
 0x6ba   : > { %3593 = vrot.lane.b32.xlu2 %v3591_v2, %s8216_s25  ;;  %3898 = vrot.lane.b32.xlu0 %v6983_v9, %s8217_s28  ;;  %v7179_v1 = vpop.permute.xlu1 %3758  ;;  %v7289_v2 = vsub.f32 %v4536_v4, %v7274_v13  ;;  %v7328_v6 = vpop.permute.xlu2 %3305  ;;  %v4532_v4 = vld [vmem:[%s8074_s12 + $0x20] sm:$0xff] }
 0x6bb   : > { %v7189_v7 = vpop.permute.xlu0 %3744  ;;  %4658 = vmatpush.msrb.mxu1 %v4657_v37  ;;  %v7347_v22 = vand.u32 4294901760, %v4532_v4  ;;  %4797 = vmatpush.msrb.mxu3 %v7304_v23 }
 0x6bc   : > { %v8152_v21 = vand.u32 4294901760, %v7289_v2  ;;  %v3746_v29 = vrot.slane %v7189_v7, 2  ;;  %4747 = vmatpush.msrb.mxu2 %v7289_v2  ;;  %4601 = vmatpush.msrb.mxu0 %v7304_v23 }
 0x6bd   : > { %v7365_v37 = vsub.f32 %v4532_v4, %v7347_v22  ;;  %v5555_v4 = vld [vmem:[%s8077_s15 + $0x38] sm:$0x3] }
 0x6be   : > { %v4668_v45 = vsub.f32 %v7289_v2, %v8152_v21  ;;  %4750 = vmatpush.msrb.mxu2 %v7309_v11 }
 0x6bf   : > { %v8153_v62 = vand.u32 4294901760, %v7365_v37 }
 0x6c0   : > { %3652 = vrot.lane.b32.xlu1 %v3650_v38, %s8218_s0  ;;  %v4533_v38 = vld [vmem:[%s8074_s12 + $0x28] sm:$0xff]  ;;  %v4669_v3 = vand.u32 4294901760, %v4668_v45  ;;  %v4675_v45 = vand.u32 4294901760, %v4674_v48  ;;  %4753 = vmatpush.msrb.mxu2 %v7322_v24  ;;  %v3788_v48 = vrot.slane %v7151_v25, 2 }
 0x6c1   : > { %v7334_v32 = vand.u32 4294901760, %v4533_v38 }
 0x6c2   : > { %3912 = vrot.lane.b32.xlu2 %v6983_v9, %s8219_s1  ;;  %3625 = vrot.lane.b32.xlu0 %v3623_v35, %s8220_s17  ;;  %v7250_v10 = vpop.permute.xlu1 %3800  ;;  %v4663_v35 = vand.u32 4294901760, %v4662_v50 }
 0x6c3   : > { %v7264_v43 = vpop.permute.xlu0 %3772  ;;  %4799 = vmatpush.msrb.mxu3 %v7334_v32  ;;  %4603 = vmatpush.msrb.mxu0 %v7334_v32 }
 0x6c4   : > { %4664 = vmatpush.msrb.mxu1 %v4663_v35  ;;  %v3748_v35 = vmul.f32 %v5559_v60, %v3746_v29  ;;  %v7385_v29 = vand.u32 4294901760, %v4530_v42  ;;  %v3238_v60 = vsel %vm3237_vm5, %v3236_v17, %v6912_v15  ;;  %v4692_v15 = vsub.f32 %v7365_v37, %v8153_v62 }
 0x6c5   : > { %4801 = vmatpush.msrb.mxu3 %v7347_v22  ;;  %4605 = vmatpush.msrb.mxu0 %v7347_v22 }
 0x6c6   : > { %4670 = vmatpush.msrb.mxu1 %v4669_v3  ;;  %v3676_v3 = vrot.slane %v7127_v54, 2  ;;  %v7406_v25 = vsub.f32 %v4530_v42, %v7385_v29  ;;  %v4528_v42 = vld [vmem:[%s8074_s12] sm:$0xff] }
 0x6c8   : > { %3708 = vrot.lane.b32.xlu1 %v3706_v19, %s8218_s0  ;;  %v7355_v19 = vsub.f32 %v4533_v38, %v7334_v32  ;;  %v3690_v38 = vrot.slane %v7115_v20, 2  ;;  %4676 = vmatpush.msrb.mxu1 %v4675_v45  ;;  %v8161_v5 = vand.u32 4294901760, %v7406_v25 }
 0x6ca   : > { %3638 = vrot.lane.b32.xlu2 %v3636_v30, %s8218_s0  ;;  %3940 = vrot.lane.b32.xlu0 %v6983_v9, %s8215_s20  ;;  %v7330_v12 = vpop.permute.xlu1 %3842  ;;  %v4531_v30 = vld [vmem:[%s8074_s12 + $0x18] sm:$0xff]  ;;  %v8151_v58 = vand.u32 4294901760, %v7355_v19  ;;  %v3692_v45 = vmul.f32 %v5555_v4, %v3690_v38  ;;  %v4693_v4 = vand.u32 4294901760, %v4692_v15  ;;  %v7434_v15 = vand.u32 4294901760, %v4528_v42 }
 0x6cb   : > { %v7342_v7 = vpop.permute.xlu0 %3814  ;;  %v7368_v50 = vand.u32 4294901760, %v4531_v30  ;;  %4682 = vmatpush.msrb.mxu1 %v4681_v41  ;;  %4756 = vmatpush.msrb.mxu2 %v7355_v19  ;;  %v7428_v41 = vpop.permute.xlu2 %3358  ;;  %v4704_v0 = vsub.f32 %v7406_v25, %v8161_v5 }
 0x6cc   : > { %v4686_v44 = vsub.f32 %v7355_v19, %v8151_v58  ;;  %v5554_v58 = vld [vmem:[%s8077_s15 + $0x36] sm:$0x3] }
 0x6cd   : > { %v7382_v20 = vsub.f32 %v4531_v30, %v7368_v50  ;;  %v4529_v30 = vld [vmem:[%s8074_s12 + $0x8] sm:$0xff]  ;;  %4759 = vmatpush.msrb.mxu2 %v7365_v37  ;;  %v3678_v53 = vmul.f32 %v5554_v58, %v3676_v3  ;;  %v7446_v58 = vsub.f32 %v4528_v42, %v7434_v15  ;;  %v5558_v3 = vld [vmem:[%s8077_s15 + $0x3e] sm:$0x3]  ;;  %4803 = vmatpush.msrb.mxu3 %v7368_v50  ;;  %v5557_v42 = vld [vmem:[%s8077_s15 + $0x3c] sm:$0x3] }
 0x6ce   : > { %v7408_v17 = vand.u32 4294901760, %v4529_v30  ;;  %v4687_v62 = vand.u32 4294901760, %v4686_v44  ;;  %4607 = vmatpush.msrb.mxu0 %v7368_v50 }
 0x6cf   : > { %v8157_v54 = vand.u32 4294901760, %v7382_v20  ;;  %4762 = vmatpush.msrb.mxu2 %v7382_v20  ;;  %4805 = vmatpush.msrb.mxu3 %v7385_v29 }
 0x6d0   : > { %3750 = vrot.lane.b32.xlu1 %v3748_v35, %s8218_s0  ;;  %v3240_v35 = vmul.f32 %v3238_v60, %v6983_v9  ;;  %4688 = vmatpush.msrb.mxu1 %v4687_v62  ;;  %v3830_v62 = vrot.slane %v7230_v46, 2  ;;  %v4705_v46 = vand.u32 4294901760, %v4704_v0  ;;  %v8164_v0 = vand.u32 4294901760, %v7446_v58 }
 0x6d1   : > { %v4698_v60 = vsub.f32 %v7382_v20, %v8157_v54  ;;  %4765 = vmatpush.msrb.mxu2 %v7406_v25  ;;  %4609 = vmatpush.msrb.mxu0 %v7385_v29 }
 0x6d2   : > { %3954 = vrot.lane.b32.xlu2 %v6983_v9, %s8220_s17  ;;  %3666 = vrot.lane.b32.xlu0 %v3664_v16, %s8218_s0  ;;  %v5562_v16 = vld [vmem:[%s8077_s15 + $0x46] sm:$0x3]  ;;  %v3271_v21 = vpop.permute.xlu1 %3270  ;;  %v3732_v9 = vrot.slane %v7129_v47, 2  ;;  %v7432_v47 = vsub.f32 %v4529_v30, %v7408_v17  ;;  %s5510_s17 = sshll.u32 %s8270_s22, 3 }
 0x6d3   : > { %v3254_v38 = vpop.permute.xlu0 %3253  ;;  %v3272_v44 = vrot.slane %v3271_v21, 2  ;;  %v3790_v54 = vmul.f32 %v5562_v16, %v3788_v48  ;;  %v4699_v61 = vand.u32 4294901760, %v4698_v60  ;;  %4694 = vmatpush.msrb.mxu1 %v4693_v4  ;;  %v3718_v48 = vrot.slane %v7140_v31, 2  ;;  %v5565_v31 = vld [vmem:[%s8077_s15 + $0x4c] sm:$0x3]  ;;  %4807 = vmatpush.msrb.mxu3 %v7408_v17  ;;  %s519_s27 = scalar_lea.vmem %s8078_s16, %s5510_s17 }
 0x6d4   : > { %v3255_v18 = vrot.slane %v3254_v38, 2  ;;  %v8162_v30 = vand.u32 4294901760, %v7432_v47  ;;  %v3307_v16 = vrot.slane %v7328_v6, 2  ;;  %v3760_v4 = vrot.slane %v7179_v1, 2  ;;  %4768 = vmatpush.msrb.mxu2 %v7432_v47  ;;  %4611 = vmatpush.msrb.mxu0 %v7408_v17 }
 0x6d5   : > { %4700 = vmatpush.msrb.mxu1 %v4699_v61  ;;  %v4558_v61 = vld [vmem:[%s8074_s12 + $0xf0] sm:$0xff]  ;;  %v4716_v1 = vsub.f32 %v7446_v58, %v8164_v0  ;;  %4809 = vmatpush.msrb.mxu3 %v7434_v15 }
 0x6d6   : > { %v3256_v59 = vsel %vm559_vm1, %v3254_v38, %v3255_v18  ;;  %v4559_v18 = vld [vmem:[%s8074_s12 + $0xf8] sm:$0xff]  ;;  %v3273_v38 = vsel %vm587_vm2, %v3271_v21, %v3272_v44  ;;  %vm3308_vm1 = vcmask 1014784   ;;  %v5560_v21 = vld [vmem:[%s8077_s15 + $0x42] sm:$0x3]  ;;  %v7490_v55 = vand.u32 4294901760, %v4558_v61  ;;  %4771 = vmatpush.msrb.mxu2 %v7446_v58  ;;  %4613 = vmatpush.msrb.mxu0 %v7434_v15 }
 0x6d7   : > { %v3258_v60 = vadd.f32 %v3256_v59, %v3240_v35  ;;  %v4710_v59 = vsub.f32 %v7432_v47, %v8162_v30  ;;  %v7470_v35 = vand.u32 4294901760, %v4559_v18  ;;  %4706 = vmatpush.msrb.mxu1 %v4705_v46  ;;  %v4557_v46 = vld [vmem:[%s8074_s12 + $0xe8] sm:$0xff]  ;;  %vm3432_vm2 = vcmask 949248  }
 0x6d8   : > { %3792 = vrot.lane.b32.xlu1 %v3790_v54, %s8218_s0 }
 0x6d9   : > { %v3275_v5 = vadd.f32 %v3273_v38, %v3258_v60  ;;  %v4711_v44 = vand.u32 4294901760, %v4710_v59  ;;  %v3720_v60 = vmul.f32 %v5557_v42, %v3718_v48  ;;  %v3832_v38 = vmul.f32 %v5565_v31, %v3830_v62  ;;  %4924 = vmatpush.msra.mxu2 %v7470_v35 }
 0x6da   : > { %3680 = vrot.lane.b32.xlu2 %v3678_v53, %s8218_s0  ;;  %3694 = vrot.lane.b32.xlu0 %v3692_v45, %s8218_s0  ;;  %v3324_v54 = vpop.permute.xlu1 %3323  ;;  %v7486_v53 = vsub.f32 %v4559_v18, %v7470_v35  ;;  %v3734_v45 = vmul.f32 %v5558_v3, %v3732_v9  ;;  %v3309_v59 = vsel %vm3308_vm1, %v7328_v6, %v3307_v16  ;;  %v4717_v18 = vand.u32 4294901760, %v4716_v1  ;;  %v4556_v6 = vld [vmem:[%s8074_s12 + $0xe0] sm:$0xff]  ;;  %v7512_v16 = vpop.permute.xlu2 %3411 }
 0x6db   : > { %v3288_v30 = vpop.permute.xlu0 %3287  ;;  %4712 = vmatpush.msrb.mxu1 %v4711_v44  ;;  %v7499_v62 = vmul.f32 %v5560_v21, %v3760_v4  ;;  %v3360_v3 = vrot.slane %v7428_v41, 2  ;;  %v7504_v48 = vand.u32 4294901760, %v4557_v46  ;;  %v7507_v42 = vsub.f32 %v4558_v61, %v7490_v55  ;;  %4926 = vmatpush.msra.mxu2 %v7490_v55 }
 0x6dc   : > { %v3289_v0 = vrot.slane %v3288_v30, 2  ;;  %v8166_v9 = vand.u32 4294901760, %v7486_v53  ;;  %v3325_v31 = vrot.slane %v3324_v54, 2  ;;  %v7519_v44 = vand.u32 4294901760, %v4556_v6 }
 0x6dd   : > { %8221 = vst [vmem:[#allocation4_spill] sm:$0xff] %v7507_v42  ;;  %4718 = vmatpush.msrb.mxu1 %v4717_v18  ;;  %v3802_v61 = vrot.slane %v7250_v10, 2  ;;  %v8167_v34 = vand.u32 4294901760, %v7507_v42  ;;  %v5563_v18 = vld [vmem:[%s8077_s15 + $0x48] sm:$0x3]  ;;  %v3774_v10 = vrot.slane %v7264_v43, 2  ;;  %4928 = vmatpush.msra.mxu2 %v7504_v48 }
 0x6de   : > { %v3291_v4 = vsel %vm3290_vm8, %v3288_v30, %v3289_v0  ;;  %v4967_v21 = vsub.f32 %v7486_v53, %v8166_v9  ;;  %v7526_v30 = vsub.f32 %v4557_v46, %v7504_v48  ;;  %v4555_v0 = vld [vmem:[%s8074_s12 + $0xd8] sm:$0xff]  ;;  %v7540_v46 = vsub.f32 %v4556_v6, %v7519_v44  ;;  %v5561_v6 = vld [vmem:[%s8077_s15 + $0x44] sm:$0x3] }
 0x6df   : > { %v3293_v1 = vadd.f32 %v3291_v4, %v3275_v5  ;;  %4887 = vmatpush.msra.mxu1 %v7147_v8  ;;  %v7537_v5 = vand.u32 4294901760, %v4555_v0  ;;  %v3362_v4 = vsel %vm3361_vm10, %v7428_v41, %v3360_v3  ;;  %v4973_v43 = vsub.f32 %v7507_v42, %v8167_v34  ;;  %4930 = vmatpush.msra.mxu2 %v7519_v44 }
 0x6e0   : > { %8222 = vst [vmem:[#allocation5_spill] sm:$0xff] %v7526_v30  ;;  %3834 = vrot.lane.b32.xlu1 %v3832_v38, %s8218_s0  ;;  %v4968_v8 = vand.u32 4294901760, %v4967_v21  ;;  %v4554_v21 = vld [vmem:[%s8074_s12 + $0xd0] sm:$0xff]  ;;  %v3327_v41 = vsel %vm3326_vm15, %v3324_v54, %v3325_v31  ;;  %v8223_v54 = vand.u32 4294901760, %v7526_v30  ;;  %v4553_v31 = vld [vmem:[%s8074_s12 + $0xc8] sm:$0xff]  ;;  %vm8247_vm10 = vcmask 875520  }
 0x6e1   : > { %v3311_v9 = vadd.f32 %v3309_v59, %v3293_v1  ;;  %4889 = vmatpush.msra.mxu1 %v7160_v49  ;;  %v7563_v3 = vsub.f32 %v4555_v0, %v7537_v5  ;;  %v7565_v1 = vmul.f32 %v5563_v18, %v3802_v61  ;;  %v4974_v42 = vand.u32 4294901760, %v4973_v43  ;;  %4932 = vmatpush.msra.mxu2 %v7537_v5 }
 0x6e2   : > { %3722 = vrot.lane.b32.xlu2 %v3720_v60, %s8218_s0  ;;  %3736 = vrot.lane.b32.xlu0 %v3734_v45, %s8218_s0  ;;  %v3376_v59 = vpop.permute.xlu1 %3375  ;;  %v7560_v60 = vand.u32 4294901760, %v4554_v21  ;;  %v4979_v49 = vsub.f32 %v7526_v30, %v8223_v54  ;;  %v8224_v61 = vand.u32 4294901760, %v7540_v46  ;;  %v7580_v18 = vand.u32 4294901760, %v4553_v31 }
 0x6e3   : > { %v3342_v34 = vpop.permute.xlu0 %3341  ;;  %v3329_v38 = vadd.f32 %v3327_v41, %v3311_v9  ;;  %4969 = vmatpush.msra.mxu3 %v4968_v8  ;;  %4891 = vmatpush.msra.mxu1 %v7176_v52  ;;  %v8173_v0 = vand.u32 4294901760, %v7563_v3  ;;  %v3776_v8 = vmul.f32 %v5561_v6, %v3774_v10  ;;  %v3377_v43 = vrot.slane %v3376_v59, 2  ;;  %v4552_v52 = vld [vmem:[%s8074_s12 + $0xc0] sm:$0xff] }
 0x6e4   : > { %v3343_v45 = vrot.slane %v3342_v34, 2  ;;  %v4985_v9 = vsub.f32 %v7540_v46, %v8224_v61  ;;  %v8225_v41 = vand.u32 4294901760, %v7158_v39  ;;  %v4980_v54 = vand.u32 4294901760, %v4979_v49  ;;  %4934 = vmatpush.msra.mxu2 %v7560_v60 }
 0x6e5   : > { %4975 = vmatpush.msra.mxu3 %v4974_v42  ;;  %v7585_v30 = vsub.f32 %v4554_v21, %v7560_v60  ;;  %4893 = vmatpush.msra.mxu1 %v7200_v28  ;;  %v4991_v39 = vsub.f32 %v7563_v3, %v8173_v0  ;;  %v7596_v42 = vand.u32 4294901760, %v4552_v52  ;;  %v8226_v21 = vand.u32 4294901760, %v7174_v36  ;;  %v4551_v28 = vld [vmem:[%s8074_s12 + $0xb8] sm:$0xff] }
 0x6e6   : > { %4820 = vmatpush.msra.mxu0 %v8225_v41  ;;  %v3345_v61 = vsel %vm3344_vm12, %v3342_v34, %v3343_v45  ;;  %v4986_v10 = vand.u32 4294901760, %v4985_v9  ;;  %v7602_v34 = vsub.f32 %v4553_v31, %v7580_v18  ;;  %v3413_v45 = vrot.slane %v7512_v16, 2  ;;  %v3448_v9 = vpop.permute.xlu2 %3447  ;;  %4936 = vmatpush.msra.mxu2 %v7580_v18 }
 0x6e7   : > { %v3347_v6 = vadd.f32 %v3345_v61, %v3329_v38  ;;  %4981 = vmatpush.msra.mxu3 %v4980_v54  ;;  %v8172_v49 = vand.u32 4294901760, %v7585_v30  ;;  %4895 = vmatpush.msra.mxu1 %v7217_v56  ;;  %v4992_v38 = vand.u32 4294901760, %v4991_v39  ;;  %v7610_v41 = vand.u32 4294901760, %v4551_v28  ;;  %v4550_v39 = vld [vmem:[%s8074_s12 + $0xb0] sm:$0xff] }
 0x6e8   : > { %4824 = vmatpush.msra.mxu0 %v8226_v21  ;;  %8227 = vst [vmem:[#allocation6_spill] sm:$0xff] %v7602_v34  ;;  %v7613_v36 = vsub.f32 %v4552_v52, %v7596_v42  ;;  %v3816_v31 = vrot.slane %v7342_v7, 2  ;;  %v5564_v7 = vld [vmem:[%s8077_s15 + $0x4a] sm:$0x3]  ;;  %v3449_v21 = vrot.slane %v3448_v9, 2  ;;  %v8228_v61 = vand.u32 4294901760, %v7196_v14  ;;  %4938 = vmatpush.msra.mxu2 %v7596_v42 }
 0x6e9   : > { %v3364_v54 = vadd.f32 %v3362_v4, %v3347_v6  ;;  %v4997_v56 = vsub.f32 %v7585_v30, %v8172_v49  ;;  %v3379_v4 = vsel %vm3378_vm9, %v3376_v59, %v3377_v43  ;;  %4897 = vmatpush.msra.mxu1 %v7227_v40  ;;  %4987 = vmatpush.msra.mxu3 %v4986_v10  ;;  %v8229_v43 = vand.u32 4294901760, %v7602_v34  ;;  %v4549_v10 = vld [vmem:[%s8074_s12 + $0xa8] sm:$0xff] }
 0x6ea   : > { %3764 = vrot.lane.b32.xlu2 %v7499_v62, %s8218_s0  ;;  %3778 = vrot.lane.b32.xlu0 %v3776_v8, %s8218_s0  ;;  %v3430_v52 = vpop.permute.xlu1 %3429  ;;  %v7632_v8 = vand.u32 4294901760, %v4550_v39  ;;  %v7635_v6 = vsub.f32 %v4551_v28, %v7610_v41  ;;  %v8230_v28 = vand.u32 4294901760, %v7613_v36  ;;  %vm8261_vm9 = vcmask 842752  }
 0x6eb   : > { %v3394_v49 = vpop.permute.xlu0 %3393  ;;  %v3381_v0 = vadd.f32 %v3379_v4, %v3364_v54  ;;  %4828 = vmatpush.msra.mxu0 %v8228_v61  ;;  %v4998_v59 = vand.u32 4294901760, %v4997_v56  ;;  %v5003_v40 = vsub.f32 %v7602_v34, %v8229_v43  ;;  %4899 = vmatpush.msra.mxu1 %v7247_v26  ;;  %v7651_v61 = vand.u32 4294901760, %v4549_v10 }
 0x6ec   : > { %v3395_v62 = vrot.slane %v3394_v49, 2  ;;  %4993 = vmatpush.msra.mxu3 %v4992_v38  ;;  %v5009_v14 = vsub.f32 %v7613_v36, %v8230_v28  ;;  %v3818_v4 = vmul.f32 %v5564_v7, %v3816_v31  ;;  %v8231_v43 = vand.u32 4294901760, %v7214_v63  ;;  %v4548_v38 = vld [vmem:[%s8074_s12 + $0xa0] sm:$0xff]  ;;  %4940 = vmatpush.msra.mxu2 %v7610_v41 }
 0x6ed   : > { %v5004_v34 = vand.u32 4294901760, %v5003_v40  ;;  %v7658_v26 = vsub.f32 %v4550_v39, %v7632_v8  ;;  %v3431_v28 = vrot.slane %v3430_v52, 2  ;;  %4901 = vmatpush.msra.mxu1 %v7274_v13  ;;  %v8232_v31 = vand.u32 4294901760, %v7635_v6  ;;  %v4547_v13 = vld [vmem:[%s8074_s12 + $0x98] sm:$0xff] }
 0x6ee   : > { %4832 = vmatpush.msra.mxu0 %v8231_v43  ;;  %v3397_v54 = vsel %vm3396_vm11, %v3394_v49, %v3395_v62  ;;  %4999 = vmatpush.msra.mxu3 %v4998_v59  ;;  %v7668_v7 = vand.u32 4294901760, %v4548_v38  ;;  %v8233_v39 = vand.u32 4294901760, %v7235_v27  ;;  %v5010_v43 = vand.u32 4294901760, %v5009_v14 }
 0x6ef   : > { %v5015_v63 = vsub.f32 %v7635_v6, %v8232_v31  ;;  %v3399_v40 = vadd.f32 %v3397_v54, %v3381_v0  ;;  %v5020_v56 = vand.u32 4294901760, %v7658_v26  ;;  %v7675_v49 = vsub.f32 %v4549_v10, %v7651_v61  ;;  %4903 = vmatpush.msra.mxu1 %v7294_v51  ;;  %v4546_v51 = vld [vmem:[%s8074_s12 + $0x90] sm:$0xff]  ;;  %4942 = vmatpush.msra.mxu2 %v7632_v8 }
 0x6f0   : > { %4836 = vmatpush.msra.mxu0 %v8233_v39  ;;  %v3415_v62 = vsel %vm3414_vm0, %v7512_v16, %v3413_v45  ;;  %v3451_v0 = vsel %vm3450_vm7, %v3448_v9, %v3449_v21  ;;  %5005 = vmatpush.msra.mxu3 %v5004_v34  ;;  %v7684_v27 = vand.u32 4294901760, %v4547_v13  ;;  %v7687_v59 = vsub.f32 %v4548_v38, %v7668_v7  ;;  %v3497_v38 = vpop.permute.xlu2 %3496 }
 0x6f1   : > { %v3417_v14 = vadd.f32 %v3415_v62, %v3399_v40  ;;  %v5016_v10 = vand.u32 4294901760, %v5015_v63  ;;  %v5021_v16 = vsub.f32 %v7658_v26, %v5020_v56  ;;  %v5026_v45 = vand.u32 4294901760, %v7675_v49  ;;  %4905 = vmatpush.msra.mxu1 %v7304_v23  ;;  %v4545_v23 = vld [vmem:[%s8074_s12 + $0x88] sm:$0xff]  ;;  %4944 = vmatpush.msra.mxu2 %v7651_v61 }
 0x6f2   : > { %3806 = vrot.lane.b32.xlu2 %v7565_v1, %s8218_s0  ;;  %3820 = vrot.lane.b32.xlu0 %v3818_v4, %s8218_s0  ;;  %v3433_v34 = vsel %vm3432_vm2, %v3430_v52, %v3431_v28  ;;  %v3465_v9 = vpop.permute.xlu1 %3464  ;;  %v8234_v21 = vand.u32 4294901760, %v7245_v57  ;;  %v8176_v1 = vand.u32 4294901760, %v7687_v59  ;;  %v7704_v54 = vand.u32 4294901760, %v4546_v51  ;;  %v5566_v28 = vld [vmem:[%s8077_s15 + $0x4e] sm:$0x3] }
 0x6f3   : > { %v7707_v4 = vsub.f32 %v4547_v13, %v7684_v27  ;;  %v3435_v31 = vadd.f32 %v3433_v34, %v3417_v14  ;;  %v3466_v63 = vrot.slane %v3465_v9, 2  ;;  %v3481_v40 = vpop.permute.xlu0 %3480  ;;  %5011 = vmatpush.msra.mxu3 %v5010_v43  ;;  %v5022_v52 = vand.u32 4294901760, %v5021_v16  ;;  %4907 = vmatpush.msra.mxu1 %v7334_v32 }
 0x6f4   : > { %4840 = vmatpush.msra.mxu0 %v8234_v21  ;;  %v5027_v57 = vsub.f32 %v7675_v49, %v5026_v45  ;;  %v3482_v39 = vrot.slane %v3481_v40, 2  ;;  %v8235_v13 = vand.u32 4294901760, %v7271_v33  ;;  %v5033_v43 = vsub.f32 %v7687_v59, %v8176_v1  ;;  %v4544_v33 = vld [vmem:[%s8074_s12 + $0x80] sm:$0xff]  ;;  %4946 = vmatpush.msra.mxu2 %v7668_v7 }
 0x6f5   : > { %v5038_v62 = vand.u32 4294901760, %v7707_v4  ;;  %v7726_v14 = vand.u32 4294901760, %v4545_v23  ;;  %v3453_v16 = vadd.f32 %v3451_v0, %v3435_v31  ;;  %v3467_v34 = vsel %vm3442_vm6, %v3465_v9, %v3466_v63  ;;  %5017 = vmatpush.msra.mxu3 %v5016_v10  ;;  %4909 = vmatpush.msra.mxu1 %v7347_v22 }
 0x6f6   : > { %4844 = vmatpush.msra.mxu0 %v8235_v13  ;;  %v7731_v21 = vsub.f32 %v4546_v51, %v7704_v54  ;;  %v3498_v32 = vrot.slane %v3497_v38, 2  ;;  %v8236_v13 = vand.u32 4294901760, %v7289_v2  ;;  %v5028_v1 = vand.u32 4294901760, %v5027_v57  ;;  %4948 = vmatpush.msra.mxu2 %v7684_v27 }
 0x6f7   : > { %v5039_v0 = vsub.f32 %v7707_v4, %v5038_v62  ;;  %v7742_v9 = vand.u32 4294901760, %v4544_v33  ;;  %v8237_v10 = vrot.slane %v7330_v12, 2  ;;  %v3469_v31 = vadd.f32 %v3467_v34, %v3453_v16  ;;  %5023 = vmatpush.msra.mxu3 %v5022_v52  ;;  %4911 = vmatpush.msra.mxu1 %v7368_v50 }
 0x6f8   : > { %4848 = vmatpush.msra.mxu0 %v8236_v13  ;;  %v5044_v63 = vand.u32 4294901760, %v7731_v21  ;;  %v7749_v2 = vsub.f32 %v4545_v23, %v7726_v14  ;;  %v3483_v22 = vsel %vm3406_vm14, %v3481_v40, %v3482_v39  ;;  %v8238_v57 = vand.u32 4294901760, %v7309_v11  ;;  %4950 = vmatpush.msra.mxu2 %v7704_v54 }
 0x6f9   : > { %v3846_v51 = vmul.f32 %v5566_v28, %v8237_v10  ;;  %v5034_v13 = vand.u32 4294901760, %v5033_v43  ;;  %v7756_v12 = vsub.f32 %v4544_v33, %v7742_v9  ;;  %v3485_v28 = vadd.f32 %v3483_v22, %v3469_v31  ;;  %5029 = vmatpush.msra.mxu3 %v5028_v1  ;;  %4913 = vmatpush.msra.mxu1 %v7385_v29 }
 0x6fa   : > { %4852 = vmatpush.msra.mxu0 %v8238_v57  ;;  %v5045_v52 = vsub.f32 %v7731_v21, %v5044_v63  ;;  %v5050_v40 = vand.u32 4294901760, %v7749_v2  ;;  %v3499_v11 = vsel %vm3388_vm13, %v3497_v38, %v3498_v32  ;;  %v3513_v23 = vpop.permute.xlu1 %3512  ;;  %v8239_v50 = vand.u32 4294901760, %v7322_v24  ;;  %4952 = vmatpush.msra.mxu2 %v7726_v14 }
 0x6fb   : > { %3848 = vrot.lane.b32.xlu2 %v3846_v51, %s8218_s0  ;;  %v5040_v39 = vand.u32 4294901760, %v5039_v0  ;;  %v5056_v43 = vand.u32 4294901760, %v7756_v12  ;;  %v3501_v16 = vadd.f32 %v3499_v11, %v3485_v28  ;;  %v3514_v34 = vrot.slane %v3513_v23, 2  ;;  %v3529_v33 = vpop.permute.xlu0 %3528  ;;  %5035 = vmatpush.msra.mxu3 %v5034_v13 }
 0x6fc   : > { %4856 = vmatpush.msra.mxu0 %v8239_v50  ;;  %v4568_v10 = vpop.permute.xlu2 %4567  ;;  %v5051_v38 = vsub.f32 %v7749_v2, %v5050_v40  ;;  %v3530_v32 = vrot.slane %v3529_v33, 2  ;;  %v8240_v24 = vand.u32 4294901760, %v7355_v19  ;;  %v5046_v1 = vand.u32 4294901760, %v5045_v52  ;;  %4915 = vmatpush.msra.mxu1 %v7408_v17 }
 0x6fd   : > { %v5057_v0 = vsub.f32 %v7756_v12, %v5056_v43  ;;  %v3515_v51 = vsel %vm615_vm3, %v3513_v23, %v3514_v34  ;;  %5041 = vmatpush.msra.mxu3 %v5040_v39  ;;  %v8241_v31 = vand.u32 4294901760, %v7365_v37  ;;  %v8242_v13 = vand.u32 4294901760, %v7382_v20  ;;  %4954 = vmatpush.msra.mxu2 %v7742_v9  ;;  %v5568_v34 = vld [vmem:[%s8077_s15 + $0x52] sm:$0x3] }
 0x6fe   : > { %4860 = vmatpush.msra.mxu0 %v8240_v24  ;;  %v3517_v29 = vadd.f32 %v3515_v51, %v3501_v16  ;;  %v5052_v22 = vand.u32 4294901760, %v5051_v38  ;;  %v3531_v19 = vsel %vm643_vm4, %v3529_v33, %v3530_v32  ;;  %4917 = vmatpush.msra.mxu1 %v7434_v15  ;;  %v8243_v37 = vand.u32 4294901760, %v7406_v25 }
 0x6ff   : > { %5047 = vmatpush.msra.mxu3 %v5046_v1  ;;  %v5058_v17 = vand.u32 4294901760, %v5057_v0  ;;  %v8244_v15 = vand.u32 4294901760, %v7432_v47  ;;  %vm8245_vm3 = vcmask 883712   ;;  %v8246_v20 = vand.u32 4294901760, %v7446_v58  ;;  %v5569_v58 = vld [vmem:[%s8077_s15 + $0x54] sm:$0x3] }
 0x700   : > { %4864 = vmatpush.msra.mxu0 %v8241_v31  ;;  %v3533_v57 = vadd.f32 %v3531_v19, %v3517_v29  ;;  %vm8257_vm11 = vcmask 850944   ;;  %vm8258_vm13 = vcmask 1045504   ;;  %vm8265_vm0 = vcmask 834560  }
 0x701   : > { %5053 = vmatpush.msra.mxu3 %v5052_v22  ;;  %vm8266_vm12 = vcmask 244736   ;;  %vm4017_vm7 = vcmask 220160   ;;  %vm8268_vm8 = vcmask 523264  }
 0x702   : > { %4868 = vmatpush.msra.mxu0 %v8242_v13  ;;  %v7789_v28 = vpop.permute.xlu1 %4571 }
 0x703   : > { %5059 = vmatpush.msra.mxu3 %v5058_v17 }
 0x704   : > { %4872 = vmatpush.msra.mxu0 %v8243_v37  ;;  %v3546_v52 = vpop.permute.xlu2 %3545 }
 0x705   : > { %v3547_v11 = vrot.slane %v3546_v52, 2 }
 0x706   : > { %4876 = vmatpush.msra.mxu0 %v8244_v15 }
 0x707   : > { %v3548_v23 = vsel %vm8245_vm3, %v3546_v52, %v3547_v11  ;;  %v8248_v11 = vand.u32 4294901760, %v7486_v53 }
 0x708   : > { %4880 = vmatpush.msra.mxu0 %v8246_v20  ;;  %v3550_v50 = vadd.f32 %v3548_v23, %v3533_v57  ;;  %v5567_v23 = vld [vmem:[%s8077_s15 + $0x50] sm:$0x3] }
 0x70a   : > { %v3562_v39 = vpop.permute.xlu1 %3561 }
 0x70b   : > { %v3563_v16 = vrot.slane %v3562_v39, 2 }
 0x70c   : > { %v3871_v25 = vpop.permute.xlu2 %3870 }
 0x70d   : > { %v3872_v33 = vrot.slane %v3871_v25, 2  ;;  %v3564_v38 = vsel %vm8247_vm10, %v3562_v39, %v3563_v16  ;;  %v8249_v16 = vld [vmem:[#allocation4_spill] sm:$0xff] }
 0x70e   : > { %v7802_v32 = vadd.f32 %v3564_v38, %v3550_v50  ;;  %v5571_v25 = vld [vmem:[%s8077_s15 + $0x58] sm:$0x3] }
 0x70f   : > { %v3874_v47 = vmul.f32 %v5568_v34, %v3872_v33  ;;  %v8250_v34 = vand.u32 4294901760, %v8249_v16 }
 0x711   : > { %3876 = vrot.lane.b32.xlu1 %v3874_v47, %s8218_s0 }
 0x712   : > { %v3885_v24 = vpop.permute.xlu1 %3884 }
 0x713   : > { %v3886_v1 = vrot.slane %v3885_v24, 2  ;;  %v8251_v24 = vld [vmem:[#allocation5_spill] sm:$0xff] }
 0x714   : > { %v4570_v0 = vpop.permute.xlu0 %4569  ;;  %v7808_v51 = vpop.permute.xlu2 %3593 }
 0x715   : > { %v4573_v29 = vsel %vm643_vm4, %v4568_v10, %v4570_v0  ;;  %v4574_v31 = vsel %vm643_vm4, %v4570_v0, %v7789_v28  ;;  %v3888_v22 = vmul.f32 %v5569_v58, %v3886_v1  ;;  %v8252_v1 = vand.u32 4294901760, %v8251_v24 }
 0x716   : > { %v7813_v19 = vand.u32 4294901760, %v4573_v29  ;;  %v7815_v57 = vand.u32 4294901760, %v4574_v31  ;;  %vm8255_vm4 = vcmask 867328  }
 0x717   : > { %3890 = vrot.lane.b32.xlu2 %v3888_v22, %s8218_s0 }
 0x718   : > { %v4615_v13 = vsub.f32 %v4573_v29, %v7813_v19  ;;  %v7819_v17 = vsub.f32 %v4574_v31, %v7815_v57  ;;  %4720 = vmatmul.f32.vlgmr.msrb.gmra.mxu1 %v7813_v19  ;;  %v8253_v29 = vand.u32 4294901760, %v7540_v46 }
 0x719   : > { %5120 = vmatpush.msrb.mxu1 %v7470_v35 }
 0x71a   : > { %v4616_v10 = vand.u32 4294901760, %v4615_v13  ;;  %v4957_v37 = vand.u32 4294901760, %v7819_v17  ;;  %4774 = vmatmul.f32.vlgmr.msrb.gmra.mxu2 %v4615_v13  ;;  %v3610_v52 = vpop.permute.xlu1 %3609 }
 0x71b   : > { %5122 = vmatpush.msrb.mxu1 %v7490_v55  ;;  %5161 = vmatpush.msrb.mxu2 %v8248_v11  ;;  %v8254_v11 = vand.u32 4294901760, %v7563_v3 }
 0x71c   : > { %v4617_v15 = vsub.f32 %v4615_v13, %v4616_v10  ;;  %v3857_v20 = vpop.permute.xlu0 %3856  ;;  %4813 = vmatmul.f32.vlgmr.msrb.gmra.mxu3 %v4616_v10  ;;  %v3913_v50 = vpop.permute.xlu2 %3912  ;;  %v4958_v38 = vsub.f32 %v7819_v17, %v4957_v37  ;;  %v3595_v10 = vrot.slane %v7808_v51, 2 }
 0x71d   : > { %v3858_v39 = vrot.slane %v3857_v20, 2  ;;  %5124 = vmatpush.msrb.mxu1 %v7504_v48  ;;  %5165 = vmatpush.msrb.mxu2 %v8250_v34  ;;  %v3914_v33 = vrot.slane %v3913_v50, 2 }
 0x71e   : > { %5228 = vmatpush.msrb.mxu3 %v7470_v35  ;;  %v4618_v47 = vand.u32 4294901760, %v4617_v15  ;;  %v4959_v35 = vand.u32 4294901760, %v4958_v38  ;;  %v4563_v15 = vld [vmem:[%s8074_s12 + $0x118] sm:$0x3f] }
 0x71f   : > { %v3860_v58 = vmul.f32 %v5567_v23, %v3858_v39  ;;  %5126 = vmatpush.msrb.mxu1 %v7519_v44  ;;  %5169 = vmatpush.msrb.mxu2 %v8252_v1  ;;  %v3916_v0 = vmul.f32 %v5571_v25, %v3914_v33  ;;  %v3611_v23 = vrot.slane %v3610_v52, 2  ;;  %v4580_v34 = vsel %vm8258_vm13, %v4563_v15, 0  ;;  %v8259_v33 = vld [vmem:[#allocation6_spill] sm:$0xff] }
 0x720   : > { %5230 = vmatpush.msrb.mxu3 %v7490_v55  ;;  %4619 = vmatmul.f32.vlgmr.msrb.gmra.mxu0 %v4618_v47  ;;  %v5572_v55 = vld [vmem:[%s8077_s15 + $0x5a] sm:$0x3]  ;;  %v8260_v38 = vand.u32 4294901760, %v8259_v33  ;;  %v7890_v1 = vand.u32 4294901760, %v4580_v34 }
 0x721   : > { %4919 = vmatmul.f32.vlgmr.msra.gmra.mxu1 %v7813_v19  ;;  %5067 = vmatpush.msrb.mxu0 %v7486_v53 }
 0x722   : > { %5128 = vmatpush.msrb.mxu1 %v7537_v5  ;;  %5173 = vmatpush.msrb.mxu2 %v8253_v29  ;;  %v3927_v31 = vpop.permute.xlu1 %3926 }
 0x723   : > { %5232 = vmatpush.msrb.mxu3 %v7504_v48  ;;  %3862 = vrot.lane.b32.xlu0 %v3860_v58, %s8218_s0  ;;  %v3928_v22 = vrot.slane %v3927_v31, 2  ;;  %v4560_v31 = vld [vmem:[%s8074_s12 + $0x100] sm:$0xff] }
 0x724   : > { %3918 = vrot.lane.b32.xlu1 %v3916_v0, %s8218_s0  ;;  %4960 = vmatmul.f32.vlgmr.msra.gmra.mxu2 %v4959_v35  ;;  %v3578_v53 = vpop.permute.xlu0 %3577  ;;  %v7856_v13 = vpop.permute.xlu2 %3638 }
 0x725   : > { %5070 = vmatpush.msrb.mxu0 %v8249_v16  ;;  %5130 = vmatpush.msrb.mxu1 %v7560_v60  ;;  %v3579_v48 = vrot.slane %v3578_v53, 2  ;;  %v3930_v20 = vmul.f32 %v5572_v55, %v3928_v22  ;;  %v8256_v16 = vand.u32 4294901760, %v7585_v30  ;;  %v7920_v22 = vsub.f32 %v4580_v34, %v7890_v1 }
 0x726   : > { %5177 = vmatpush.msrb.mxu2 %v8254_v11  ;;  %5234 = vmatpush.msrb.mxu3 %v7519_v44  ;;  %v3596_v44 = vsel %vm8257_vm11, %v7808_v51, %v3595_v10  ;;  %v7932_v10 = vand.u32 4294901760, %v4560_v31 }
 0x727   : > { %v3580_v50 = vsel %vm8255_vm4, %v3578_v53, %v3579_v48  ;;  %5061 = vmatmul.f32.vlgmr.msra.gmra.mxu3 %v7815_v57  ;;  %5073 = vmatpush.msrb.mxu0 %v8251_v24 }
 0x728   : > { %v3582_v39 = vadd.f32 %v3580_v50, %v7802_v32  ;;  %5132 = vmatpush.msrb.mxu1 %v7580_v18  ;;  %5181 = vmatpush.msrb.mxu2 %v8256_v16  ;;  %v3612_v32 = vsel %vm8261_vm9, %v3610_v52, %v3611_v23  ;;  %v5575_v52 = vld [vmem:[%s8077_s15 + $0x60] sm:$0x3]  ;;  %v3640_v23 = vrot.slane %v7856_v13, 6 }
 0x729   : > { %5236 = vmatpush.msrb.mxu3 %v7537_v5  ;;  %5076 = vmatpush.msrb.mxu0 %v7540_v46  ;;  %v4562_v5 = vld [vmem:[%s8074_s12 + $0x110] sm:$0xff] }
 0x72a   : > { %v3598_v25 = vadd.f32 %v3596_v44, %v3582_v39  ;;  %5134 = vmatpush.msrb.mxu1 %v7596_v42  ;;  %5185 = vmatpush.msrb.mxu2 %v8260_v38  ;;  %v3969_v47 = vpop.permute.xlu1 %3968  ;;  %v7903_v0 = vand.u32 4294901760, %v4562_v5  ;;  %v3641_v16 = vsel %vm3237_vm5, %v3640_v23, %v7856_v13  ;;  %v4577_v13 = vsel %vm8266_vm12, %v7789_v28, 0 }
 0x72b   : > { %5238 = vmatpush.msrb.mxu3 %v7560_v60  ;;  %3932 = vrot.lane.b32.xlu2 %v3930_v20, %s8218_s0  ;;  %v3970_v46 = vrot.slane %v3969_v47, 2  ;;  %v8262_v60 = vand.u32 4294901760, %v7613_v36  ;;  %v8264_v20 = vand.u32 4294901760, %v7687_v59 }
 0x72c   : > { %4882 = vmatmul.f32.vlgmr.msra.gmra.mxu0 %v7813_v19  ;;  %5136 = vmatpush.msrb.mxu1 %v7610_v41  ;;  %v3899_v51 = vpop.permute.xlu0 %3898  ;;  %v3955_v58 = vpop.permute.xlu2 %3954  ;;  %v3614_v24 = vadd.f32 %v3612_v32, %v3598_v25  ;;  %v4561_v19 = vld [vmem:[%s8074_s12 + $0x108] sm:$0xff] }
 0x72d   : > { %5079 = vmatpush.msrb.mxu0 %v7563_v3  ;;  %5189 = vmatpush.msrb.mxu2 %v8262_v60  ;;  %v8263_v3 = vand.u32 4294901760, %v7635_v6  ;;  %v3900_v29 = vrot.slane %v3899_v51, 2  ;;  %v3956_v35 = vrot.slane %v3955_v58, 2  ;;  %v3972_v55 = vmul.f32 %v5575_v52, %v3970_v46 }
 0x72e   : > { %5240 = vmatpush.msrb.mxu3 %v7580_v18  ;;  %5138 = vmatpush.msrb.mxu1 %v7632_v8  ;;  %v5570_v18 = vld [vmem:[%s8077_s15 + $0x56] sm:$0x3]  ;;  %v7922_v53 = vand.u32 4294901760, %v4561_v19 }
 0x72f   : > { %5082 = vmatpush.msrb.mxu0 %v7585_v30  ;;  %5193 = vmatpush.msrb.mxu2 %v8263_v3  ;;  %v5574_v30 = vld [vmem:[%s8077_s15 + $0x5e] sm:$0x3]  ;;  %v3902_v48 = vmul.f32 %v5570_v18, %v3900_v29 }
 0x730   : > { %5242 = vmatpush.msrb.mxu3 %v7596_v42  ;;  %5140 = vmatpush.msrb.mxu1 %v7651_v61  ;;  %v7930_v42 = vsub.f32 %v4562_v5, %v7903_v0  ;;  %v3958_v11 = vmul.f32 %v5574_v30, %v3956_v35  ;;  %v7941_v15 = vsub.f32 %v4561_v19, %v7922_v53 }
 0x731   : > { %5085 = vmatpush.msrb.mxu0 %v8259_v33  ;;  %5197 = vmatpush.msrb.mxu2 %v5020_v56 }
 0x732   : > { %5244 = vmatpush.msrb.mxu3 %v7610_v41  ;;  %5142 = vmatpush.msrb.mxu1 %v7668_v7  ;;  %v5307_v41 = vand.u32 4294901760, %v7920_v22  ;;  %v5319_v39 = vand.u32 4294901760, %v7941_v15 }
 0x733   : > { %5088 = vmatpush.msrb.mxu0 %v7613_v36  ;;  %5201 = vmatpush.msrb.mxu2 %v5026_v45  ;;  %v7951_v45 = vsub.f32 %v4560_v31, %v7932_v10 }
 0x734   : > { %5246 = vmatpush.msrb.mxu3 %v7632_v8  ;;  %3974 = vrot.lane.b32.xlu2 %v3972_v55, %s8218_s0  ;;  %v3626_v56 = vpop.permute.xlu0 %3625  ;;  %v5313_v8 = vand.u32 4294901760, %v7930_v42  ;;  %v3681_v25 = vpop.permute.xlu2 %3680 }
 0x735   : > { %5091 = vmatpush.msrb.mxu0 %v7635_v6  ;;  %5144 = vmatpush.msrb.mxu1 %v7684_v27  ;;  %v3627_v36 = vrot.slane %v3626_v56, 2  ;;  %v5325_v34 = vand.u32 4294901760, %v7951_v45  ;;  %v3682_v5 = vrot.slane %v3681_v25, 6 }
 0x736   : > { %5205 = vmatpush.msrb.mxu2 %v8264_v20  ;;  %5248 = vmatpush.msrb.mxu3 %v7651_v61  ;;  %v5308_v61 = vsub.f32 %v7920_v22, %v5307_v41 }
 0x737   : > { %3904 = vrot.lane.b32.xlu0 %v3902_v48, %s8218_s0  ;;  %3960 = vrot.lane.b32.xlu1 %v3958_v11, %s8218_s0  ;;  %v3628_v50 = vsel %vm8265_vm0, %v3626_v56, %v3627_v36 }
 0x738   : > { %5094 = vmatpush.msrb.mxu0 %v7658_v26  ;;  %5146 = vmatpush.msrb.mxu1 %v7704_v54  ;;  %v3630_v6 = vadd.f32 %v3628_v50, %v3614_v24  ;;  %v5314_v26 = vsub.f32 %v7930_v42, %v5313_v8  ;;  %v3683_v24 = vsel %vm3237_vm5, %v3682_v5, %v3681_v25 }
 0x739   : > { %5209 = vmatpush.msrb.mxu2 %v5038_v62  ;;  %5250 = vmatpush.msrb.mxu3 %v7668_v7  ;;  %v5309_v7 = vand.u32 4294901760, %v5308_v61  ;;  %v5284_v62 = vand.u32 4294901760, %v4577_v13 }
 0x73a   : > { %v7967_v44 = vadd.f32 %v3641_v16, %v3630_v6  ;;  %5097 = vmatpush.msrb.mxu0 %v7675_v49  ;;  %5148 = vmatpush.msrb.mxu1 %v7726_v14  ;;  %v5320_v49 = vsub.f32 %v7941_v15, %v5319_v39 }
 0x73b   : > { %5213 = vmatpush.msrb.mxu2 %v5044_v63  ;;  %5252 = vmatpush.msrb.mxu3 %v7684_v27  ;;  %v5315_v27 = vand.u32 4294901760, %v5314_v26 }
 0x73c   : > { %5100 = vmatpush.msrb.mxu0 %v7687_v59  ;;  %5150 = vmatpush.msrb.mxu1 %v7742_v9  ;;  %v5326_v59 = vsub.f32 %v7951_v45, %v5325_v34  ;;  %v3941_v63 = vpop.permute.xlu0 %3940  ;;  %v3723_v19 = vpop.permute.xlu2 %3722 }
 0x73d   : > { %5217 = vmatpush.msrb.mxu2 %v5050_v40  ;;  %5254 = vmatpush.msrb.mxu3 %v7704_v54  ;;  %v5321_v40 = vand.u32 4294901760, %v5320_v49  ;;  %v5285_v54 = vsub.f32 %v4577_v13, %v5284_v62  ;;  %v3724_v35 = vrot.slane %v3723_v19, 6 }
 0x73e   : > { %5154 = vmatmul.f32.vlgmr.msrb.gmra.mxu1 %v4957_v37  ;;  %5103 = vmatpush.msrb.mxu0 %v7707_v4  ;;  %v3942_v4 = vrot.slane %v3941_v63, 2  ;;  %v5327_v28 = vand.u32 4294901760, %v5326_v59 }
 0x73f   : > { %5221 = vmatpush.msrb.mxu2 %v5056_v43  ;;  %5256 = vmatpush.msrb.mxu3 %v7726_v14  ;;  %v5573_v14 = vld [vmem:[%s8077_s15 + $0x5c] sm:$0x3]  ;;  %v3725_v30 = vsel %vm3237_vm5, %v3724_v35, %v3723_v19 }
 0x740   : > { %5310 = vmatpush.msra.mxu1 %v5309_v7  ;;  %5223 = vmatmul.f32.vlgmr.msrb.gmra.mxu2 %v7815_v57 }
 0x741   : > { %5106 = vmatpush.msrb.mxu0 %v7731_v21  ;;  %5258 = vmatpush.msrb.mxu3 %v7742_v9  ;;  %v5286_v21 = vand.u32 4294901760, %v5285_v54  ;;  %v3944_v9 = vmul.f32 %v5573_v14, %v3942_v4 }
 0x742   : > { %5316 = vmatpush.msra.mxu1 %v5315_v27  ;;  %5348 = vmatpush.msra.mxu2 %v7920_v22 }
 0x743   : > { %5260 = vmatmul.f32.vlgmr.msrb.gmra.mxu3 %v7815_v57  ;;  %5109 = vmatpush.msrb.mxu0 %v7749_v2  ;;  %v5287_v2 = vsub.f32 %v5285_v54, %v5286_v21  ;;  %v3653_v57 = vpop.permute.xlu1 %3652 }
 0x744   : > { %5322 = vmatpush.msra.mxu1 %v5321_v40  ;;  %5351 = vmatpush.msra.mxu2 %v7930_v42  ;;  %v3667_v43 = vpop.permute.xlu0 %3666 }
 0x745   : > { %5377 = vmatpush.msra.mxu3 %v7890_v1  ;;  %5112 = vmatpush.msrb.mxu0 %v7756_v12  ;;  %v5288_v12 = vand.u32 4294901760, %v5287_v2  ;;  %v3668_v37 = vrot.slane %v3667_v43, 6 }
 0x746   : > { %5328 = vmatpush.msra.mxu1 %v5327_v28  ;;  %5354 = vmatpush.msra.mxu2 %v7941_v15 }
 0x747   : > { %5379 = vmatpush.msra.mxu3 %v7903_v0  ;;  %5115 = vmatmul.f32.vlgmr.msrb.gmra.mxu0 %v7819_v17  ;;  %v3654_v17 = vrot.slane %v3653_v57, 6  ;;  %v3669_v32 = vsel %vm3237_vm5, %v3668_v37, %v3667_v43 }
 0x748   : > { %5330 = vmatmul.f32.vlgmr.msra.gmra.mxu1 %v5284_v62  ;;  %5277 = vmatpush.msra.mxu0 %v7890_v1 }
 0x749   : > { %5357 = vmatpush.msra.mxu2 %v7951_v45  ;;  %5381 = vmatpush.msra.mxu3 %v7922_v53  ;;  %v3655_v38 = vsel %vm3237_vm5, %v3654_v17, %v3653_v57 }
 0x74a   : > { %5437 = vmatpush.msrb.mxu1 %v7890_v1  ;;  %3946 = vrot.lane.b32.xlu0 %v3944_v9, %s8218_s0  ;;  %v3657_v47 = vadd.f32 %v3655_v38, %v7967_v44  ;;  %s5683_s0 = smov 27  }
 0x74b   : > { %5360 = vmatmul.f32.vlgmr.msra.gmra.mxu2 %v5285_v54  ;;  %5279 = vmatpush.msra.mxu0 %v7903_v0  ;;  %v3709_v58 = vpop.permute.xlu1 %3708 }
 0x74c   : > { %5383 = vmatpush.msra.mxu3 %v7932_v10  ;;  %5439 = vmatpush.msrb.mxu1 %v7903_v0  ;;  %v3695_v33 = vpop.permute.xlu0 %3694  ;;  %v3671_v51 = vadd.f32 %v3669_v32, %v3657_v47  ;;  %v3710_v52 = vrot.slane %v3709_v58, 6 }
 0x74d   : > { %5387 = vmatmul.f32.vlgmr.msra.gmra.mxu3 %v5286_v21  ;;  %5281 = vmatpush.msra.mxu0 %v7922_v53  ;;  %v3696_v46 = vrot.slane %v3695_v33, 6 }
 0x74e   : > { %5441 = vmatpush.msrb.mxu1 %v7922_v53  ;;  %v3685_v60 = vadd.f32 %v3683_v24, %v3671_v51  ;;  %v3711_v29 = vsel %vm3237_vm5, %v3710_v52, %v3709_v58 }
 0x74f   : > { %5283 = vmatpush.msra.mxu0 %v7932_v10  ;;  %v3697_v1 = vsel %vm3237_vm5, %v3696_v46, %v3695_v33 }
 0x750   : > { %5443 = vmatpush.msrb.mxu1 %v7932_v10  ;;  %5289 = vmatmul.f32.vlgmr.msra.gmra.mxu0 %v5288_v12  ;;  %v3699_v0 = vadd.f32 %v3697_v1, %v3685_v60  ;;  %v3765_v10 = vpop.permute.xlu2 %3764 }
 0x751   : > { %5445 = vmatmul.f32.vlgmr.msrb.gmra.mxu1 %v5284_v62  ;;  %5406 = vmatpush.msrb.mxu0 %v5307_v41  ;;  %v3766_v41 = vrot.slane %v3765_v10, 6 }
 0x752   : > { %v3713_v55 = vadd.f32 %v3711_v29, %v3699_v0 }
 0x753   : > { %5410 = vmatpush.msrb.mxu0 %v5313_v8  ;;  %v3751_v18 = vpop.permute.xlu1 %3750  ;;  %v3767_v20 = vsel %vm3237_vm5, %v3766_v41, %v3765_v10 }
 0x754   : > { %v3737_v3 = vpop.permute.xlu0 %3736  ;;  %v3727_v53 = vadd.f32 %v3725_v30, %v3713_v55  ;;  %v3752_v42 = vrot.slane %v3751_v18, 6 }
 0x755   : > { %5414 = vmatpush.msrb.mxu0 %v5319_v39  ;;  %v3738_v31 = vrot.slane %v3737_v3, 6 }
 0x756   : > { %v3753_v56 = vsel %vm3237_vm5, %v3752_v42, %v3751_v18 }
 0x757   : > { %5418 = vmatpush.msrb.mxu0 %v5325_v34  ;;  %v3739_v22 = vsel %vm3237_vm5, %v3738_v31, %v3737_v3 }
 0x758   : > { %5420 = vmatmul.f32.vlgmr.msrb.gmra.mxu0 %v5284_v62  ;;  %v3741_v48 = vadd.f32 %v3739_v22, %v3727_v53  ;;  %v3807_v6 = vpop.permute.xlu2 %3806 }
 0x759   : > { %v3808_v44 = vrot.slane %v3807_v6, 6 }
 0x75a   : > { %v3755_v23 = vadd.f32 %v3753_v56, %v3741_v48 }
 0x75b   : > { %v3793_v36 = vpop.permute.xlu1 %3792  ;;  %v3809_v7 = vsel %vm3237_vm5, %v3808_v44, %v3807_v6 }
 0x75c   : > { %v3779_v11 = vpop.permute.xlu0 %3778  ;;  %v3769_v45 = vadd.f32 %v3767_v20, %v3755_v23  ;;  %v3794_v50 = vrot.slane %v3793_v36, 6 }
 0x75d   : > { %v3780_v15 = vrot.slane %v3779_v11, 6 }
 0x75e   : > { %v3795_v16 = vsel %vm3237_vm5, %v3794_v50, %v3793_v36 }
 0x75f   : > { %v3781_v8 = vsel %vm3237_vm5, %v3780_v15, %v3779_v11 }
 0x760   : > { %v3783_v61 = vadd.f32 %v3781_v8, %v3769_v45  ;;  %v3849_v59 = vpop.permute.xlu2 %3848 }
 0x761   : > { %v3850_v4 = vrot.slane %v3849_v59, 6 }
 0x762   : > { %v3797_v34 = vadd.f32 %v3795_v16, %v3783_v61 }
 0x763   : > { %v3835_v13 = vpop.permute.xlu1 %3834  ;;  %v3851_v9 = vsel %vm3237_vm5, %v3850_v4, %v3849_v59 }
 0x764   : > { %v3821_v39 = vpop.permute.xlu0 %3820  ;;  %v3811_v62 = vadd.f32 %v3809_v7, %v3797_v34  ;;  %v3836_v27 = vrot.slane %v3835_v13, 6 }
 0x765   : > { %v3822_v26 = vrot.slane %v3821_v39, 6 }
 0x766   : > { %v3837_v54 = vsel %vm3237_vm5, %v3836_v27, %v3835_v13 }
 0x767   : > { %v3823_v49 = vsel %vm3237_vm5, %v3822_v26, %v3821_v39 }
 0x768   : > { %v3825_v63 = vadd.f32 %v3823_v49, %v3811_v62 }
 0x76a   : > { %v3839_v14 = vadd.f32 %v3837_v54, %v3825_v63 }
 0x76c   : > { %v3853_v43 = vadd.f32 %v3851_v9, %v3839_v14 }
 0x771   : > { %v3891_v12 = vpop.permute.xlu2 %3890 }
 0x772   : > { %v3892_v25 = vrot.slane %v3891_v12, 6 }
 0x774   : > { %v3893_v46 = vsel %vm3237_vm5, %v3892_v25, %v3891_v12 }
 0x783   : > { %v3877_v21 = vpop.permute.xlu1 %3876 }
 0x784   : > { %v3878_v57 = vrot.slane %v3877_v21, 6 }
 0x785   : > { %v3933_v47 = vpop.permute.xlu2 %3932 }
 0x786   : > { %v3879_v33 = vsel %vm3237_vm5, %v3878_v57, %v3877_v21  ;;  %v3934_v60 = vrot.slane %v3933_v47, 6 }
 0x788   : > { %v3935_v35 = vsel %vm3237_vm5, %v3934_v60, %v3933_v47 }
 0x78e   : > { %v3975_v3 = vpop.permute.xlu2 %3974 }
 0x78f   : > { %v3976_v30 = vrot.slane %v3975_v3, 6 }
 0x791   : > { %v3977_v48 = vsel %vm3237_vm5, %v3976_v30, %v3975_v3  ;;  %v8267_v30 = vld [vmem:[#allocation3_spill] sm:$0xff] }
 0x795   : > { %v3863_v40 = vpop.permute.xlu0 %3862  ;;  %v4721_v27 = vpop.f32.mrf.mxu1 }
 0x796   : > { %v3864_v28 = vrot.slane %v3863_v40, 6  ;;  %v3919_v5 = vpop.permute.xlu1 %3918 }
 0x797   : > { %v3920_v24 = vrot.slane %v3919_v5, 6 }
 0x798   : > { %v3865_v2 = vsel %vm3237_vm5, %v3864_v28, %v3863_v40 }
 0x799   : > { %v3867_v17 = vadd.f32 %v3865_v2, %v3853_v43  ;;  %v3921_v52 = vsel %vm3237_vm5, %v3920_v24, %v3919_v5 }
 0x79b   : > { %v3881_v32 = vadd.f32 %v3879_v33, %v3867_v17 }
 0x79d   : > { %v3895_v58 = vadd.f32 %v3893_v46, %v3881_v32  ;;  %v4620_v62 = vpop.f32.mrf.mxu0  ;;  %v4775_v63 = vpop.f32.mrf.mxu2 }
 0x79e   : > { %v4722_v59 = vadd.f32 %v4721_v27, %v4620_v62  ;;  %v4920_v21 = vpop.f32.mrf.mxu1 }
 0x79f   : > { %v4814_v54 = vpop.f32.mrf.mxu3 }
 0x7a0   : > { %v4776_v40 = vadd.f32 %v4775_v63, %v4722_v59 }
 0x7a2   : > { %v4815_v28 = vadd.f32 %v4814_v54, %v4776_v40 }
 0x7a7   : > { %v4961_v2 = vpop.f32.mrf.mxu2 }
 0x7a9   : > { %v3905_v37 = vpop.permute.xlu0 %3904  ;;  %v3961_v0 = vpop.permute.xlu1 %3960 }
 0x7aa   : > { %v3906_v38 = vrot.slane %v3905_v37, 6  ;;  %v3962_v31 = vrot.slane %v3961_v0, 6  ;;  %v4883_v4 = vpop.f32.mrf.mxu0  ;;  %v5062_v43 = vpop.f32.mrf.mxu3 }
 0x7ab   : > { %v4884_v14 = vadd.f32 %v4883_v4, %v4815_v28 }
 0x7ac   : > { %v3907_v51 = vsel %vm3237_vm5, %v3906_v38, %v3905_v37  ;;  %v3963_v42 = vsel %vm3237_vm5, %v3962_v31, %v3961_v0 }
 0x7ad   : > { %v3909_v1 = vadd.f32 %v3907_v51, %v3895_v58  ;;  %v4921_v9 = vadd.f32 %v4920_v21, %v4884_v14 }
 0x7af   : > { %v3923_v19 = vadd.f32 %v3921_v52, %v3909_v1  ;;  %v4962_v12 = vadd.f32 %v4961_v2, %v4921_v9 }
 0x7b1   : > { %v3937_v18 = vadd.f32 %v3935_v35, %v3923_v19  ;;  %v5063_v17 = vadd.f32 %v5062_v43, %v4962_v12 }
 0x7bb   : > { %v5155_v25 = vpop.f32.mrf.mxu1 }
 0x7bc   : > { %v3947_v29 = vpop.permute.xlu0 %3946 }
 0x7bd   : > { %v3948_v55 = vrot.slane %v3947_v29, 6 }
 0x7bf   : > { %v3949_v22 = vsel %vm3237_vm5, %v3948_v55, %v3947_v29 }
 0x7c0   : > { %v3951_v53 = vadd.f32 %v3949_v22, %v3937_v18 }
 0x7c2   : > { %v3965_v10 = vadd.f32 %v3963_v42, %v3951_v53 }
 0x7c3   : > { %v5224_v38 = vpop.f32.mrf.mxu2 }
 0x7c4   : > { %v3979_v11 = vadd.f32 %v3977_v48, %v3965_v10  ;;  %v5116_v57 = vpop.f32.mrf.mxu0 }
 0x7c5   : > { %v5117_v37 = vadd.f32 %v5116_v57, %v5063_v17  ;;  %v5331_v58 = vpop.f32.mrf.mxu1 }
 0x7c6   : > { %v5576_v56 = vrot.slane %v3979_v11, 9  ;;  %v5261_v47 = vpop.f32.mrf.mxu3 }
 0x7c7   : > { %v5156_v33 = vadd.f32 %v5155_v25, %v5117_v37 }
 0x7c8   : > { %v3984_v41 = vadd.f32 %v5576_v56, %v3979_v11 }
 0x7c9   : > { %v5225_v32 = vadd.f32 %v5224_v38, %v5156_v33 }
 0x7ca   : > { %v5577_v15 = vmul.f32 -1.442695, %v3984_v41 }
 0x7cb   : > { %v5262_v5 = vadd.f32 %v5261_v47, %v5225_v32 }
 0x7cc   : > { %5636 = vpow2.f32 %v5577_v15 }
 0x7cd   : > { %v5290_v46 = vpop.f32.mrf.mxu0 }
 0x7ce   : > { %v5291_v51 = vadd.f32 %v5290_v46, %v5262_v5  ;;  %v5361_v1 = vpop.f32.mrf.mxu2  ;;  %v5446_v31 = vpop.f32.mrf.mxu1 }
 0x7d0   : > { %v5332_v24 = vadd.f32 %v5331_v58, %v5291_v51  ;;  %v5388_v52 = vpop.f32.mrf.mxu3 }
 0x7d2   : > { %v5637_v23 = vpop.eup %5636  ;;  %v5362_v60 = vadd.f32 %v5361_v1, %v5332_v24 }
 0x7d3   : > { %v3988_v36 = vadd.f32 1.0, %v5637_v23 }
 0x7d4   : > { %v5389_v19 = vadd.f32 %v5388_v52, %v5362_v60 }
 0x7d5   : > { %5638 = vrcp.f32 %v3988_v36  ;;  %v4000_v50 = vand.u32 2147483648, %v3988_v36  ;;  %v3998_v61 = vand.u32 2147483647, %v3988_v36  ;;  %vm3994_vm15 = vweird.f32 %v3988_v36  ;;  %v5421_v0 = vpop.f32.mrf.mxu0 }
 0x7d6   : > { %v5422_v3 = vadd.f32 %v5421_v0, %v5389_v19 }
 0x7d7   : > { %v4001_v16 = vor.u32 1.1754944e-38, %v4000_v50  ;;  %vm3999_vm5 = vcmp.eq.f32.partialorder %v3998_v61, 8.507059e+37 }
 0x7d8   : > { %v5447_v18 = vadd.f32 %v5446_v31, %v5422_v3 }
 0x7db   : > { %v5639_v20 = vpop.eup %5638 }
 0x7dc   : > { %v3990_v8 = vmul.f32 %v5639_v20, %v3988_v36  ;;  %vm3995_vm14 = vweird.f32 %v5639_v20 }
 0x7dd   : > { %vm3996_vm6 = vmor %vm3994_vm15, %vm3995_vm14 }
 0x7de   : > { %v3991_v45 = vsub.f32 1.0, %v3990_v8 }
 0x7e0   : > { %v3992_v6 = vmul.f32 %v5639_v20, %v3991_v45 }
 0x7e2   : > { %v3993_v39 = vadd.f32 %v5639_v20, %v3992_v6 }
 0x7e4   : > { %v3997_v44 = vsel %vm3996_vm6, %v5639_v20, %v3993_v39 }
 0x7e5   : > { %v4002_v26 = vsel %vm3999_vm5, %v4001_v16, %v3997_v44 }
 0x7e6   : > { %v4006_v34 = vperm.slane %v4002_v26, 2  ;;  %v4005_v13 = vperm.slane %v4002_v26, 0 }
 0x7e8   : > { %v4010_v7 = vperm.slane %v4006_v34, 0  ;;  %v4009_v49 = vperm.slane %v4005_v13, 0 }
 0x7ea   : > { %4015 = vrot.lane.b32.xlu1 %v4010_v7, %s5683_s0  ;;  %4013 = vrot.lane.b32.xlu0 %v4009_v49, %s5683_s0 }
 0x85c   : > { %v4016_v29 = vpop.permute.xlu1 %4015  ;;  %v4014_v35 = vpop.permute.xlu0 %4013 }
 0x85d   : > { %v4018_v55 = vsel %vm4017_vm7, %v4014_v35, %v4016_v29 }
 0x85e   : > { %v4020_v22 = vmul.f32 %v4018_v55, %v8267_v30 }
 0x860   : > { %v5449_v53 = vadd.f32 %v5447_v18, %v4020_v22 }
 0x862   : > { %5450 = vst.msk [vmem:[%s519_s27] sm:$0xff] %vm8268_vm8, %v5449_v53 }
 0x863 PF: > { %s26_s21 = sadd.s32 1, %s5646_s21  }
 0x864   : > { %p23_p4 = scmp.ge.s32.totalorder %s26_s21, 4  }
 0x866   :  { %25 = sbr.rel (!%p23_p4) target bundleno = 3 (0x3), region = 180 }

</bundles_post_ra>
